<compile_context>
chip_gen: v7x
topology: tpu7x:2x2x1
jax: 0.10.0
libtpu: 0.0.40
codegen_flags: <defaults>
</compile_context>

<pallas_src>
import functools
import math

import jax
import jax.numpy as jnp
from jax import lax
from jax.experimental import pallas as pl
from jax.experimental.pallas import tpu as pltpu


# ----------------------------------------------------------------------------
# Fused kernel: conv stack + residuals + attentive pooling + final linear
# ----------------------------------------------------------------------------
def _prosody_fused_kernel(num_blocks, layers_per_block, num_heads, cdt,
                          x_ref, w0_ref, wc_ref, bc_ref, g_ref, be_ref,
                          wqkv_ref, bqkv_ref, wof_ref, bof_ref, o_ref):
    # x_ref    : (Bb, T, cin)        input tile, (time, channel) layout
    # w0_ref   : (5, cin, C)   cdt   initial-conv tap weights
    # wc_ref   : (NBL*5, C, C) cdt   block-conv tap weights, index = layer*5+k
    # bc_ref   : (L, 1, C)     f32   conv biases (L = 1 + NBL)
    # g_ref    : (L, T, C)     f32   LayerNorm gammas, pre-broadcast lane-dense
    # be_ref   : (L, T, C)     f32   LayerNorm betas
    # wqkv_ref : (C, 3P) cdt / bqkv_ref (1, 3P) f32 : q/k/v Linear ∘ MHA in_proj
    # wof_ref  : (P, Opad) cdt / bof_ref (1, Opad) f32 : out_proj ∘ final_linear
    # o_ref    : (Bb, T, Opad)       lane-dense output slab
    Bb, T, cin = x_ref.shape
    C = wc_ref.shape[-1]
    P = wqkv_ref.shape[-1] // 3
    hd = P // num_heads
    BT = Bb * T
    f32 = jnp.float32
    dot = functools.partial(jnp.dot, preferred_element_type=f32)

    # time-within-item index of every flattened (batch*time) row
    t_idx = lax.broadcasted_iota(jnp.int32, (BT, 1), 0) % T

    def shift_time(a, d):
        # out[r] = a[r + d] within each length-T batch item, 0 outside
        # (realises the conv zero padding and blocks cross-item leakage).
        if d == 0:
            return a
        rolled = pltpu.roll(a, (-d) % BT, axis=0)          # XLU sublane rotate
        valid = (t_idx + d >= 0) & (t_idx + d < T)
        return jnp.where(valid, rolled, 0.0)

    def conv5(a, w_tap, bias):
        # a: (BT, Cin) f32; w_tap(k) -> (Cin, C) tap weight (already cdt).
        acc = dot(shift_time(a, -2).astype(cdt), w_tap(0))
        for k in range(1, 5):
            acc = acc + dot(shift_time(a, k - 2).astype(cdt), w_tap(k))
        return acc + bias                                   # (BT, C) f32

    def relu_ln_time(y, gamma, beta):
        # ReLU then LayerNorm over the *time* axis (PyTorch LayerNorm(hidden)
        # applied to the (B, hidden, T) conv output), biased var, eps=1e-5.
        y = jnp.maximum(y, 0.0).reshape(Bb, T, C)
        mean = jnp.mean(y, axis=1, keepdims=True)
        var = jnp.mean(jnp.square(y - mean), axis=1, keepdims=True)
        yn = (y - mean) * lax.rsqrt(var + 1e-5)
        return (yn * gamma[None] + beta[None]).reshape(BT, C)

    # ---- initial conv layer -------------------------------------------------
    x = x_ref[...].reshape(BT, cin).astype(f32)
    y = conv5(x, lambda k: w0_ref[k], bc_ref[0])
    a = relu_ln_time(y, g_ref[0], be_ref[0])

    # ---- residual blocks ----------------------------------------------------
    for blk in range(num_blocks):
        res = a

        def layer_body(l, a, blk=blk):
            lidx = blk * layers_per_block + l               # block-layer index
            y = conv5(a, lambda k: wc_ref[lidx * 5 + k], bc_ref[lidx + 1])
            return relu_ln_time(y, g_ref[lidx + 1], be_ref[lidx + 1])

        a = lax.fori_loop(0, layers_per_block, layer_body, a, unroll=True)
        a = a + res                                         # fused residual add

    # ---- attentive pooling + final linear -----------------------------------
    # wqkv already holds (q/k/v Linear) composed with the MHA in_proj, with the
    # 1/sqrt(hd) scale folded into the q columns; wof = final_linear ∘ out_proj.
    qkv = dot(a.astype(cdt), wqkv_ref[...]) + bqkv_ref[...]     # (BT, 3P) f32
    wof = wof_ref[...]
    bof = bof_ref[...]
    for b in range(Bb):                                     # attention per item
        y = None
        for h in range(num_heads):
            q = qkv[b * T:(b + 1) * T, h * hd:(h + 1) * hd]
            k = qkv[b * T:(b + 1) * T, P + h * hd:P + (h + 1) * hd]
            v = qkv[b * T:(b + 1) * T, 2 * P + h * hd:2 * P + (h + 1) * hd]
            s = lax.dot_general(q.astype(cdt), k.astype(cdt),
                                (((1,), (1,)), ((), ())),
                                preferred_element_type=f32)     # (T, T)
            s = s - jnp.max(s, axis=-1, keepdims=True)
            p = jnp.exp(s)
            p = p * pl.reciprocal(jnp.sum(p, axis=-1, keepdims=True),
                                  approx=True)
            ctx = dot(p.astype(cdt), v.astype(cdt))             # (T, hd) f32
            # fold out_proj@final_linear into the head loop (MXU accumulation)
            yh = dot(ctx.astype(cdt), wof[h * hd:(h + 1) * hd, :])
            y = yh if y is None else y + yh
        o_ref[b] = (y + bof).astype(o_ref.dtype)                # full-width store


# ----------------------------------------------------------------------------
# One-time parameter repacking (hoisted out of the per-forward path)
# ----------------------------------------------------------------------------
def prepare_params(params, num_heads, num_blocks, layers_per_block,
                   compute_dtype=jnp.bfloat16):
    hidden = params["initial"]["w"].shape[0]
    input_dim = params["initial"]["w"].shape[1]
    T = hidden  # LayerNorm(hidden) on the (B, hidden, T) conv output
    cdt = compute_dtype
    f32 = jnp.float32

    def conv_taps(w):      # (C_out, C_in, 5) -> (5, C_in, C_out)
        return jnp.transpose(w, (2, 1, 0))

    block_layers = [lyr for blk in params["blocks"] for lyr in blk]
    all_layers = [params["initial"]] + block_layers

    w0_conv = conv_taps(params["initial"]["w"]).astype(cdt)          # (5,cin,C)
    w_conv = jnp.concatenate([conv_taps(l["w"]) for l in block_layers],
                             axis=0).astype(cdt)                     # (NBL*5,C,C)
    b_conv = jnp.stack([l["b"].reshape(1, hidden)
                        for l in all_layers]).astype(f32)            # (L,1,C)
    # lane-dense pre-broadcast LN params (gamma/beta index the *time* axis)
    g_conv = jnp.stack([jnp.broadcast_to(l["g"].reshape(T, 1), (T, hidden))
                        for l in all_layers]).astype(f32)            # (L,T,C)
    beta_conv = jnp.stack([jnp.broadcast_to(l["beta"].reshape(T, 1), (T, hidden))
                           for l in all_layers]).astype(f32)         # (L,T,C)

    pool = params["pool"]
    P = pool["wq"].shape[0]
    hd = P // num_heads
    scale = 1.0 / math.sqrt(hd)
    wiq, wik, wiv = jnp.split(pool["in_w"], 3, axis=0)
    biq, bik, biv = jnp.split(pool["in_b"], 3, axis=0)
    # compose the Linear q/k/v with the MHA in_proj (fold attention scale into q)
    wq_eff = (wiq @ pool["wq"]).T * scale
    bq_eff = (wiq @ pool["bq"] + biq) * scale
    wk_eff = (wik @ pool["wk"]).T
    bk_eff = wik @ pool["bk"] + bik
    wv_eff = (wiv @ pool["wv"]).T
    bv_eff = wiv @ pool["bv"] + biv
    w_qkv = jnp.concatenate([wq_eff, wk_eff, wv_eff], axis=1).astype(cdt)
    b_qkv = jnp.concatenate([bq_eff, bk_eff, bv_eff]).reshape(1, 3 * P).astype(f32)

    # compose attention out_proj with final_linear, pad columns lane-dense (128)
    out_dim = int(pool["wf"].shape[0])
    opad = max(128, ((out_dim + 127) // 128) * 128)
    w_of = (pool["wf"] @ pool["wo"]).T                               # (P, O)
    b_of = (pool["wf"] @ pool["bo"] + pool["bf"]).reshape(1, -1)     # (1, O)
    w_of = jnp.pad(w_of, ((0, 0), (0, opad - out_dim))).astype(cdt)
    b_of = jnp.pad(b_of, ((0, 0), (0, opad - out_dim))).astype(f32)

    return dict(
        w0_conv=w0_conv, w_conv=w_conv, b_conv=b_conv,
        g_conv=g_conv, beta_conv=beta_conv,
        w_qkv=w_qkv, b_qkv=b_qkv, w_of=w_of, b_of=b_of,
        num_heads=num_heads, num_blocks=num_blocks,
        layers_per_block=layers_per_block, compute_dtype=cdt,
        input_dim=int(input_dim), hidden=int(hidden), pool_hidden=int(P),
        out_dim=out_dim, out_pad=int(opad),
    )


# ----------------------------------------------------------------------------
# Forward pass: one pallas_call
# ----------------------------------------------------------------------------
def _pick_batch_block(B, T):
    # Fold enough batch items into one block to push the matmul M dim to ~128+.
    bb = min(B, max(1, -(-128 // T)))
    while B % bb:
        bb -= 1
    return bb


def prosody_encoder(x, pp, batch_block=None):
    B, T, cin = x.shape
    C = pp["hidden"]
    P = pp["pool_hidden"]
    O = pp["out_dim"]
    Opad = pp["out_pad"]
    L = pp["b_conv"].shape[0]
    L5 = pp["w_conv"].shape[0]
    assert T == C, ("nn.LayerNorm(hidden_size) is applied to the (B, hidden, T)"
                    " conv output, so the module requires T == hidden_size")
    assert cin == pp["input_dim"]
    assert P % pp["num_heads"] == 0

    Bb = batch_block or _pick_batch_block(B, T)
    assert B % Bb == 0

    kernel = functools.partial(
        _prosody_fused_kernel, pp["num_blocks"], pp["layers_per_block"],
        pp["num_heads"], pp["compute_dtype"])

    out = pl.pallas_call(
        kernel,
        out_shape=jax.ShapeDtypeStruct((B, T, Opad), x.dtype),
        grid=(B // Bb,),
        in_specs=[
            pl.BlockSpec((Bb, T, cin), lambda i: (i, 0, 0)),   # x
            pl.BlockSpec((5, cin, C), lambda i: (0, 0, 0)),    # initial conv taps
            pl.BlockSpec((L5, C, C), lambda i: (0, 0, 0)),     # block conv taps
            pl.BlockSpec((L, 1, C), lambda i: (0, 0, 0)),      # conv biases
            pl.BlockSpec((L, T, C), lambda i: (0, 0, 0)),      # LN gammas
            pl.BlockSpec((L, T, C), lambda i: (0, 0, 0)),      # LN betas
            pl.BlockSpec((C, 3 * P), lambda i: (0, 0)),        # fused QKV weight
            pl.BlockSpec((1, 3 * P), lambda i: (0, 0)),        # fused QKV bias
            pl.BlockSpec((P, Opad), lambda i: (0, 0)),         # out_proj@final_linear
            pl.BlockSpec((1, Opad), lambda i: (0, 0)),         # fused output bias
        ],
        out_specs=pl.BlockSpec((Bb, T, Opad), lambda i: (i, 0, 0)),
        compiler_params=pltpu.CompilerParams(
            dimension_semantics=("parallel",)),   # shard batch blocks over TCs
        # At realistic C/T on v7x (64 MiB VMEM): single-buffer the constant-
        # index weight specs (pipeline_mode=pl.Buffered(1)) and set
        # vmem_limit_bytes explicitly.  Irrelevant at these toy sizes.
    )(x, pp["w0_conv"], pp["w_conv"], pp["b_conv"], pp["g_conv"],
      pp["beta_conv"], pp["w_qkv"], pp["b_qkv"], pp["w_of"], pp["b_of"])
    return out[..., :O]                                       # drop lane padding


# ----------------------------------------------------------------------------
# Deterministic PyTorch-layout parameter init (toy shapes)
# ----------------------------------------------------------------------------
def init_params(key, input_dim, hidden, n_blocks, n_layers, pool_hidden, out_dim):
    keys = iter(jax.random.split(key, 512))

    def nrm(shape, scale):
        return (scale * jax.random.normal(next(keys), shape)).astype(jnp.float32)

    def conv_layer(cin, cout):
        return dict(w=nrm((cout, cin, 5), 1.0 / math.sqrt(cin * 5)),
                    b=nrm((cout,), 0.02),
                    g=1.0 + nrm((cout,), 0.02),
                    beta=nrm((cout,), 0.02))

    sh = 1.0 / math.sqrt(hidden)
    sp = 1.0 / math.sqrt(pool_hidden)
    return dict(
        initial=conv_layer(input_dim, hidden),
        blocks=[[conv_layer(hidden, hidden) for _ in range(n_layers)]
                for _ in range(n_blocks)],
        pool=dict(
            wq=nrm((pool_hidden, hidden), sh), bq=nrm((pool_hidden,), 0.02),
            wk=nrm((pool_hidden, hidden), sh), bk=nrm((pool_hidden,), 0.02),
            wv=nrm((pool_hidden, hidden), sh), bv=nrm((pool_hidden,), 0.02),
            in_w=nrm((3 * pool_hidden, pool_hidden), sp),
            in_b=nrm((3 * pool_hidden,), 0.02),
            wo=nrm((pool_hidden, pool_hidden), sp), bo=nrm((pool_hidden,), 0.02),
            wf=nrm((out_dim, pool_hidden), sp), bf=nrm((out_dim,), 0.02),
        ),
    )


if __name__ == "__main__":
    # Small shapes consistent with the module.  T must equal HIDDEN because the
    # PyTorch LayerNorm(hidden_size) is applied to the (B, hidden, T) conv output.
    B = 2
    INPUT_DIM = 16
    HIDDEN = 32
    T = HIDDEN
    N_BLOCKS = 2
    N_LAYERS = 2
    POOL_HIDDEN = 64
    NUM_HEADS = 4
    OUT_DIM = 8

    key = jax.random.PRNGKey(0)
    k_x, k_p = jax.random.split(key)
    x = jax.random.normal(k_x, (B, T, INPUT_DIM), dtype=jnp.float32)
    params = init_params(k_p, INPUT_DIM, HIDDEN, N_BLOCKS, N_LAYERS,
                         POOL_HIDDEN, OUT_DIM)
    prepped = prepare_params(params, NUM_HEADS, N_BLOCKS, N_LAYERS)

    out = prosody_encoder(x, prepped)
    jax.block_until_ready(out)
    assert out.shape == (B, T, OUT_DIM) and out.dtype == jnp.float32
    print("KERNEL_OK")
</pallas_src>

<mosaic_0001>
module attributes {stable_mosaic.version = 11 : i64} {
  func.func @_prosody_fused_kernel(%arg0: i32, %arg1: memref<2x32x16xf32, #tpu.memory_space<vmem>>, %arg2: memref<5x16x32xbf16, #tpu.memory_space<vmem>>, %arg3: memref<20x32x32xbf16, #tpu.memory_space<vmem>>, %arg4: memref<5x1x32xf32, #tpu.memory_space<vmem>>, %arg5: memref<5x32x32xf32, #tpu.memory_space<vmem>>, %arg6: memref<5x32x32xf32, #tpu.memory_space<vmem>>, %arg7: memref<32x192xbf16, #tpu.memory_space<vmem>>, %arg8: memref<1x192xf32, #tpu.memory_space<vmem>>, %arg9: memref<64x128xbf16, #tpu.memory_space<vmem>>, %arg10: memref<1x128xf32, #tpu.memory_space<vmem>>, %arg11: memref<2x32x128xf32, #tpu.memory_space<vmem>>) attributes {dimension_semantics = [#tpu.dimension_semantics<parallel>], iteration_bounds = array<i64: 1>, scalar_prefetch = 0 : i64, scratch_operands = 0 : i64, tpu.core_type = #tpu.core_type<tc>, window_params = [{transform_indices = @transform_0, window_bounds = array<i64: 2, 32, 16>}, {pipeline_mode = #tpu.pipeline_mode<synchronous>, transform_indices = @transform_1, window_bounds = array<i64: 5, 16, 32>}, {pipeline_mode = #tpu.pipeline_mode<synchronous>, transform_indices = @transform_2, window_bounds = array<i64: 20, 32, 32>}, {pipeline_mode = #tpu.pipeline_mode<synchronous>, transform_indices = @transform_3, window_bounds = array<i64: 5, 1, 32>}, {pipeline_mode = #tpu.pipeline_mode<synchronous>, transform_indices = @transform_4, window_bounds = array<i64: 5, 32, 32>}, {pipeline_mode = #tpu.pipeline_mode<synchronous>, transform_indices = @transform_5, window_bounds = array<i64: 5, 32, 32>}, {pipeline_mode = #tpu.pipeline_mode<synchronous>, transform_indices = @transform_6, window_bounds = array<i64: 32, 192>}, {pipeline_mode = #tpu.pipeline_mode<synchronous>, transform_indices = @transform_7, window_bounds = array<i64: 1, 192>}, {pipeline_mode = #tpu.pipeline_mode<synchronous>, transform_indices = @transform_8, window_bounds = array<i64: 64, 128>}, {pipeline_mode = #tpu.pipeline_mode<synchronous>, transform_indices = @transform_9, window_bounds = array<i64: 1, 128>}, {transform_indices = @transform_10, window_bounds = array<i64: 2, 32, 128>}]} {
    %0 = tpu.iota {dimensions = array<i32: 0>} : vector<64x1xi32>
    %c32_i32 = arith.constant 32 : i32
    %c0_i32 = arith.constant 0 : i32
    %1 = arith.cmpi eq, %c32_i32, %c0_i32 : i32
    %c1_i32 = arith.constant 1 : i32
    %2 = arith.select %1, %c1_i32, %c32_i32 : i32
    %3 = vector.broadcast %2 : i32 to vector<64x1xi32>
    %4 = arith.remsi %0, %3 : vector<64x1xi32>
    %c0_i32_0 = arith.constant 0 : i32
    %5 = vector.broadcast %c0_i32_0 : i32 to vector<64x1xi32>
    %6 = arith.cmpi ne, %4, %5 : vector<64x1xi32>
    %c0_i32_1 = arith.constant 0 : i32
    %7 = vector.broadcast %c0_i32_1 : i32 to vector<64x1xi32>
    %8 = arith.cmpi slt, %4, %7 : vector<64x1xi32>
    %c0_i32_2 = arith.constant 0 : i32
    %9 = arith.cmpi slt, %2, %c0_i32_2 : i32
    %10 = vector.broadcast %9 : i1 to vector<64x1xi1>
    %11 = vector.broadcast %10 : vector<64x1xi1> to vector<64x1xi1>
    %12 = arith.xori %8, %11 : vector<64x1xi1>
    %13 = arith.andi %12, %6 : vector<64x1xi1>
    %14 = vector.broadcast %2 : i32 to vector<64x1xi32>
    %15 = arith.addi %4, %14 : vector<64x1xi32>
    %16 = arith.select %13, %15, %4 : vector<64x1xi1>, vector<64x1xi32>
    %c0 = arith.constant 0 : index
    %c0_3 = arith.constant 0 : index
    %c0_4 = arith.constant 0 : index
    %17 = vector.load %arg1[%c0, %c0_3, %c0_4] : memref<2x32x16xf32, #tpu.memory_space<vmem>>, vector<2x32x16xf32>
    %18 = vector.shape_cast %17 : vector<2x32x16xf32> to vector<64x16xf32>
    %c0_5 = arith.constant 0 : index
    %c0_6 = arith.constant 0 : index
    %c0_7 = arith.constant 0 : index
    %19 = vector.load %arg4[%c0_5, %c0_6, %c0_7] : memref<5x1x32xf32, #tpu.memory_space<vmem>>, vector<1x1x32xf32>
    %20 = vector.shape_cast %19 : vector<1x1x32xf32> to vector<1x32xf32>
    %c2_i32 = arith.constant 2 : i32
    %21 = tpu.dynamic_rotate %18 by %c2_i32 dim 0 : vector<64x16xf32>, i32 -> vector<64x16xf32>
    %c-2_i32 = arith.constant -2 : i32
    %22 = vector.broadcast %c-2_i32 : i32 to vector<64x1xi32>
    %23 = arith.addi %16, %22 : vector<64x1xi32>
    %c0_i32_8 = arith.constant 0 : i32
    %24 = vector.broadcast %c0_i32_8 : i32 to vector<64x1xi32>
    %25 = arith.cmpi sge, %23, %24 : vector<64x1xi32>
    %c-2_i32_9 = arith.constant -2 : i32
    %26 = vector.broadcast %c-2_i32_9 : i32 to vector<64x1xi32>
    %27 = arith.addi %16, %26 : vector<64x1xi32>
    %c32_i32_10 = arith.constant 32 : i32
    %28 = vector.broadcast %c32_i32_10 : i32 to vector<64x1xi32>
    %29 = arith.cmpi slt, %27, %28 : vector<64x1xi32>
    %30 = arith.andi %25, %29 : vector<64x1xi1>
    %cst = arith.constant 0.000000e+00 : f32
    %31 = vector.shape_cast %30 : vector<64x1xi1> to vector<64x1xi1>
    %32 = vector.broadcast %31 : vector<64x1xi1> to vector<64x16xi1>
    %33 = vector.broadcast %cst : f32 to vector<64x16xf32>
    %34 = arith.select %32, %21, %33 : vector<64x16xi1>, vector<64x16xf32>
    %35 = arith.truncf %34 : vector<64x16xf32> to vector<64x16xbf16>
    %c0_11 = arith.constant 0 : index
    %c0_12 = arith.constant 0 : index
    %c0_13 = arith.constant 0 : index
    %36 = vector.load %arg2[%c0_11, %c0_12, %c0_13] : memref<5x16x32xbf16, #tpu.memory_space<vmem>>, vector<1x16x32xbf16>
    %37 = vector.shape_cast %36 : vector<1x16x32xbf16> to vector<16x32xbf16>
    %cst_14 = arith.constant dense<0.000000e+00> : vector<64x32xf32>
    %38 = tpu.matmul %35, %37, %cst_14 {dimension_numbers = #tpu.dot_dimension_numbers<[1], [0], [0], [1], [0, 0, 1, 1], [], []>} : vector<64x16xbf16>, vector<16x32xbf16>, vector<64x32xf32> -> vector<64x32xf32>
    %c1_i32_15 = arith.constant 1 : i32
    %39 = tpu.dynamic_rotate %18 by %c1_i32_15 dim 0 : vector<64x16xf32>, i32 -> vector<64x16xf32>
    %c-1_i32 = arith.constant -1 : i32
    %40 = vector.broadcast %c-1_i32 : i32 to vector<64x1xi32>
    %41 = arith.addi %16, %40 : vector<64x1xi32>
    %c0_i32_16 = arith.constant 0 : i32
    %42 = vector.broadcast %c0_i32_16 : i32 to vector<64x1xi32>
    %43 = arith.cmpi sge, %41, %42 : vector<64x1xi32>
    %c-1_i32_17 = arith.constant -1 : i32
    %44 = vector.broadcast %c-1_i32_17 : i32 to vector<64x1xi32>
    %45 = arith.addi %16, %44 : vector<64x1xi32>
    %c32_i32_18 = arith.constant 32 : i32
    %46 = vector.broadcast %c32_i32_18 : i32 to vector<64x1xi32>
    %47 = arith.cmpi slt, %45, %46 : vector<64x1xi32>
    %48 = arith.andi %43, %47 : vector<64x1xi1>
    %cst_19 = arith.constant 0.000000e+00 : f32
    %49 = vector.shape_cast %48 : vector<64x1xi1> to vector<64x1xi1>
    %50 = vector.broadcast %49 : vector<64x1xi1> to vector<64x16xi1>
    %51 = vector.broadcast %cst_19 : f32 to vector<64x16xf32>
    %52 = arith.select %50, %39, %51 : vector<64x16xi1>, vector<64x16xf32>
    %53 = arith.truncf %52 : vector<64x16xf32> to vector<64x16xbf16>
    %c1 = arith.constant 1 : index
    %c0_20 = arith.constant 0 : index
    %c0_21 = arith.constant 0 : index
    %54 = vector.load %arg2[%c1, %c0_20, %c0_21] : memref<5x16x32xbf16, #tpu.memory_space<vmem>>, vector<1x16x32xbf16>
    %55 = vector.shape_cast %54 : vector<1x16x32xbf16> to vector<16x32xbf16>
    %cst_22 = arith.constant dense<0.000000e+00> : vector<64x32xf32>
    %56 = tpu.matmul %53, %55, %cst_22 {dimension_numbers = #tpu.dot_dimension_numbers<[1], [0], [0], [1], [0, 0, 1, 1], [], []>} : vector<64x16xbf16>, vector<16x32xbf16>, vector<64x32xf32> -> vector<64x32xf32>
    %57 = arith.addf %38, %56 : vector<64x32xf32>
    %58 = arith.truncf %18 : vector<64x16xf32> to vector<64x16xbf16>
    %c2 = arith.constant 2 : index
    %c0_23 = arith.constant 0 : index
    %c0_24 = arith.constant 0 : index
    %59 = vector.load %arg2[%c2, %c0_23, %c0_24] : memref<5x16x32xbf16, #tpu.memory_space<vmem>>, vector<1x16x32xbf16>
    %60 = vector.shape_cast %59 : vector<1x16x32xbf16> to vector<16x32xbf16>
    %cst_25 = arith.constant dense<0.000000e+00> : vector<64x32xf32>
    %61 = tpu.matmul %58, %60, %cst_25 {dimension_numbers = #tpu.dot_dimension_numbers<[1], [0], [0], [1], [0, 0, 1, 1], [], []>} : vector<64x16xbf16>, vector<16x32xbf16>, vector<64x32xf32> -> vector<64x32xf32>
    %62 = arith.addf %57, %61 : vector<64x32xf32>
    %c63_i32 = arith.constant 63 : i32
    %63 = tpu.dynamic_rotate %18 by %c63_i32 dim 0 : vector<64x16xf32>, i32 -> vector<64x16xf32>
    %c1_i32_26 = arith.constant 1 : i32
    %64 = vector.broadcast %c1_i32_26 : i32 to vector<64x1xi32>
    %65 = arith.addi %16, %64 : vector<64x1xi32>
    %c0_i32_27 = arith.constant 0 : i32
    %66 = vector.broadcast %c0_i32_27 : i32 to vector<64x1xi32>
    %67 = arith.cmpi sge, %65, %66 : vector<64x1xi32>
    %c1_i32_28 = arith.constant 1 : i32
    %68 = vector.broadcast %c1_i32_28 : i32 to vector<64x1xi32>
    %69 = arith.addi %16, %68 : vector<64x1xi32>
    %c32_i32_29 = arith.constant 32 : i32
    %70 = vector.broadcast %c32_i32_29 : i32 to vector<64x1xi32>
    %71 = arith.cmpi slt, %69, %70 : vector<64x1xi32>
    %72 = arith.andi %67, %71 : vector<64x1xi1>
    %cst_30 = arith.constant 0.000000e+00 : f32
    %73 = vector.shape_cast %72 : vector<64x1xi1> to vector<64x1xi1>
    %74 = vector.broadcast %73 : vector<64x1xi1> to vector<64x16xi1>
    %75 = vector.broadcast %cst_30 : f32 to vector<64x16xf32>
    %76 = arith.select %74, %63, %75 : vector<64x16xi1>, vector<64x16xf32>
    %77 = arith.truncf %76 : vector<64x16xf32> to vector<64x16xbf16>
    %c3 = arith.constant 3 : index
    %c0_31 = arith.constant 0 : index
    %c0_32 = arith.constant 0 : index
    %78 = vector.load %arg2[%c3, %c0_31, %c0_32] : memref<5x16x32xbf16, #tpu.memory_space<vmem>>, vector<1x16x32xbf16>
    %79 = vector.shape_cast %78 : vector<1x16x32xbf16> to vector<16x32xbf16>
    %cst_33 = arith.constant dense<0.000000e+00> : vector<64x32xf32>
    %80 = tpu.matmul %77, %79, %cst_33 {dimension_numbers = #tpu.dot_dimension_numbers<[1], [0], [0], [1], [0, 0, 1, 1], [], []>} : vector<64x16xbf16>, vector<16x32xbf16>, vector<64x32xf32> -> vector<64x32xf32>
    %81 = arith.addf %62, %80 : vector<64x32xf32>
    %c62_i32 = arith.constant 62 : i32
    %82 = tpu.dynamic_rotate %18 by %c62_i32 dim 0 : vector<64x16xf32>, i32 -> vector<64x16xf32>
    %c2_i32_34 = arith.constant 2 : i32
    %83 = vector.broadcast %c2_i32_34 : i32 to vector<64x1xi32>
    %84 = arith.addi %16, %83 : vector<64x1xi32>
    %c0_i32_35 = arith.constant 0 : i32
    %85 = vector.broadcast %c0_i32_35 : i32 to vector<64x1xi32>
    %86 = arith.cmpi sge, %84, %85 : vector<64x1xi32>
    %c2_i32_36 = arith.constant 2 : i32
    %87 = vector.broadcast %c2_i32_36 : i32 to vector<64x1xi32>
    %88 = arith.addi %16, %87 : vector<64x1xi32>
    %c32_i32_37 = arith.constant 32 : i32
    %89 = vector.broadcast %c32_i32_37 : i32 to vector<64x1xi32>
    %90 = arith.cmpi slt, %88, %89 : vector<64x1xi32>
    %91 = arith.andi %86, %90 : vector<64x1xi1>
    %cst_38 = arith.constant 0.000000e+00 : f32
    %92 = vector.shape_cast %91 : vector<64x1xi1> to vector<64x1xi1>
    %93 = vector.broadcast %92 : vector<64x1xi1> to vector<64x16xi1>
    %94 = vector.broadcast %cst_38 : f32 to vector<64x16xf32>
    %95 = arith.select %93, %82, %94 : vector<64x16xi1>, vector<64x16xf32>
    %96 = arith.truncf %95 : vector<64x16xf32> to vector<64x16xbf16>
    %c4 = arith.constant 4 : index
    %c0_39 = arith.constant 0 : index
    %c0_40 = arith.constant 0 : index
    %97 = vector.load %arg2[%c4, %c0_39, %c0_40] : memref<5x16x32xbf16, #tpu.memory_space<vmem>>, vector<1x16x32xbf16>
    %98 = vector.shape_cast %97 : vector<1x16x32xbf16> to vector<16x32xbf16>
    %cst_41 = arith.constant dense<0.000000e+00> : vector<64x32xf32>
    %99 = tpu.matmul %96, %98, %cst_41 {dimension_numbers = #tpu.dot_dimension_numbers<[1], [0], [0], [1], [0, 0, 1, 1], [], []>} : vector<64x16xbf16>, vector<16x32xbf16>, vector<64x32xf32> -> vector<64x32xf32>
    %100 = arith.addf %81, %99 : vector<64x32xf32>
    %101 = vector.broadcast %20 : vector<1x32xf32> to vector<64x32xf32>
    %102 = arith.addf %100, %101 : vector<64x32xf32>
    %c0_42 = arith.constant 0 : index
    %c0_43 = arith.constant 0 : index
    %c0_44 = arith.constant 0 : index
    %103 = vector.load %arg5[%c0_42, %c0_43, %c0_44] : memref<5x32x32xf32, #tpu.memory_space<vmem>>, vector<1x32x32xf32>
    %104 = vector.shape_cast %103 : vector<1x32x32xf32> to vector<32x32xf32>
    %c0_45 = arith.constant 0 : index
    %c0_46 = arith.constant 0 : index
    %c0_47 = arith.constant 0 : index
    %105 = vector.load %arg6[%c0_45, %c0_46, %c0_47] : memref<5x32x32xf32, #tpu.memory_space<vmem>>, vector<1x32x32xf32>
    %106 = vector.shape_cast %105 : vector<1x32x32xf32> to vector<32x32xf32>
    %cst_48 = arith.constant 0.000000e+00 : f32
    %107 = vector.broadcast %cst_48 : f32 to vector<64x32xf32>
    %108 = arith.maximumf %102, %107 : vector<64x32xf32>
    %109 = vector.shape_cast %108 : vector<64x32xf32> to vector<2x32x32xf32>
    %cst_49 = arith.constant dense<0.000000e+00> : vector<2x32xf32>
    %110 = vector.multi_reduction <add>, %109, %cst_49 [1] : vector<2x32x32xf32> to vector<2x32xf32>
    %111 = vector.shape_cast %110 : vector<2x32xf32> to vector<2x1x32xf32>
    %cst_50 = arith.constant 3.200000e+01 : f32
    %112 = vector.broadcast %cst_50 : f32 to vector<2x1x32xf32>
    %113 = arith.divf %111, %112 : vector<2x1x32xf32>
    %114 = vector.broadcast %113 : vector<2x1x32xf32> to vector<2x32x32xf32>
    %115 = arith.subf %109, %114 : vector<2x32x32xf32>
    %116 = arith.mulf %115, %115 : vector<2x32x32xf32>
    %cst_51 = arith.constant dense<0.000000e+00> : vector<2x32xf32>
    %117 = vector.multi_reduction <add>, %116, %cst_51 [1] : vector<2x32x32xf32> to vector<2x32xf32>
    %118 = vector.shape_cast %117 : vector<2x32xf32> to vector<2x1x32xf32>
    %cst_52 = arith.constant 3.200000e+01 : f32
    %119 = vector.broadcast %cst_52 : f32 to vector<2x1x32xf32>
    %120 = arith.divf %118, %119 : vector<2x1x32xf32>
    %121 = vector.broadcast %113 : vector<2x1x32xf32> to vector<2x32x32xf32>
    %122 = arith.subf %109, %121 : vector<2x32x32xf32>
    %cst_53 = arith.constant 9.99999974E-6 : f32
    %123 = vector.broadcast %cst_53 : f32 to vector<2x1x32xf32>
    %124 = arith.addf %120, %123 : vector<2x1x32xf32>
    %125 = math.rsqrt %124 : vector<2x1x32xf32>
    %126 = vector.broadcast %125 : vector<2x1x32xf32> to vector<2x32x32xf32>
    %127 = arith.mulf %122, %126 : vector<2x32x32xf32>
    %128 = vector.shape_cast %104 : vector<32x32xf32> to vector<1x32x32xf32>
    %129 = vector.broadcast %128 : vector<1x32x32xf32> to vector<2x32x32xf32>
    %130 = arith.mulf %127, %129 : vector<2x32x32xf32>
    %131 = vector.shape_cast %106 : vector<32x32xf32> to vector<1x32x32xf32>
    %132 = vector.broadcast %131 : vector<1x32x32xf32> to vector<2x32x32xf32>
    %133 = arith.addf %130, %132 : vector<2x32x32xf32>
    %134 = vector.shape_cast %133 : vector<2x32x32xf32> to vector<64x32xf32>
    %c0_i32_54 = arith.constant 0 : i32
    %c0_i32_55 = arith.constant 0 : i32
    %135 = arith.addi %c0_i32_55, %c0_i32_54 : i32
    %c1_i32_56 = arith.constant 1 : i32
    %136 = arith.addi %135, %c1_i32_56 : i32
    %137 = arith.index_cast %136 : i32 to index
    %c0_57 = arith.constant 0 : index
    %c0_58 = arith.constant 0 : index
    %138 = vector.load %arg4[%137, %c0_57, %c0_58] : memref<5x1x32xf32, #tpu.memory_space<vmem>>, vector<1x1x32xf32>
    %139 = vector.shape_cast %138 : vector<1x1x32xf32> to vector<1x32xf32>
    %c2_i32_59 = arith.constant 2 : i32
    %140 = tpu.dynamic_rotate %134 by %c2_i32_59 dim 0 : vector<64x32xf32>, i32 -> vector<64x32xf32>
    %c-2_i32_60 = arith.constant -2 : i32
    %141 = vector.broadcast %c-2_i32_60 : i32 to vector<64x1xi32>
    %142 = arith.addi %16, %141 : vector<64x1xi32>
    %c0_i32_61 = arith.constant 0 : i32
    %143 = vector.broadcast %c0_i32_61 : i32 to vector<64x1xi32>
    %144 = arith.cmpi sge, %142, %143 : vector<64x1xi32>
    %c-2_i32_62 = arith.constant -2 : i32
    %145 = vector.broadcast %c-2_i32_62 : i32 to vector<64x1xi32>
    %146 = arith.addi %16, %145 : vector<64x1xi32>
    %c32_i32_63 = arith.constant 32 : i32
    %147 = vector.broadcast %c32_i32_63 : i32 to vector<64x1xi32>
    %148 = arith.cmpi slt, %146, %147 : vector<64x1xi32>
    %149 = arith.andi %144, %148 : vector<64x1xi1>
    %cst_64 = arith.constant 0.000000e+00 : f32
    %150 = vector.shape_cast %149 : vector<64x1xi1> to vector<64x1xi1>
    %151 = vector.broadcast %150 : vector<64x1xi1> to vector<64x32xi1>
    %152 = vector.broadcast %cst_64 : f32 to vector<64x32xf32>
    %153 = arith.select %151, %140, %152 : vector<64x32xi1>, vector<64x32xf32>
    %154 = arith.truncf %153 : vector<64x32xf32> to vector<64x32xbf16>
    %c5_i32 = arith.constant 5 : i32
    %155 = arith.muli %135, %c5_i32 : i32
    %c0_i32_65 = arith.constant 0 : i32
    %156 = arith.addi %155, %c0_i32_65 : i32
    %157 = arith.index_cast %156 : i32 to index
    %c0_66 = arith.constant 0 : index
    %c0_67 = arith.constant 0 : index
    %158 = vector.load %arg3[%157, %c0_66, %c0_67] : memref<20x32x32xbf16, #tpu.memory_space<vmem>>, vector<1x32x32xbf16>
    %159 = vector.shape_cast %158 : vector<1x32x32xbf16> to vector<32x32xbf16>
    %cst_68 = arith.constant dense<0.000000e+00> : vector<64x32xf32>
    %160 = tpu.matmul %154, %159, %cst_68 {dimension_numbers = #tpu.dot_dimension_numbers<[1], [0], [0], [1], [0, 0, 1, 1], [], []>} : vector<64x32xbf16>, vector<32x32xbf16>, vector<64x32xf32> -> vector<64x32xf32>
    %c1_i32_69 = arith.constant 1 : i32
    %161 = tpu.dynamic_rotate %134 by %c1_i32_69 dim 0 : vector<64x32xf32>, i32 -> vector<64x32xf32>
    %c-1_i32_70 = arith.constant -1 : i32
    %162 = vector.broadcast %c-1_i32_70 : i32 to vector<64x1xi32>
    %163 = arith.addi %16, %162 : vector<64x1xi32>
    %c0_i32_71 = arith.constant 0 : i32
    %164 = vector.broadcast %c0_i32_71 : i32 to vector<64x1xi32>
    %165 = arith.cmpi sge, %163, %164 : vector<64x1xi32>
    %c-1_i32_72 = arith.constant -1 : i32
    %166 = vector.broadcast %c-1_i32_72 : i32 to vector<64x1xi32>
    %167 = arith.addi %16, %166 : vector<64x1xi32>
    %c32_i32_73 = arith.constant 32 : i32
    %168 = vector.broadcast %c32_i32_73 : i32 to vector<64x1xi32>
    %169 = arith.cmpi slt, %167, %168 : vector<64x1xi32>
    %170 = arith.andi %165, %169 : vector<64x1xi1>
    %cst_74 = arith.constant 0.000000e+00 : f32
    %171 = vector.shape_cast %170 : vector<64x1xi1> to vector<64x1xi1>
    %172 = vector.broadcast %171 : vector<64x1xi1> to vector<64x32xi1>
    %173 = vector.broadcast %cst_74 : f32 to vector<64x32xf32>
    %174 = arith.select %172, %161, %173 : vector<64x32xi1>, vector<64x32xf32>
    %175 = arith.truncf %174 : vector<64x32xf32> to vector<64x32xbf16>
    %c5_i32_75 = arith.constant 5 : i32
    %176 = arith.muli %135, %c5_i32_75 : i32
    %c1_i32_76 = arith.constant 1 : i32
    %177 = arith.addi %176, %c1_i32_76 : i32
    %178 = arith.index_cast %177 : i32 to index
    %c0_77 = arith.constant 0 : index
    %c0_78 = arith.constant 0 : index
    %179 = vector.load %arg3[%178, %c0_77, %c0_78] : memref<20x32x32xbf16, #tpu.memory_space<vmem>>, vector<1x32x32xbf16>
    %180 = vector.shape_cast %179 : vector<1x32x32xbf16> to vector<32x32xbf16>
    %cst_79 = arith.constant dense<0.000000e+00> : vector<64x32xf32>
    %181 = tpu.matmul %175, %180, %cst_79 {dimension_numbers = #tpu.dot_dimension_numbers<[1], [0], [0], [1], [0, 0, 1, 1], [], []>} : vector<64x32xbf16>, vector<32x32xbf16>, vector<64x32xf32> -> vector<64x32xf32>
    %182 = arith.addf %160, %181 : vector<64x32xf32>
    %183 = arith.truncf %134 : vector<64x32xf32> to vector<64x32xbf16>
    %c5_i32_80 = arith.constant 5 : i32
    %184 = arith.muli %135, %c5_i32_80 : i32
    %c2_i32_81 = arith.constant 2 : i32
    %185 = arith.addi %184, %c2_i32_81 : i32
    %186 = arith.index_cast %185 : i32 to index
    %c0_82 = arith.constant 0 : index
    %c0_83 = arith.constant 0 : index
    %187 = vector.load %arg3[%186, %c0_82, %c0_83] : memref<20x32x32xbf16, #tpu.memory_space<vmem>>, vector<1x32x32xbf16>
    %188 = vector.shape_cast %187 : vector<1x32x32xbf16> to vector<32x32xbf16>
    %cst_84 = arith.constant dense<0.000000e+00> : vector<64x32xf32>
    %189 = tpu.matmul %183, %188, %cst_84 {dimension_numbers = #tpu.dot_dimension_numbers<[1], [0], [0], [1], [0, 0, 1, 1], [], []>} : vector<64x32xbf16>, vector<32x32xbf16>, vector<64x32xf32> -> vector<64x32xf32>
    %190 = arith.addf %182, %189 : vector<64x32xf32>
    %c63_i32_85 = arith.constant 63 : i32
    %191 = tpu.dynamic_rotate %134 by %c63_i32_85 dim 0 : vector<64x32xf32>, i32 -> vector<64x32xf32>
    %c1_i32_86 = arith.constant 1 : i32
    %192 = vector.broadcast %c1_i32_86 : i32 to vector<64x1xi32>
    %193 = arith.addi %16, %192 : vector<64x1xi32>
    %c0_i32_87 = arith.constant 0 : i32
    %194 = vector.broadcast %c0_i32_87 : i32 to vector<64x1xi32>
    %195 = arith.cmpi sge, %193, %194 : vector<64x1xi32>
    %c1_i32_88 = arith.constant 1 : i32
    %196 = vector.broadcast %c1_i32_88 : i32 to vector<64x1xi32>
    %197 = arith.addi %16, %196 : vector<64x1xi32>
    %c32_i32_89 = arith.constant 32 : i32
    %198 = vector.broadcast %c32_i32_89 : i32 to vector<64x1xi32>
    %199 = arith.cmpi slt, %197, %198 : vector<64x1xi32>
    %200 = arith.andi %195, %199 : vector<64x1xi1>
    %cst_90 = arith.constant 0.000000e+00 : f32
    %201 = vector.shape_cast %200 : vector<64x1xi1> to vector<64x1xi1>
    %202 = vector.broadcast %201 : vector<64x1xi1> to vector<64x32xi1>
    %203 = vector.broadcast %cst_90 : f32 to vector<64x32xf32>
    %204 = arith.select %202, %191, %203 : vector<64x32xi1>, vector<64x32xf32>
    %205 = arith.truncf %204 : vector<64x32xf32> to vector<64x32xbf16>
    %c5_i32_91 = arith.constant 5 : i32
    %206 = arith.muli %135, %c5_i32_91 : i32
    %c3_i32 = arith.constant 3 : i32
    %207 = arith.addi %206, %c3_i32 : i32
    %208 = arith.index_cast %207 : i32 to index
    %c0_92 = arith.constant 0 : index
    %c0_93 = arith.constant 0 : index
    %209 = vector.load %arg3[%208, %c0_92, %c0_93] : memref<20x32x32xbf16, #tpu.memory_space<vmem>>, vector<1x32x32xbf16>
    %210 = vector.shape_cast %209 : vector<1x32x32xbf16> to vector<32x32xbf16>
    %cst_94 = arith.constant dense<0.000000e+00> : vector<64x32xf32>
    %211 = tpu.matmul %205, %210, %cst_94 {dimension_numbers = #tpu.dot_dimension_numbers<[1], [0], [0], [1], [0, 0, 1, 1], [], []>} : vector<64x32xbf16>, vector<32x32xbf16>, vector<64x32xf32> -> vector<64x32xf32>
    %212 = arith.addf %190, %211 : vector<64x32xf32>
    %c62_i32_95 = arith.constant 62 : i32
    %213 = tpu.dynamic_rotate %134 by %c62_i32_95 dim 0 : vector<64x32xf32>, i32 -> vector<64x32xf32>
    %c2_i32_96 = arith.constant 2 : i32
    %214 = vector.broadcast %c2_i32_96 : i32 to vector<64x1xi32>
    %215 = arith.addi %16, %214 : vector<64x1xi32>
    %c0_i32_97 = arith.constant 0 : i32
    %216 = vector.broadcast %c0_i32_97 : i32 to vector<64x1xi32>
    %217 = arith.cmpi sge, %215, %216 : vector<64x1xi32>
    %c2_i32_98 = arith.constant 2 : i32
    %218 = vector.broadcast %c2_i32_98 : i32 to vector<64x1xi32>
    %219 = arith.addi %16, %218 : vector<64x1xi32>
    %c32_i32_99 = arith.constant 32 : i32
    %220 = vector.broadcast %c32_i32_99 : i32 to vector<64x1xi32>
    %221 = arith.cmpi slt, %219, %220 : vector<64x1xi32>
    %222 = arith.andi %217, %221 : vector<64x1xi1>
    %cst_100 = arith.constant 0.000000e+00 : f32
    %223 = vector.shape_cast %222 : vector<64x1xi1> to vector<64x1xi1>
    %224 = vector.broadcast %223 : vector<64x1xi1> to vector<64x32xi1>
    %225 = vector.broadcast %cst_100 : f32 to vector<64x32xf32>
    %226 = arith.select %224, %213, %225 : vector<64x32xi1>, vector<64x32xf32>
    %227 = arith.truncf %226 : vector<64x32xf32> to vector<64x32xbf16>
    %c5_i32_101 = arith.constant 5 : i32
    %228 = arith.muli %135, %c5_i32_101 : i32
    %c4_i32 = arith.constant 4 : i32
    %229 = arith.addi %228, %c4_i32 : i32
    %230 = arith.index_cast %229 : i32 to index
    %c0_102 = arith.constant 0 : index
    %c0_103 = arith.constant 0 : index
    %231 = vector.load %arg3[%230, %c0_102, %c0_103] : memref<20x32x32xbf16, #tpu.memory_space<vmem>>, vector<1x32x32xbf16>
    %232 = vector.shape_cast %231 : vector<1x32x32xbf16> to vector<32x32xbf16>
    %cst_104 = arith.constant dense<0.000000e+00> : vector<64x32xf32>
    %233 = tpu.matmul %227, %232, %cst_104 {dimension_numbers = #tpu.dot_dimension_numbers<[1], [0], [0], [1], [0, 0, 1, 1], [], []>} : vector<64x32xbf16>, vector<32x32xbf16>, vector<64x32xf32> -> vector<64x32xf32>
    %234 = arith.addf %212, %233 : vector<64x32xf32>
    %235 = vector.broadcast %139 : vector<1x32xf32> to vector<64x32xf32>
    %236 = arith.addf %234, %235 : vector<64x32xf32>
    %c1_i32_105 = arith.constant 1 : i32
    %237 = arith.addi %135, %c1_i32_105 : i32
    %238 = arith.index_cast %237 : i32 to index
    %c0_106 = arith.constant 0 : index
    %c0_107 = arith.constant 0 : index
    %239 = vector.load %arg5[%238, %c0_106, %c0_107] : memref<5x32x32xf32, #tpu.memory_space<vmem>>, vector<1x32x32xf32>
    %240 = vector.shape_cast %239 : vector<1x32x32xf32> to vector<32x32xf32>
    %c1_i32_108 = arith.constant 1 : i32
    %241 = arith.addi %135, %c1_i32_108 : i32
    %242 = arith.index_cast %241 : i32 to index
    %c0_109 = arith.constant 0 : index
    %c0_110 = arith.constant 0 : index
    %243 = vector.load %arg6[%242, %c0_109, %c0_110] : memref<5x32x32xf32, #tpu.memory_space<vmem>>, vector<1x32x32xf32>
    %244 = vector.shape_cast %243 : vector<1x32x32xf32> to vector<32x32xf32>
    %cst_111 = arith.constant 0.000000e+00 : f32
    %245 = vector.broadcast %cst_111 : f32 to vector<64x32xf32>
    %246 = arith.maximumf %236, %245 : vector<64x32xf32>
    %247 = vector.shape_cast %246 : vector<64x32xf32> to vector<2x32x32xf32>
    %cst_112 = arith.constant dense<0.000000e+00> : vector<2x32xf32>
    %248 = vector.multi_reduction <add>, %247, %cst_112 [1] : vector<2x32x32xf32> to vector<2x32xf32>
    %249 = vector.shape_cast %248 : vector<2x32xf32> to vector<2x1x32xf32>
    %cst_113 = arith.constant 3.200000e+01 : f32
    %250 = vector.broadcast %cst_113 : f32 to vector<2x1x32xf32>
    %251 = arith.divf %249, %250 : vector<2x1x32xf32>
    %252 = vector.broadcast %251 : vector<2x1x32xf32> to vector<2x32x32xf32>
    %253 = arith.subf %247, %252 : vector<2x32x32xf32>
    %254 = arith.mulf %253, %253 : vector<2x32x32xf32>
    %cst_114 = arith.constant dense<0.000000e+00> : vector<2x32xf32>
    %255 = vector.multi_reduction <add>, %254, %cst_114 [1] : vector<2x32x32xf32> to vector<2x32xf32>
    %256 = vector.shape_cast %255 : vector<2x32xf32> to vector<2x1x32xf32>
    %cst_115 = arith.constant 3.200000e+01 : f32
    %257 = vector.broadcast %cst_115 : f32 to vector<2x1x32xf32>
    %258 = arith.divf %256, %257 : vector<2x1x32xf32>
    %259 = vector.broadcast %251 : vector<2x1x32xf32> to vector<2x32x32xf32>
    %260 = arith.subf %247, %259 : vector<2x32x32xf32>
    %cst_116 = arith.constant 9.99999974E-6 : f32
    %261 = vector.broadcast %cst_116 : f32 to vector<2x1x32xf32>
    %262 = arith.addf %258, %261 : vector<2x1x32xf32>
    %263 = math.rsqrt %262 : vector<2x1x32xf32>
    %264 = vector.broadcast %263 : vector<2x1x32xf32> to vector<2x32x32xf32>
    %265 = arith.mulf %260, %264 : vector<2x32x32xf32>
    %266 = vector.shape_cast %240 : vector<32x32xf32> to vector<1x32x32xf32>
    %267 = vector.broadcast %266 : vector<1x32x32xf32> to vector<2x32x32xf32>
    %268 = arith.mulf %265, %267 : vector<2x32x32xf32>
    %269 = vector.shape_cast %244 : vector<32x32xf32> to vector<1x32x32xf32>
    %270 = vector.broadcast %269 : vector<1x32x32xf32> to vector<2x32x32xf32>
    %271 = arith.addf %268, %270 : vector<2x32x32xf32>
    %272 = vector.shape_cast %271 : vector<2x32x32xf32> to vector<64x32xf32>
    %c1_i32_117 = arith.constant 1 : i32
    %c0_i32_118 = arith.constant 0 : i32
    %273 = arith.addi %c0_i32_118, %c1_i32_117 : i32
    %c1_i32_119 = arith.constant 1 : i32
    %274 = arith.addi %273, %c1_i32_119 : i32
    %275 = arith.index_cast %274 : i32 to index
    %c0_120 = arith.constant 0 : index
    %c0_121 = arith.constant 0 : index
    %276 = vector.load %arg4[%275, %c0_120, %c0_121] : memref<5x1x32xf32, #tpu.memory_space<vmem>>, vector<1x1x32xf32>
    %277 = vector.shape_cast %276 : vector<1x1x32xf32> to vector<1x32xf32>
    %c2_i32_122 = arith.constant 2 : i32
    %278 = tpu.dynamic_rotate %272 by %c2_i32_122 dim 0 : vector<64x32xf32>, i32 -> vector<64x32xf32>
    %c-2_i32_123 = arith.constant -2 : i32
    %279 = vector.broadcast %c-2_i32_123 : i32 to vector<64x1xi32>
    %280 = arith.addi %16, %279 : vector<64x1xi32>
    %c0_i32_124 = arith.constant 0 : i32
    %281 = vector.broadcast %c0_i32_124 : i32 to vector<64x1xi32>
    %282 = arith.cmpi sge, %280, %281 : vector<64x1xi32>
    %c-2_i32_125 = arith.constant -2 : i32
    %283 = vector.broadcast %c-2_i32_125 : i32 to vector<64x1xi32>
    %284 = arith.addi %16, %283 : vector<64x1xi32>
    %c32_i32_126 = arith.constant 32 : i32
    %285 = vector.broadcast %c32_i32_126 : i32 to vector<64x1xi32>
    %286 = arith.cmpi slt, %284, %285 : vector<64x1xi32>
    %287 = arith.andi %282, %286 : vector<64x1xi1>
    %cst_127 = arith.constant 0.000000e+00 : f32
    %288 = vector.shape_cast %287 : vector<64x1xi1> to vector<64x1xi1>
    %289 = vector.broadcast %288 : vector<64x1xi1> to vector<64x32xi1>
    %290 = vector.broadcast %cst_127 : f32 to vector<64x32xf32>
    %291 = arith.select %289, %278, %290 : vector<64x32xi1>, vector<64x32xf32>
    %292 = arith.truncf %291 : vector<64x32xf32> to vector<64x32xbf16>
    %c5_i32_128 = arith.constant 5 : i32
    %293 = arith.muli %273, %c5_i32_128 : i32
    %c0_i32_129 = arith.constant 0 : i32
    %294 = arith.addi %293, %c0_i32_129 : i32
    %295 = arith.index_cast %294 : i32 to index
    %c0_130 = arith.constant 0 : index
    %c0_131 = arith.constant 0 : index
    %296 = vector.load %arg3[%295, %c0_130, %c0_131] : memref<20x32x32xbf16, #tpu.memory_space<vmem>>, vector<1x32x32xbf16>
    %297 = vector.shape_cast %296 : vector<1x32x32xbf16> to vector<32x32xbf16>
    %cst_132 = arith.constant dense<0.000000e+00> : vector<64x32xf32>
    %298 = tpu.matmul %292, %297, %cst_132 {dimension_numbers = #tpu.dot_dimension_numbers<[1], [0], [0], [1], [0, 0, 1, 1], [], []>} : vector<64x32xbf16>, vector<32x32xbf16>, vector<64x32xf32> -> vector<64x32xf32>
    %c1_i32_133 = arith.constant 1 : i32
    %299 = tpu.dynamic_rotate %272 by %c1_i32_133 dim 0 : vector<64x32xf32>, i32 -> vector<64x32xf32>
    %c-1_i32_134 = arith.constant -1 : i32
    %300 = vector.broadcast %c-1_i32_134 : i32 to vector<64x1xi32>
    %301 = arith.addi %16, %300 : vector<64x1xi32>
    %c0_i32_135 = arith.constant 0 : i32
    %302 = vector.broadcast %c0_i32_135 : i32 to vector<64x1xi32>
    %303 = arith.cmpi sge, %301, %302 : vector<64x1xi32>
    %c-1_i32_136 = arith.constant -1 : i32
    %304 = vector.broadcast %c-1_i32_136 : i32 to vector<64x1xi32>
    %305 = arith.addi %16, %304 : vector<64x1xi32>
    %c32_i32_137 = arith.constant 32 : i32
    %306 = vector.broadcast %c32_i32_137 : i32 to vector<64x1xi32>
    %307 = arith.cmpi slt, %305, %306 : vector<64x1xi32>
    %308 = arith.andi %303, %307 : vector<64x1xi1>
    %cst_138 = arith.constant 0.000000e+00 : f32
    %309 = vector.shape_cast %308 : vector<64x1xi1> to vector<64x1xi1>
    %310 = vector.broadcast %309 : vector<64x1xi1> to vector<64x32xi1>
    %311 = vector.broadcast %cst_138 : f32 to vector<64x32xf32>
    %312 = arith.select %310, %299, %311 : vector<64x32xi1>, vector<64x32xf32>
    %313 = arith.truncf %312 : vector<64x32xf32> to vector<64x32xbf16>
    %c5_i32_139 = arith.constant 5 : i32
    %314 = arith.muli %273, %c5_i32_139 : i32
    %c1_i32_140 = arith.constant 1 : i32
    %315 = arith.addi %314, %c1_i32_140 : i32
    %316 = arith.index_cast %315 : i32 to index
    %c0_141 = arith.constant 0 : index
    %c0_142 = arith.constant 0 : index
    %317 = vector.load %arg3[%316, %c0_141, %c0_142] : memref<20x32x32xbf16, #tpu.memory_space<vmem>>, vector<1x32x32xbf16>
    %318 = vector.shape_cast %317 : vector<1x32x32xbf16> to vector<32x32xbf16>
    %cst_143 = arith.constant dense<0.000000e+00> : vector<64x32xf32>
    %319 = tpu.matmul %313, %318, %cst_143 {dimension_numbers = #tpu.dot_dimension_numbers<[1], [0], [0], [1], [0, 0, 1, 1], [], []>} : vector<64x32xbf16>, vector<32x32xbf16>, vector<64x32xf32> -> vector<64x32xf32>
    %320 = arith.addf %298, %319 : vector<64x32xf32>
    %321 = arith.truncf %272 : vector<64x32xf32> to vector<64x32xbf16>
    %c5_i32_144 = arith.constant 5 : i32
    %322 = arith.muli %273, %c5_i32_144 : i32
    %c2_i32_145 = arith.constant 2 : i32
    %323 = arith.addi %322, %c2_i32_145 : i32
    %324 = arith.index_cast %323 : i32 to index
    %c0_146 = arith.constant 0 : index
    %c0_147 = arith.constant 0 : index
    %325 = vector.load %arg3[%324, %c0_146, %c0_147] : memref<20x32x32xbf16, #tpu.memory_space<vmem>>, vector<1x32x32xbf16>
    %326 = vector.shape_cast %325 : vector<1x32x32xbf16> to vector<32x32xbf16>
    %cst_148 = arith.constant dense<0.000000e+00> : vector<64x32xf32>
    %327 = tpu.matmul %321, %326, %cst_148 {dimension_numbers = #tpu.dot_dimension_numbers<[1], [0], [0], [1], [0, 0, 1, 1], [], []>} : vector<64x32xbf16>, vector<32x32xbf16>, vector<64x32xf32> -> vector<64x32xf32>
    %328 = arith.addf %320, %327 : vector<64x32xf32>
    %c63_i32_149 = arith.constant 63 : i32
    %329 = tpu.dynamic_rotate %272 by %c63_i32_149 dim 0 : vector<64x32xf32>, i32 -> vector<64x32xf32>
    %c1_i32_150 = arith.constant 1 : i32
    %330 = vector.broadcast %c1_i32_150 : i32 to vector<64x1xi32>
    %331 = arith.addi %16, %330 : vector<64x1xi32>
    %c0_i32_151 = arith.constant 0 : i32
    %332 = vector.broadcast %c0_i32_151 : i32 to vector<64x1xi32>
    %333 = arith.cmpi sge, %331, %332 : vector<64x1xi32>
    %c1_i32_152 = arith.constant 1 : i32
    %334 = vector.broadcast %c1_i32_152 : i32 to vector<64x1xi32>
    %335 = arith.addi %16, %334 : vector<64x1xi32>
    %c32_i32_153 = arith.constant 32 : i32
    %336 = vector.broadcast %c32_i32_153 : i32 to vector<64x1xi32>
    %337 = arith.cmpi slt, %335, %336 : vector<64x1xi32>
    %338 = arith.andi %333, %337 : vector<64x1xi1>
    %cst_154 = arith.constant 0.000000e+00 : f32
    %339 = vector.shape_cast %338 : vector<64x1xi1> to vector<64x1xi1>
    %340 = vector.broadcast %339 : vector<64x1xi1> to vector<64x32xi1>
    %341 = vector.broadcast %cst_154 : f32 to vector<64x32xf32>
    %342 = arith.select %340, %329, %341 : vector<64x32xi1>, vector<64x32xf32>
    %343 = arith.truncf %342 : vector<64x32xf32> to vector<64x32xbf16>
    %c5_i32_155 = arith.constant 5 : i32
    %344 = arith.muli %273, %c5_i32_155 : i32
    %c3_i32_156 = arith.constant 3 : i32
    %345 = arith.addi %344, %c3_i32_156 : i32
    %346 = arith.index_cast %345 : i32 to index
    %c0_157 = arith.constant 0 : index
    %c0_158 = arith.constant 0 : index
    %347 = vector.load %arg3[%346, %c0_157, %c0_158] : memref<20x32x32xbf16, #tpu.memory_space<vmem>>, vector<1x32x32xbf16>
    %348 = vector.shape_cast %347 : vector<1x32x32xbf16> to vector<32x32xbf16>
    %cst_159 = arith.constant dense<0.000000e+00> : vector<64x32xf32>
    %349 = tpu.matmul %343, %348, %cst_159 {dimension_numbers = #tpu.dot_dimension_numbers<[1], [0], [0], [1], [0, 0, 1, 1], [], []>} : vector<64x32xbf16>, vector<32x32xbf16>, vector<64x32xf32> -> vector<64x32xf32>
    %350 = arith.addf %328, %349 : vector<64x32xf32>
    %c62_i32_160 = arith.constant 62 : i32
    %351 = tpu.dynamic_rotate %272 by %c62_i32_160 dim 0 : vector<64x32xf32>, i32 -> vector<64x32xf32>
    %c2_i32_161 = arith.constant 2 : i32
    %352 = vector.broadcast %c2_i32_161 : i32 to vector<64x1xi32>
    %353 = arith.addi %16, %352 : vector<64x1xi32>
    %c0_i32_162 = arith.constant 0 : i32
    %354 = vector.broadcast %c0_i32_162 : i32 to vector<64x1xi32>
    %355 = arith.cmpi sge, %353, %354 : vector<64x1xi32>
    %c2_i32_163 = arith.constant 2 : i32
    %356 = vector.broadcast %c2_i32_163 : i32 to vector<64x1xi32>
    %357 = arith.addi %16, %356 : vector<64x1xi32>
    %c32_i32_164 = arith.constant 32 : i32
    %358 = vector.broadcast %c32_i32_164 : i32 to vector<64x1xi32>
    %359 = arith.cmpi slt, %357, %358 : vector<64x1xi32>
    %360 = arith.andi %355, %359 : vector<64x1xi1>
    %cst_165 = arith.constant 0.000000e+00 : f32
    %361 = vector.shape_cast %360 : vector<64x1xi1> to vector<64x1xi1>
    %362 = vector.broadcast %361 : vector<64x1xi1> to vector<64x32xi1>
    %363 = vector.broadcast %cst_165 : f32 to vector<64x32xf32>
    %364 = arith.select %362, %351, %363 : vector<64x32xi1>, vector<64x32xf32>
    %365 = arith.truncf %364 : vector<64x32xf32> to vector<64x32xbf16>
    %c5_i32_166 = arith.constant 5 : i32
    %366 = arith.muli %273, %c5_i32_166 : i32
    %c4_i32_167 = arith.constant 4 : i32
    %367 = arith.addi %366, %c4_i32_167 : i32
    %368 = arith.index_cast %367 : i32 to index
    %c0_168 = arith.constant 0 : index
    %c0_169 = arith.constant 0 : index
    %369 = vector.load %arg3[%368, %c0_168, %c0_169] : memref<20x32x32xbf16, #tpu.memory_space<vmem>>, vector<1x32x32xbf16>
    %370 = vector.shape_cast %369 : vector<1x32x32xbf16> to vector<32x32xbf16>
    %cst_170 = arith.constant dense<0.000000e+00> : vector<64x32xf32>
    %371 = tpu.matmul %365, %370, %cst_170 {dimension_numbers = #tpu.dot_dimension_numbers<[1], [0], [0], [1], [0, 0, 1, 1], [], []>} : vector<64x32xbf16>, vector<32x32xbf16>, vector<64x32xf32> -> vector<64x32xf32>
    %372 = arith.addf %350, %371 : vector<64x32xf32>
    %373 = vector.broadcast %277 : vector<1x32xf32> to vector<64x32xf32>
    %374 = arith.addf %372, %373 : vector<64x32xf32>
    %c1_i32_171 = arith.constant 1 : i32
    %375 = arith.addi %273, %c1_i32_171 : i32
    %376 = arith.index_cast %375 : i32 to index
    %c0_172 = arith.constant 0 : index
    %c0_173 = arith.constant 0 : index
    %377 = vector.load %arg5[%376, %c0_172, %c0_173] : memref<5x32x32xf32, #tpu.memory_space<vmem>>, vector<1x32x32xf32>
    %378 = vector.shape_cast %377 : vector<1x32x32xf32> to vector<32x32xf32>
    %c1_i32_174 = arith.constant 1 : i32
    %379 = arith.addi %273, %c1_i32_174 : i32
    %380 = arith.index_cast %379 : i32 to index
    %c0_175 = arith.constant 0 : index
    %c0_176 = arith.constant 0 : index
    %381 = vector.load %arg6[%380, %c0_175, %c0_176] : memref<5x32x32xf32, #tpu.memory_space<vmem>>, vector<1x32x32xf32>
    %382 = vector.shape_cast %381 : vector<1x32x32xf32> to vector<32x32xf32>
    %cst_177 = arith.constant 0.000000e+00 : f32
    %383 = vector.broadcast %cst_177 : f32 to vector<64x32xf32>
    %384 = arith.maximumf %374, %383 : vector<64x32xf32>
    %385 = vector.shape_cast %384 : vector<64x32xf32> to vector<2x32x32xf32>
    %cst_178 = arith.constant dense<0.000000e+00> : vector<2x32xf32>
    %386 = vector.multi_reduction <add>, %385, %cst_178 [1] : vector<2x32x32xf32> to vector<2x32xf32>
    %387 = vector.shape_cast %386 : vector<2x32xf32> to vector<2x1x32xf32>
    %cst_179 = arith.constant 3.200000e+01 : f32
    %388 = vector.broadcast %cst_179 : f32 to vector<2x1x32xf32>
    %389 = arith.divf %387, %388 : vector<2x1x32xf32>
    %390 = vector.broadcast %389 : vector<2x1x32xf32> to vector<2x32x32xf32>
    %391 = arith.subf %385, %390 : vector<2x32x32xf32>
    %392 = arith.mulf %391, %391 : vector<2x32x32xf32>
    %cst_180 = arith.constant dense<0.000000e+00> : vector<2x32xf32>
    %393 = vector.multi_reduction <add>, %392, %cst_180 [1] : vector<2x32x32xf32> to vector<2x32xf32>
    %394 = vector.shape_cast %393 : vector<2x32xf32> to vector<2x1x32xf32>
    %cst_181 = arith.constant 3.200000e+01 : f32
    %395 = vector.broadcast %cst_181 : f32 to vector<2x1x32xf32>
    %396 = arith.divf %394, %395 : vector<2x1x32xf32>
    %397 = vector.broadcast %389 : vector<2x1x32xf32> to vector<2x32x32xf32>
    %398 = arith.subf %385, %397 : vector<2x32x32xf32>
    %cst_182 = arith.constant 9.99999974E-6 : f32
    %399 = vector.broadcast %cst_182 : f32 to vector<2x1x32xf32>
    %400 = arith.addf %396, %399 : vector<2x1x32xf32>
    %401 = math.rsqrt %400 : vector<2x1x32xf32>
    %402 = vector.broadcast %401 : vector<2x1x32xf32> to vector<2x32x32xf32>
    %403 = arith.mulf %398, %402 : vector<2x32x32xf32>
    %404 = vector.shape_cast %378 : vector<32x32xf32> to vector<1x32x32xf32>
    %405 = vector.broadcast %404 : vector<1x32x32xf32> to vector<2x32x32xf32>
    %406 = arith.mulf %403, %405 : vector<2x32x32xf32>
    %407 = vector.shape_cast %382 : vector<32x32xf32> to vector<1x32x32xf32>
    %408 = vector.broadcast %407 : vector<1x32x32xf32> to vector<2x32x32xf32>
    %409 = arith.addf %406, %408 : vector<2x32x32xf32>
    %410 = vector.shape_cast %409 : vector<2x32x32xf32> to vector<64x32xf32>
    %c2_i32_183 = arith.constant 2 : i32
    %411 = arith.addf %410, %134 : vector<64x32xf32>
    %c0_i32_184 = arith.constant 0 : i32
    %c2_i32_185 = arith.constant 2 : i32
    %412 = arith.addi %c2_i32_185, %c0_i32_184 : i32
    %c1_i32_186 = arith.constant 1 : i32
    %413 = arith.addi %412, %c1_i32_186 : i32
    %414 = arith.index_cast %413 : i32 to index
    %c0_187 = arith.constant 0 : index
    %c0_188 = arith.constant 0 : index
    %415 = vector.load %arg4[%414, %c0_187, %c0_188] : memref<5x1x32xf32, #tpu.memory_space<vmem>>, vector<1x1x32xf32>
    %416 = vector.shape_cast %415 : vector<1x1x32xf32> to vector<1x32xf32>
    %c2_i32_189 = arith.constant 2 : i32
    %417 = tpu.dynamic_rotate %411 by %c2_i32_189 dim 0 : vector<64x32xf32>, i32 -> vector<64x32xf32>
    %c-2_i32_190 = arith.constant -2 : i32
    %418 = vector.broadcast %c-2_i32_190 : i32 to vector<64x1xi32>
    %419 = arith.addi %16, %418 : vector<64x1xi32>
    %c0_i32_191 = arith.constant 0 : i32
    %420 = vector.broadcast %c0_i32_191 : i32 to vector<64x1xi32>
    %421 = arith.cmpi sge, %419, %420 : vector<64x1xi32>
    %c-2_i32_192 = arith.constant -2 : i32
    %422 = vector.broadcast %c-2_i32_192 : i32 to vector<64x1xi32>
    %423 = arith.addi %16, %422 : vector<64x1xi32>
    %c32_i32_193 = arith.constant 32 : i32
    %424 = vector.broadcast %c32_i32_193 : i32 to vector<64x1xi32>
    %425 = arith.cmpi slt, %423, %424 : vector<64x1xi32>
    %426 = arith.andi %421, %425 : vector<64x1xi1>
    %cst_194 = arith.constant 0.000000e+00 : f32
    %427 = vector.shape_cast %426 : vector<64x1xi1> to vector<64x1xi1>
    %428 = vector.broadcast %427 : vector<64x1xi1> to vector<64x32xi1>
    %429 = vector.broadcast %cst_194 : f32 to vector<64x32xf32>
    %430 = arith.select %428, %417, %429 : vector<64x32xi1>, vector<64x32xf32>
    %431 = arith.truncf %430 : vector<64x32xf32> to vector<64x32xbf16>
    %c5_i32_195 = arith.constant 5 : i32
    %432 = arith.muli %412, %c5_i32_195 : i32
    %c0_i32_196 = arith.constant 0 : i32
    %433 = arith.addi %432, %c0_i32_196 : i32
    %434 = arith.index_cast %433 : i32 to index
    %c0_197 = arith.constant 0 : index
    %c0_198 = arith.constant 0 : index
    %435 = vector.load %arg3[%434, %c0_197, %c0_198] : memref<20x32x32xbf16, #tpu.memory_space<vmem>>, vector<1x32x32xbf16>
    %436 = vector.shape_cast %435 : vector<1x32x32xbf16> to vector<32x32xbf16>
    %cst_199 = arith.constant dense<0.000000e+00> : vector<64x32xf32>
    %437 = tpu.matmul %431, %436, %cst_199 {dimension_numbers = #tpu.dot_dimension_numbers<[1], [0], [0], [1], [0, 0, 1, 1], [], []>} : vector<64x32xbf16>, vector<32x32xbf16>, vector<64x32xf32> -> vector<64x32xf32>
    %c1_i32_200 = arith.constant 1 : i32
    %438 = tpu.dynamic_rotate %411 by %c1_i32_200 dim 0 : vector<64x32xf32>, i32 -> vector<64x32xf32>
    %c-1_i32_201 = arith.constant -1 : i32
    %439 = vector.broadcast %c-1_i32_201 : i32 to vector<64x1xi32>
    %440 = arith.addi %16, %439 : vector<64x1xi32>
    %c0_i32_202 = arith.constant 0 : i32
    %441 = vector.broadcast %c0_i32_202 : i32 to vector<64x1xi32>
    %442 = arith.cmpi sge, %440, %441 : vector<64x1xi32>
    %c-1_i32_203 = arith.constant -1 : i32
    %443 = vector.broadcast %c-1_i32_203 : i32 to vector<64x1xi32>
    %444 = arith.addi %16, %443 : vector<64x1xi32>
    %c32_i32_204 = arith.constant 32 : i32
    %445 = vector.broadcast %c32_i32_204 : i32 to vector<64x1xi32>
    %446 = arith.cmpi slt, %444, %445 : vector<64x1xi32>
    %447 = arith.andi %442, %446 : vector<64x1xi1>
    %cst_205 = arith.constant 0.000000e+00 : f32
    %448 = vector.shape_cast %447 : vector<64x1xi1> to vector<64x1xi1>
    %449 = vector.broadcast %448 : vector<64x1xi1> to vector<64x32xi1>
    %450 = vector.broadcast %cst_205 : f32 to vector<64x32xf32>
    %451 = arith.select %449, %438, %450 : vector<64x32xi1>, vector<64x32xf32>
    %452 = arith.truncf %451 : vector<64x32xf32> to vector<64x32xbf16>
    %c5_i32_206 = arith.constant 5 : i32
    %453 = arith.muli %412, %c5_i32_206 : i32
    %c1_i32_207 = arith.constant 1 : i32
    %454 = arith.addi %453, %c1_i32_207 : i32
    %455 = arith.index_cast %454 : i32 to index
    %c0_208 = arith.constant 0 : index
    %c0_209 = arith.constant 0 : index
    %456 = vector.load %arg3[%455, %c0_208, %c0_209] : memref<20x32x32xbf16, #tpu.memory_space<vmem>>, vector<1x32x32xbf16>
    %457 = vector.shape_cast %456 : vector<1x32x32xbf16> to vector<32x32xbf16>
    %cst_210 = arith.constant dense<0.000000e+00> : vector<64x32xf32>
    %458 = tpu.matmul %452, %457, %cst_210 {dimension_numbers = #tpu.dot_dimension_numbers<[1], [0], [0], [1], [0, 0, 1, 1], [], []>} : vector<64x32xbf16>, vector<32x32xbf16>, vector<64x32xf32> -> vector<64x32xf32>
    %459 = arith.addf %437, %458 : vector<64x32xf32>
    %460 = arith.truncf %411 : vector<64x32xf32> to vector<64x32xbf16>
    %c5_i32_211 = arith.constant 5 : i32
    %461 = arith.muli %412, %c5_i32_211 : i32
    %c2_i32_212 = arith.constant 2 : i32
    %462 = arith.addi %461, %c2_i32_212 : i32
    %463 = arith.index_cast %462 : i32 to index
    %c0_213 = arith.constant 0 : index
    %c0_214 = arith.constant 0 : index
    %464 = vector.load %arg3[%463, %c0_213, %c0_214] : memref<20x32x32xbf16, #tpu.memory_space<vmem>>, vector<1x32x32xbf16>
    %465 = vector.shape_cast %464 : vector<1x32x32xbf16> to vector<32x32xbf16>
    %cst_215 = arith.constant dense<0.000000e+00> : vector<64x32xf32>
    %466 = tpu.matmul %460, %465, %cst_215 {dimension_numbers = #tpu.dot_dimension_numbers<[1], [0], [0], [1], [0, 0, 1, 1], [], []>} : vector<64x32xbf16>, vector<32x32xbf16>, vector<64x32xf32> -> vector<64x32xf32>
    %467 = arith.addf %459, %466 : vector<64x32xf32>
    %c63_i32_216 = arith.constant 63 : i32
    %468 = tpu.dynamic_rotate %411 by %c63_i32_216 dim 0 : vector<64x32xf32>, i32 -> vector<64x32xf32>
    %c1_i32_217 = arith.constant 1 : i32
    %469 = vector.broadcast %c1_i32_217 : i32 to vector<64x1xi32>
    %470 = arith.addi %16, %469 : vector<64x1xi32>
    %c0_i32_218 = arith.constant 0 : i32
    %471 = vector.broadcast %c0_i32_218 : i32 to vector<64x1xi32>
    %472 = arith.cmpi sge, %470, %471 : vector<64x1xi32>
    %c1_i32_219 = arith.constant 1 : i32
    %473 = vector.broadcast %c1_i32_219 : i32 to vector<64x1xi32>
    %474 = arith.addi %16, %473 : vector<64x1xi32>
    %c32_i32_220 = arith.constant 32 : i32
    %475 = vector.broadcast %c32_i32_220 : i32 to vector<64x1xi32>
    %476 = arith.cmpi slt, %474, %475 : vector<64x1xi32>
    %477 = arith.andi %472, %476 : vector<64x1xi1>
    %cst_221 = arith.constant 0.000000e+00 : f32
    %478 = vector.shape_cast %477 : vector<64x1xi1> to vector<64x1xi1>
    %479 = vector.broadcast %478 : vector<64x1xi1> to vector<64x32xi1>
    %480 = vector.broadcast %cst_221 : f32 to vector<64x32xf32>
    %481 = arith.select %479, %468, %480 : vector<64x32xi1>, vector<64x32xf32>
    %482 = arith.truncf %481 : vector<64x32xf32> to vector<64x32xbf16>
    %c5_i32_222 = arith.constant 5 : i32
    %483 = arith.muli %412, %c5_i32_222 : i32
    %c3_i32_223 = arith.constant 3 : i32
    %484 = arith.addi %483, %c3_i32_223 : i32
    %485 = arith.index_cast %484 : i32 to index
    %c0_224 = arith.constant 0 : index
    %c0_225 = arith.constant 0 : index
    %486 = vector.load %arg3[%485, %c0_224, %c0_225] : memref<20x32x32xbf16, #tpu.memory_space<vmem>>, vector<1x32x32xbf16>
    %487 = vector.shape_cast %486 : vector<1x32x32xbf16> to vector<32x32xbf16>
    %cst_226 = arith.constant dense<0.000000e+00> : vector<64x32xf32>
    %488 = tpu.matmul %482, %487, %cst_226 {dimension_numbers = #tpu.dot_dimension_numbers<[1], [0], [0], [1], [0, 0, 1, 1], [], []>} : vector<64x32xbf16>, vector<32x32xbf16>, vector<64x32xf32> -> vector<64x32xf32>
    %489 = arith.addf %467, %488 : vector<64x32xf32>
    %c62_i32_227 = arith.constant 62 : i32
    %490 = tpu.dynamic_rotate %411 by %c62_i32_227 dim 0 : vector<64x32xf32>, i32 -> vector<64x32xf32>
    %c2_i32_228 = arith.constant 2 : i32
    %491 = vector.broadcast %c2_i32_228 : i32 to vector<64x1xi32>
    %492 = arith.addi %16, %491 : vector<64x1xi32>
    %c0_i32_229 = arith.constant 0 : i32
    %493 = vector.broadcast %c0_i32_229 : i32 to vector<64x1xi32>
    %494 = arith.cmpi sge, %492, %493 : vector<64x1xi32>
    %c2_i32_230 = arith.constant 2 : i32
    %495 = vector.broadcast %c2_i32_230 : i32 to vector<64x1xi32>
    %496 = arith.addi %16, %495 : vector<64x1xi32>
    %c32_i32_231 = arith.constant 32 : i32
    %497 = vector.broadcast %c32_i32_231 : i32 to vector<64x1xi32>
    %498 = arith.cmpi slt, %496, %497 : vector<64x1xi32>
    %499 = arith.andi %494, %498 : vector<64x1xi1>
    %cst_232 = arith.constant 0.000000e+00 : f32
    %500 = vector.shape_cast %499 : vector<64x1xi1> to vector<64x1xi1>
    %501 = vector.broadcast %500 : vector<64x1xi1> to vector<64x32xi1>
    %502 = vector.broadcast %cst_232 : f32 to vector<64x32xf32>
    %503 = arith.select %501, %490, %502 : vector<64x32xi1>, vector<64x32xf32>
    %504 = arith.truncf %503 : vector<64x32xf32> to vector<64x32xbf16>
    %c5_i32_233 = arith.constant 5 : i32
    %505 = arith.muli %412, %c5_i32_233 : i32
    %c4_i32_234 = arith.constant 4 : i32
    %506 = arith.addi %505, %c4_i32_234 : i32
    %507 = arith.index_cast %506 : i32 to index
    %c0_235 = arith.constant 0 : index
    %c0_236 = arith.constant 0 : index
    %508 = vector.load %arg3[%507, %c0_235, %c0_236] : memref<20x32x32xbf16, #tpu.memory_space<vmem>>, vector<1x32x32xbf16>
    %509 = vector.shape_cast %508 : vector<1x32x32xbf16> to vector<32x32xbf16>
    %cst_237 = arith.constant dense<0.000000e+00> : vector<64x32xf32>
    %510 = tpu.matmul %504, %509, %cst_237 {dimension_numbers = #tpu.dot_dimension_numbers<[1], [0], [0], [1], [0, 0, 1, 1], [], []>} : vector<64x32xbf16>, vector<32x32xbf16>, vector<64x32xf32> -> vector<64x32xf32>
    %511 = arith.addf %489, %510 : vector<64x32xf32>
    %512 = vector.broadcast %416 : vector<1x32xf32> to vector<64x32xf32>
    %513 = arith.addf %511, %512 : vector<64x32xf32>
    %c1_i32_238 = arith.constant 1 : i32
    %514 = arith.addi %412, %c1_i32_238 : i32
    %515 = arith.index_cast %514 : i32 to index
    %c0_239 = arith.constant 0 : index
    %c0_240 = arith.constant 0 : index
    %516 = vector.load %arg5[%515, %c0_239, %c0_240] : memref<5x32x32xf32, #tpu.memory_space<vmem>>, vector<1x32x32xf32>
    %517 = vector.shape_cast %516 : vector<1x32x32xf32> to vector<32x32xf32>
    %c1_i32_241 = arith.constant 1 : i32
    %518 = arith.addi %412, %c1_i32_241 : i32
    %519 = arith.index_cast %518 : i32 to index
    %c0_242 = arith.constant 0 : index
    %c0_243 = arith.constant 0 : index
    %520 = vector.load %arg6[%519, %c0_242, %c0_243] : memref<5x32x32xf32, #tpu.memory_space<vmem>>, vector<1x32x32xf32>
    %521 = vector.shape_cast %520 : vector<1x32x32xf32> to vector<32x32xf32>
    %cst_244 = arith.constant 0.000000e+00 : f32
    %522 = vector.broadcast %cst_244 : f32 to vector<64x32xf32>
    %523 = arith.maximumf %513, %522 : vector<64x32xf32>
    %524 = vector.shape_cast %523 : vector<64x32xf32> to vector<2x32x32xf32>
    %cst_245 = arith.constant dense<0.000000e+00> : vector<2x32xf32>
    %525 = vector.multi_reduction <add>, %524, %cst_245 [1] : vector<2x32x32xf32> to vector<2x32xf32>
    %526 = vector.shape_cast %525 : vector<2x32xf32> to vector<2x1x32xf32>
    %cst_246 = arith.constant 3.200000e+01 : f32
    %527 = vector.broadcast %cst_246 : f32 to vector<2x1x32xf32>
    %528 = arith.divf %526, %527 : vector<2x1x32xf32>
    %529 = vector.broadcast %528 : vector<2x1x32xf32> to vector<2x32x32xf32>
    %530 = arith.subf %524, %529 : vector<2x32x32xf32>
    %531 = arith.mulf %530, %530 : vector<2x32x32xf32>
    %cst_247 = arith.constant dense<0.000000e+00> : vector<2x32xf32>
    %532 = vector.multi_reduction <add>, %531, %cst_247 [1] : vector<2x32x32xf32> to vector<2x32xf32>
    %533 = vector.shape_cast %532 : vector<2x32xf32> to vector<2x1x32xf32>
    %cst_248 = arith.constant 3.200000e+01 : f32
    %534 = vector.broadcast %cst_248 : f32 to vector<2x1x32xf32>
    %535 = arith.divf %533, %534 : vector<2x1x32xf32>
    %536 = vector.broadcast %528 : vector<2x1x32xf32> to vector<2x32x32xf32>
    %537 = arith.subf %524, %536 : vector<2x32x32xf32>
    %cst_249 = arith.constant 9.99999974E-6 : f32
    %538 = vector.broadcast %cst_249 : f32 to vector<2x1x32xf32>
    %539 = arith.addf %535, %538 : vector<2x1x32xf32>
    %540 = math.rsqrt %539 : vector<2x1x32xf32>
    %541 = vector.broadcast %540 : vector<2x1x32xf32> to vector<2x32x32xf32>
    %542 = arith.mulf %537, %541 : vector<2x32x32xf32>
    %543 = vector.shape_cast %517 : vector<32x32xf32> to vector<1x32x32xf32>
    %544 = vector.broadcast %543 : vector<1x32x32xf32> to vector<2x32x32xf32>
    %545 = arith.mulf %542, %544 : vector<2x32x32xf32>
    %546 = vector.shape_cast %521 : vector<32x32xf32> to vector<1x32x32xf32>
    %547 = vector.broadcast %546 : vector<1x32x32xf32> to vector<2x32x32xf32>
    %548 = arith.addf %545, %547 : vector<2x32x32xf32>
    %549 = vector.shape_cast %548 : vector<2x32x32xf32> to vector<64x32xf32>
    %c1_i32_250 = arith.constant 1 : i32
    %c2_i32_251 = arith.constant 2 : i32
    %550 = arith.addi %c2_i32_251, %c1_i32_250 : i32
    %c1_i32_252 = arith.constant 1 : i32
    %551 = arith.addi %550, %c1_i32_252 : i32
    %552 = arith.index_cast %551 : i32 to index
    %c0_253 = arith.constant 0 : index
    %c0_254 = arith.constant 0 : index
    %553 = vector.load %arg4[%552, %c0_253, %c0_254] : memref<5x1x32xf32, #tpu.memory_space<vmem>>, vector<1x1x32xf32>
    %554 = vector.shape_cast %553 : vector<1x1x32xf32> to vector<1x32xf32>
    %c2_i32_255 = arith.constant 2 : i32
    %555 = tpu.dynamic_rotate %549 by %c2_i32_255 dim 0 : vector<64x32xf32>, i32 -> vector<64x32xf32>
    %c-2_i32_256 = arith.constant -2 : i32
    %556 = vector.broadcast %c-2_i32_256 : i32 to vector<64x1xi32>
    %557 = arith.addi %16, %556 : vector<64x1xi32>
    %c0_i32_257 = arith.constant 0 : i32
    %558 = vector.broadcast %c0_i32_257 : i32 to vector<64x1xi32>
    %559 = arith.cmpi sge, %557, %558 : vector<64x1xi32>
    %c-2_i32_258 = arith.constant -2 : i32
    %560 = vector.broadcast %c-2_i32_258 : i32 to vector<64x1xi32>
    %561 = arith.addi %16, %560 : vector<64x1xi32>
    %c32_i32_259 = arith.constant 32 : i32
    %562 = vector.broadcast %c32_i32_259 : i32 to vector<64x1xi32>
    %563 = arith.cmpi slt, %561, %562 : vector<64x1xi32>
    %564 = arith.andi %559, %563 : vector<64x1xi1>
    %cst_260 = arith.constant 0.000000e+00 : f32
    %565 = vector.shape_cast %564 : vector<64x1xi1> to vector<64x1xi1>
    %566 = vector.broadcast %565 : vector<64x1xi1> to vector<64x32xi1>
    %567 = vector.broadcast %cst_260 : f32 to vector<64x32xf32>
    %568 = arith.select %566, %555, %567 : vector<64x32xi1>, vector<64x32xf32>
    %569 = arith.truncf %568 : vector<64x32xf32> to vector<64x32xbf16>
    %c5_i32_261 = arith.constant 5 : i32
    %570 = arith.muli %550, %c5_i32_261 : i32
    %c0_i32_262 = arith.constant 0 : i32
    %571 = arith.addi %570, %c0_i32_262 : i32
    %572 = arith.index_cast %571 : i32 to index
    %c0_263 = arith.constant 0 : index
    %c0_264 = arith.constant 0 : index
    %573 = vector.load %arg3[%572, %c0_263, %c0_264] : memref<20x32x32xbf16, #tpu.memory_space<vmem>>, vector<1x32x32xbf16>
    %574 = vector.shape_cast %573 : vector<1x32x32xbf16> to vector<32x32xbf16>
    %cst_265 = arith.constant dense<0.000000e+00> : vector<64x32xf32>
    %575 = tpu.matmul %569, %574, %cst_265 {dimension_numbers = #tpu.dot_dimension_numbers<[1], [0], [0], [1], [0, 0, 1, 1], [], []>} : vector<64x32xbf16>, vector<32x32xbf16>, vector<64x32xf32> -> vector<64x32xf32>
    %c1_i32_266 = arith.constant 1 : i32
    %576 = tpu.dynamic_rotate %549 by %c1_i32_266 dim 0 : vector<64x32xf32>, i32 -> vector<64x32xf32>
    %c-1_i32_267 = arith.constant -1 : i32
    %577 = vector.broadcast %c-1_i32_267 : i32 to vector<64x1xi32>
    %578 = arith.addi %16, %577 : vector<64x1xi32>
    %c0_i32_268 = arith.constant 0 : i32
    %579 = vector.broadcast %c0_i32_268 : i32 to vector<64x1xi32>
    %580 = arith.cmpi sge, %578, %579 : vector<64x1xi32>
    %c-1_i32_269 = arith.constant -1 : i32
    %581 = vector.broadcast %c-1_i32_269 : i32 to vector<64x1xi32>
    %582 = arith.addi %16, %581 : vector<64x1xi32>
    %c32_i32_270 = arith.constant 32 : i32
    %583 = vector.broadcast %c32_i32_270 : i32 to vector<64x1xi32>
    %584 = arith.cmpi slt, %582, %583 : vector<64x1xi32>
    %585 = arith.andi %580, %584 : vector<64x1xi1>
    %cst_271 = arith.constant 0.000000e+00 : f32
    %586 = vector.shape_cast %585 : vector<64x1xi1> to vector<64x1xi1>
    %587 = vector.broadcast %586 : vector<64x1xi1> to vector<64x32xi1>
    %588 = vector.broadcast %cst_271 : f32 to vector<64x32xf32>
    %589 = arith.select %587, %576, %588 : vector<64x32xi1>, vector<64x32xf32>
    %590 = arith.truncf %589 : vector<64x32xf32> to vector<64x32xbf16>
    %c5_i32_272 = arith.constant 5 : i32
    %591 = arith.muli %550, %c5_i32_272 : i32
    %c1_i32_273 = arith.constant 1 : i32
    %592 = arith.addi %591, %c1_i32_273 : i32
    %593 = arith.index_cast %592 : i32 to index
    %c0_274 = arith.constant 0 : index
    %c0_275 = arith.constant 0 : index
    %594 = vector.load %arg3[%593, %c0_274, %c0_275] : memref<20x32x32xbf16, #tpu.memory_space<vmem>>, vector<1x32x32xbf16>
    %595 = vector.shape_cast %594 : vector<1x32x32xbf16> to vector<32x32xbf16>
    %cst_276 = arith.constant dense<0.000000e+00> : vector<64x32xf32>
    %596 = tpu.matmul %590, %595, %cst_276 {dimension_numbers = #tpu.dot_dimension_numbers<[1], [0], [0], [1], [0, 0, 1, 1], [], []>} : vector<64x32xbf16>, vector<32x32xbf16>, vector<64x32xf32> -> vector<64x32xf32>
    %597 = arith.addf %575, %596 : vector<64x32xf32>
    %598 = arith.truncf %549 : vector<64x32xf32> to vector<64x32xbf16>
    %c5_i32_277 = arith.constant 5 : i32
    %599 = arith.muli %550, %c5_i32_277 : i32
    %c2_i32_278 = arith.constant 2 : i32
    %600 = arith.addi %599, %c2_i32_278 : i32
    %601 = arith.index_cast %600 : i32 to index
    %c0_279 = arith.constant 0 : index
    %c0_280 = arith.constant 0 : index
    %602 = vector.load %arg3[%601, %c0_279, %c0_280] : memref<20x32x32xbf16, #tpu.memory_space<vmem>>, vector<1x32x32xbf16>
    %603 = vector.shape_cast %602 : vector<1x32x32xbf16> to vector<32x32xbf16>
    %cst_281 = arith.constant dense<0.000000e+00> : vector<64x32xf32>
    %604 = tpu.matmul %598, %603, %cst_281 {dimension_numbers = #tpu.dot_dimension_numbers<[1], [0], [0], [1], [0, 0, 1, 1], [], []>} : vector<64x32xbf16>, vector<32x32xbf16>, vector<64x32xf32> -> vector<64x32xf32>
    %605 = arith.addf %597, %604 : vector<64x32xf32>
    %c63_i32_282 = arith.constant 63 : i32
    %606 = tpu.dynamic_rotate %549 by %c63_i32_282 dim 0 : vector<64x32xf32>, i32 -> vector<64x32xf32>
    %c1_i32_283 = arith.constant 1 : i32
    %607 = vector.broadcast %c1_i32_283 : i32 to vector<64x1xi32>
    %608 = arith.addi %16, %607 : vector<64x1xi32>
    %c0_i32_284 = arith.constant 0 : i32
    %609 = vector.broadcast %c0_i32_284 : i32 to vector<64x1xi32>
    %610 = arith.cmpi sge, %608, %609 : vector<64x1xi32>
    %c1_i32_285 = arith.constant 1 : i32
    %611 = vector.broadcast %c1_i32_285 : i32 to vector<64x1xi32>
    %612 = arith.addi %16, %611 : vector<64x1xi32>
    %c32_i32_286 = arith.constant 32 : i32
    %613 = vector.broadcast %c32_i32_286 : i32 to vector<64x1xi32>
    %614 = arith.cmpi slt, %612, %613 : vector<64x1xi32>
    %615 = arith.andi %610, %614 : vector<64x1xi1>
    %cst_287 = arith.constant 0.000000e+00 : f32
    %616 = vector.shape_cast %615 : vector<64x1xi1> to vector<64x1xi1>
    %617 = vector.broadcast %616 : vector<64x1xi1> to vector<64x32xi1>
    %618 = vector.broadcast %cst_287 : f32 to vector<64x32xf32>
    %619 = arith.select %617, %606, %618 : vector<64x32xi1>, vector<64x32xf32>
    %620 = arith.truncf %619 : vector<64x32xf32> to vector<64x32xbf16>
    %c5_i32_288 = arith.constant 5 : i32
    %621 = arith.muli %550, %c5_i32_288 : i32
    %c3_i32_289 = arith.constant 3 : i32
    %622 = arith.addi %621, %c3_i32_289 : i32
    %623 = arith.index_cast %622 : i32 to index
    %c0_290 = arith.constant 0 : index
    %c0_291 = arith.constant 0 : index
    %624 = vector.load %arg3[%623, %c0_290, %c0_291] : memref<20x32x32xbf16, #tpu.memory_space<vmem>>, vector<1x32x32xbf16>
    %625 = vector.shape_cast %624 : vector<1x32x32xbf16> to vector<32x32xbf16>
    %cst_292 = arith.constant dense<0.000000e+00> : vector<64x32xf32>
    %626 = tpu.matmul %620, %625, %cst_292 {dimension_numbers = #tpu.dot_dimension_numbers<[1], [0], [0], [1], [0, 0, 1, 1], [], []>} : vector<64x32xbf16>, vector<32x32xbf16>, vector<64x32xf32> -> vector<64x32xf32>
    %627 = arith.addf %605, %626 : vector<64x32xf32>
    %c62_i32_293 = arith.constant 62 : i32
    %628 = tpu.dynamic_rotate %549 by %c62_i32_293 dim 0 : vector<64x32xf32>, i32 -> vector<64x32xf32>
    %c2_i32_294 = arith.constant 2 : i32
    %629 = vector.broadcast %c2_i32_294 : i32 to vector<64x1xi32>
    %630 = arith.addi %16, %629 : vector<64x1xi32>
    %c0_i32_295 = arith.constant 0 : i32
    %631 = vector.broadcast %c0_i32_295 : i32 to vector<64x1xi32>
    %632 = arith.cmpi sge, %630, %631 : vector<64x1xi32>
    %c2_i32_296 = arith.constant 2 : i32
    %633 = vector.broadcast %c2_i32_296 : i32 to vector<64x1xi32>
    %634 = arith.addi %16, %633 : vector<64x1xi32>
    %c32_i32_297 = arith.constant 32 : i32
    %635 = vector.broadcast %c32_i32_297 : i32 to vector<64x1xi32>
    %636 = arith.cmpi slt, %634, %635 : vector<64x1xi32>
    %637 = arith.andi %632, %636 : vector<64x1xi1>
    %cst_298 = arith.constant 0.000000e+00 : f32
    %638 = vector.shape_cast %637 : vector<64x1xi1> to vector<64x1xi1>
    %639 = vector.broadcast %638 : vector<64x1xi1> to vector<64x32xi1>
    %640 = vector.broadcast %cst_298 : f32 to vector<64x32xf32>
    %641 = arith.select %639, %628, %640 : vector<64x32xi1>, vector<64x32xf32>
    %642 = arith.truncf %641 : vector<64x32xf32> to vector<64x32xbf16>
    %c5_i32_299 = arith.constant 5 : i32
    %643 = arith.muli %550, %c5_i32_299 : i32
    %c4_i32_300 = arith.constant 4 : i32
    %644 = arith.addi %643, %c4_i32_300 : i32
    %645 = arith.index_cast %644 : i32 to index
    %c0_301 = arith.constant 0 : index
    %c0_302 = arith.constant 0 : index
    %646 = vector.load %arg3[%645, %c0_301, %c0_302] : memref<20x32x32xbf16, #tpu.memory_space<vmem>>, vector<1x32x32xbf16>
    %647 = vector.shape_cast %646 : vector<1x32x32xbf16> to vector<32x32xbf16>
    %cst_303 = arith.constant dense<0.000000e+00> : vector<64x32xf32>
    %648 = tpu.matmul %642, %647, %cst_303 {dimension_numbers = #tpu.dot_dimension_numbers<[1], [0], [0], [1], [0, 0, 1, 1], [], []>} : vector<64x32xbf16>, vector<32x32xbf16>, vector<64x32xf32> -> vector<64x32xf32>
    %649 = arith.addf %627, %648 : vector<64x32xf32>
    %650 = vector.broadcast %554 : vector<1x32xf32> to vector<64x32xf32>
    %651 = arith.addf %649, %650 : vector<64x32xf32>
    %c1_i32_304 = arith.constant 1 : i32
    %652 = arith.addi %550, %c1_i32_304 : i32
    %653 = arith.index_cast %652 : i32 to index
    %c0_305 = arith.constant 0 : index
    %c0_306 = arith.constant 0 : index
    %654 = vector.load %arg5[%653, %c0_305, %c0_306] : memref<5x32x32xf32, #tpu.memory_space<vmem>>, vector<1x32x32xf32>
    %655 = vector.shape_cast %654 : vector<1x32x32xf32> to vector<32x32xf32>
    %c1_i32_307 = arith.constant 1 : i32
    %656 = arith.addi %550, %c1_i32_307 : i32
    %657 = arith.index_cast %656 : i32 to index
    %c0_308 = arith.constant 0 : index
    %c0_309 = arith.constant 0 : index
    %658 = vector.load %arg6[%657, %c0_308, %c0_309] : memref<5x32x32xf32, #tpu.memory_space<vmem>>, vector<1x32x32xf32>
    %659 = vector.shape_cast %658 : vector<1x32x32xf32> to vector<32x32xf32>
    %cst_310 = arith.constant 0.000000e+00 : f32
    %660 = vector.broadcast %cst_310 : f32 to vector<64x32xf32>
    %661 = arith.maximumf %651, %660 : vector<64x32xf32>
    %662 = vector.shape_cast %661 : vector<64x32xf32> to vector<2x32x32xf32>
    %cst_311 = arith.constant dense<0.000000e+00> : vector<2x32xf32>
    %663 = vector.multi_reduction <add>, %662, %cst_311 [1] : vector<2x32x32xf32> to vector<2x32xf32>
    %664 = vector.shape_cast %663 : vector<2x32xf32> to vector<2x1x32xf32>
    %cst_312 = arith.constant 3.200000e+01 : f32
    %665 = vector.broadcast %cst_312 : f32 to vector<2x1x32xf32>
    %666 = arith.divf %664, %665 : vector<2x1x32xf32>
    %667 = vector.broadcast %666 : vector<2x1x32xf32> to vector<2x32x32xf32>
    %668 = arith.subf %662, %667 : vector<2x32x32xf32>
    %669 = arith.mulf %668, %668 : vector<2x32x32xf32>
    %cst_313 = arith.constant dense<0.000000e+00> : vector<2x32xf32>
    %670 = vector.multi_reduction <add>, %669, %cst_313 [1] : vector<2x32x32xf32> to vector<2x32xf32>
    %671 = vector.shape_cast %670 : vector<2x32xf32> to vector<2x1x32xf32>
    %cst_314 = arith.constant 3.200000e+01 : f32
    %672 = vector.broadcast %cst_314 : f32 to vector<2x1x32xf32>
    %673 = arith.divf %671, %672 : vector<2x1x32xf32>
    %674 = vector.broadcast %666 : vector<2x1x32xf32> to vector<2x32x32xf32>
    %675 = arith.subf %662, %674 : vector<2x32x32xf32>
    %cst_315 = arith.constant 9.99999974E-6 : f32
    %676 = vector.broadcast %cst_315 : f32 to vector<2x1x32xf32>
    %677 = arith.addf %673, %676 : vector<2x1x32xf32>
    %678 = math.rsqrt %677 : vector<2x1x32xf32>
    %679 = vector.broadcast %678 : vector<2x1x32xf32> to vector<2x32x32xf32>
    %680 = arith.mulf %675, %679 : vector<2x32x32xf32>
    %681 = vector.shape_cast %655 : vector<32x32xf32> to vector<1x32x32xf32>
    %682 = vector.broadcast %681 : vector<1x32x32xf32> to vector<2x32x32xf32>
    %683 = arith.mulf %680, %682 : vector<2x32x32xf32>
    %684 = vector.shape_cast %659 : vector<32x32xf32> to vector<1x32x32xf32>
    %685 = vector.broadcast %684 : vector<1x32x32xf32> to vector<2x32x32xf32>
    %686 = arith.addf %683, %685 : vector<2x32x32xf32>
    %687 = vector.shape_cast %686 : vector<2x32x32xf32> to vector<64x32xf32>
    %c2_i32_316 = arith.constant 2 : i32
    %688 = arith.addf %687, %411 : vector<64x32xf32>
    %689 = arith.truncf %688 : vector<64x32xf32> to vector<64x32xbf16>
    %c0_317 = arith.constant 0 : index
    %c0_318 = arith.constant 0 : index
    %690 = vector.load %arg7[%c0_317, %c0_318] : memref<32x192xbf16, #tpu.memory_space<vmem>>, vector<32x192xbf16>
    %cst_319 = arith.constant dense<0.000000e+00> : vector<64x192xf32>
    %691 = tpu.matmul %689, %690, %cst_319 {dimension_numbers = #tpu.dot_dimension_numbers<[1], [0], [0], [1], [0, 0, 1, 1], [], []>} : vector<64x32xbf16>, vector<32x192xbf16>, vector<64x192xf32> -> vector<64x192xf32>
    %c0_320 = arith.constant 0 : index
    %c0_321 = arith.constant 0 : index
    %692 = vector.load %arg8[%c0_320, %c0_321] : memref<1x192xf32, #tpu.memory_space<vmem>>, vector<1x192xf32>
    %693 = vector.broadcast %692 : vector<1x192xf32> to vector<64x192xf32>
    %694 = arith.addf %691, %693 : vector<64x192xf32>
    %c0_322 = arith.constant 0 : index
    %c0_323 = arith.constant 0 : index
    %695 = vector.load %arg9[%c0_322, %c0_323] : memref<64x128xbf16, #tpu.memory_space<vmem>>, vector<64x128xbf16>
    %c0_324 = arith.constant 0 : index
    %c0_325 = arith.constant 0 : index
    %696 = vector.load %arg10[%c0_324, %c0_325] : memref<1x128xf32, #tpu.memory_space<vmem>>, vector<1x128xf32>
    %697 = vector.extract_strided_slice %694 {offsets = [0, 0], sizes = [32, 16], strides = [1, 1]} : vector<64x192xf32> to vector<32x16xf32>
    %698 = vector.extract_strided_slice %694 {offsets = [0, 64], sizes = [32, 16], strides = [1, 1]} : vector<64x192xf32> to vector<32x16xf32>
    %699 = vector.extract_strided_slice %694 {offsets = [0, 128], sizes = [32, 16], strides = [1, 1]} : vector<64x192xf32> to vector<32x16xf32>
    %700 = arith.truncf %697 : vector<32x16xf32> to vector<32x16xbf16>
    %701 = arith.truncf %698 : vector<32x16xf32> to vector<32x16xbf16>
    %cst_326 = arith.constant dense<0.000000e+00> : vector<32x32xf32>
    %702 = tpu.matmul %700, %701, %cst_326 {dimension_numbers = #tpu.dot_dimension_numbers<[1], [1], [0], [0], [0, 0, 1, 0], [], []>} : vector<32x16xbf16>, vector<32x16xbf16>, vector<32x32xf32> -> vector<32x32xf32>
    %cst_327 = arith.constant dense<0xFF800000> : vector<32xf32>
    %703 = vector.multi_reduction <maximumf>, %702, %cst_327 [1] : vector<32x32xf32> to vector<32xf32>
    %704 = vector.shape_cast %703 : vector<32xf32> to vector<32x1xf32>
    %705 = vector.broadcast %704 : vector<32x1xf32> to vector<32x32xf32>
    %706 = arith.subf %702, %705 : vector<32x32xf32>
    %707 = math.exp %706 : vector<32x32xf32>
    %cst_328 = arith.constant dense<0.000000e+00> : vector<32xf32>
    %708 = vector.multi_reduction <add>, %707, %cst_328 [1] : vector<32x32xf32> to vector<32xf32>
    %709 = vector.shape_cast %708 : vector<32xf32> to vector<32x1xf32>
    %710 = tpu.reciprocal %709 {approx = true} : vector<32x1xf32> -> vector<32x1xf32>
    %711 = vector.broadcast %710 : vector<32x1xf32> to vector<32x32xf32>
    %712 = arith.mulf %707, %711 : vector<32x32xf32>
    %713 = arith.truncf %712 : vector<32x32xf32> to vector<32x32xbf16>
    %714 = arith.truncf %699 : vector<32x16xf32> to vector<32x16xbf16>
    %cst_329 = arith.constant dense<0.000000e+00> : vector<32x16xf32>
    %715 = tpu.matmul %713, %714, %cst_329 {dimension_numbers = #tpu.dot_dimension_numbers<[1], [0], [0], [1], [0, 0, 1, 1], [], []>} : vector<32x32xbf16>, vector<32x16xbf16>, vector<32x16xf32> -> vector<32x16xf32>
    %716 = arith.truncf %715 : vector<32x16xf32> to vector<32x16xbf16>
    %717 = vector.extract_strided_slice %695 {offsets = [0, 0], sizes = [16, 128], strides = [1, 1]} : vector<64x128xbf16> to vector<16x128xbf16>
    %cst_330 = arith.constant dense<0.000000e+00> : vector<32x128xf32>
    %718 = tpu.matmul %716, %717, %cst_330 {dimension_numbers = #tpu.dot_dimension_numbers<[1], [0], [0], [1], [0, 0, 1, 1], [], []>} : vector<32x16xbf16>, vector<16x128xbf16>, vector<32x128xf32> -> vector<32x128xf32>
    %719 = vector.extract_strided_slice %694 {offsets = [0, 16], sizes = [32, 16], strides = [1, 1]} : vector<64x192xf32> to vector<32x16xf32>
    %720 = vector.extract_strided_slice %694 {offsets = [0, 80], sizes = [32, 16], strides = [1, 1]} : vector<64x192xf32> to vector<32x16xf32>
    %721 = vector.extract_strided_slice %694 {offsets = [0, 144], sizes = [32, 16], strides = [1, 1]} : vector<64x192xf32> to vector<32x16xf32>
    %722 = arith.truncf %719 : vector<32x16xf32> to vector<32x16xbf16>
    %723 = arith.truncf %720 : vector<32x16xf32> to vector<32x16xbf16>
    %cst_331 = arith.constant dense<0.000000e+00> : vector<32x32xf32>
    %724 = tpu.matmul %722, %723, %cst_331 {dimension_numbers = #tpu.dot_dimension_numbers<[1], [1], [0], [0], [0, 0, 1, 0], [], []>} : vector<32x16xbf16>, vector<32x16xbf16>, vector<32x32xf32> -> vector<32x32xf32>
    %cst_332 = arith.constant dense<0xFF800000> : vector<32xf32>
    %725 = vector.multi_reduction <maximumf>, %724, %cst_332 [1] : vector<32x32xf32> to vector<32xf32>
    %726 = vector.shape_cast %725 : vector<32xf32> to vector<32x1xf32>
    %727 = vector.broadcast %726 : vector<32x1xf32> to vector<32x32xf32>
    %728 = arith.subf %724, %727 : vector<32x32xf32>
    %729 = math.exp %728 : vector<32x32xf32>
    %cst_333 = arith.constant dense<0.000000e+00> : vector<32xf32>
    %730 = vector.multi_reduction <add>, %729, %cst_333 [1] : vector<32x32xf32> to vector<32xf32>
    %731 = vector.shape_cast %730 : vector<32xf32> to vector<32x1xf32>
    %732 = tpu.reciprocal %731 {approx = true} : vector<32x1xf32> -> vector<32x1xf32>
    %733 = vector.broadcast %732 : vector<32x1xf32> to vector<32x32xf32>
    %734 = arith.mulf %729, %733 : vector<32x32xf32>
    %735 = arith.truncf %734 : vector<32x32xf32> to vector<32x32xbf16>
    %736 = arith.truncf %721 : vector<32x16xf32> to vector<32x16xbf16>
    %cst_334 = arith.constant dense<0.000000e+00> : vector<32x16xf32>
    %737 = tpu.matmul %735, %736, %cst_334 {dimension_numbers = #tpu.dot_dimension_numbers<[1], [0], [0], [1], [0, 0, 1, 1], [], []>} : vector<32x32xbf16>, vector<32x16xbf16>, vector<32x16xf32> -> vector<32x16xf32>
    %738 = arith.truncf %737 : vector<32x16xf32> to vector<32x16xbf16>
    %739 = vector.extract_strided_slice %695 {offsets = [16, 0], sizes = [16, 128], strides = [1, 1]} : vector<64x128xbf16> to vector<16x128xbf16>
    %cst_335 = arith.constant dense<0.000000e+00> : vector<32x128xf32>
    %740 = tpu.matmul %738, %739, %cst_335 {dimension_numbers = #tpu.dot_dimension_numbers<[1], [0], [0], [1], [0, 0, 1, 1], [], []>} : vector<32x16xbf16>, vector<16x128xbf16>, vector<32x128xf32> -> vector<32x128xf32>
    %741 = arith.addf %718, %740 : vector<32x128xf32>
    %742 = vector.extract_strided_slice %694 {offsets = [0, 32], sizes = [32, 16], strides = [1, 1]} : vector<64x192xf32> to vector<32x16xf32>
    %743 = vector.extract_strided_slice %694 {offsets = [0, 96], sizes = [32, 16], strides = [1, 1]} : vector<64x192xf32> to vector<32x16xf32>
    %744 = vector.extract_strided_slice %694 {offsets = [0, 160], sizes = [32, 16], strides = [1, 1]} : vector<64x192xf32> to vector<32x16xf32>
    %745 = arith.truncf %742 : vector<32x16xf32> to vector<32x16xbf16>
    %746 = arith.truncf %743 : vector<32x16xf32> to vector<32x16xbf16>
    %cst_336 = arith.constant dense<0.000000e+00> : vector<32x32xf32>
    %747 = tpu.matmul %745, %746, %cst_336 {dimension_numbers = #tpu.dot_dimension_numbers<[1], [1], [0], [0], [0, 0, 1, 0], [], []>} : vector<32x16xbf16>, vector<32x16xbf16>, vector<32x32xf32> -> vector<32x32xf32>
    %cst_337 = arith.constant dense<0xFF800000> : vector<32xf32>
    %748 = vector.multi_reduction <maximumf>, %747, %cst_337 [1] : vector<32x32xf32> to vector<32xf32>
    %749 = vector.shape_cast %748 : vector<32xf32> to vector<32x1xf32>
    %750 = vector.broadcast %749 : vector<32x1xf32> to vector<32x32xf32>
    %751 = arith.subf %747, %750 : vector<32x32xf32>
    %752 = math.exp %751 : vector<32x32xf32>
    %cst_338 = arith.constant dense<0.000000e+00> : vector<32xf32>
    %753 = vector.multi_reduction <add>, %752, %cst_338 [1] : vector<32x32xf32> to vector<32xf32>
    %754 = vector.shape_cast %753 : vector<32xf32> to vector<32x1xf32>
    %755 = tpu.reciprocal %754 {approx = true} : vector<32x1xf32> -> vector<32x1xf32>
    %756 = vector.broadcast %755 : vector<32x1xf32> to vector<32x32xf32>
    %757 = arith.mulf %752, %756 : vector<32x32xf32>
    %758 = arith.truncf %757 : vector<32x32xf32> to vector<32x32xbf16>
    %759 = arith.truncf %744 : vector<32x16xf32> to vector<32x16xbf16>
    %cst_339 = arith.constant dense<0.000000e+00> : vector<32x16xf32>
    %760 = tpu.matmul %758, %759, %cst_339 {dimension_numbers = #tpu.dot_dimension_numbers<[1], [0], [0], [1], [0, 0, 1, 1], [], []>} : vector<32x32xbf16>, vector<32x16xbf16>, vector<32x16xf32> -> vector<32x16xf32>
    %761 = arith.truncf %760 : vector<32x16xf32> to vector<32x16xbf16>
    %762 = vector.extract_strided_slice %695 {offsets = [32, 0], sizes = [16, 128], strides = [1, 1]} : vector<64x128xbf16> to vector<16x128xbf16>
    %cst_340 = arith.constant dense<0.000000e+00> : vector<32x128xf32>
    %763 = tpu.matmul %761, %762, %cst_340 {dimension_numbers = #tpu.dot_dimension_numbers<[1], [0], [0], [1], [0, 0, 1, 1], [], []>} : vector<32x16xbf16>, vector<16x128xbf16>, vector<32x128xf32> -> vector<32x128xf32>
    %764 = arith.addf %741, %763 : vector<32x128xf32>
    %765 = vector.extract_strided_slice %694 {offsets = [0, 48], sizes = [32, 16], strides = [1, 1]} : vector<64x192xf32> to vector<32x16xf32>
    %766 = vector.extract_strided_slice %694 {offsets = [0, 112], sizes = [32, 16], strides = [1, 1]} : vector<64x192xf32> to vector<32x16xf32>
    %767 = vector.extract_strided_slice %694 {offsets = [0, 176], sizes = [32, 16], strides = [1, 1]} : vector<64x192xf32> to vector<32x16xf32>
    %768 = arith.truncf %765 : vector<32x16xf32> to vector<32x16xbf16>
    %769 = arith.truncf %766 : vector<32x16xf32> to vector<32x16xbf16>
    %cst_341 = arith.constant dense<0.000000e+00> : vector<32x32xf32>
    %770 = tpu.matmul %768, %769, %cst_341 {dimension_numbers = #tpu.dot_dimension_numbers<[1], [1], [0], [0], [0, 0, 1, 0], [], []>} : vector<32x16xbf16>, vector<32x16xbf16>, vector<32x32xf32> -> vector<32x32xf32>
    %cst_342 = arith.constant dense<0xFF800000> : vector<32xf32>
    %771 = vector.multi_reduction <maximumf>, %770, %cst_342 [1] : vector<32x32xf32> to vector<32xf32>
    %772 = vector.shape_cast %771 : vector<32xf32> to vector<32x1xf32>
    %773 = vector.broadcast %772 : vector<32x1xf32> to vector<32x32xf32>
    %774 = arith.subf %770, %773 : vector<32x32xf32>
    %775 = math.exp %774 : vector<32x32xf32>
    %cst_343 = arith.constant dense<0.000000e+00> : vector<32xf32>
    %776 = vector.multi_reduction <add>, %775, %cst_343 [1] : vector<32x32xf32> to vector<32xf32>
    %777 = vector.shape_cast %776 : vector<32xf32> to vector<32x1xf32>
    %778 = tpu.reciprocal %777 {approx = true} : vector<32x1xf32> -> vector<32x1xf32>
    %779 = vector.broadcast %778 : vector<32x1xf32> to vector<32x32xf32>
    %780 = arith.mulf %775, %779 : vector<32x32xf32>
    %781 = arith.truncf %780 : vector<32x32xf32> to vector<32x32xbf16>
    %782 = arith.truncf %767 : vector<32x16xf32> to vector<32x16xbf16>
    %cst_344 = arith.constant dense<0.000000e+00> : vector<32x16xf32>
    %783 = tpu.matmul %781, %782, %cst_344 {dimension_numbers = #tpu.dot_dimension_numbers<[1], [0], [0], [1], [0, 0, 1, 1], [], []>} : vector<32x32xbf16>, vector<32x16xbf16>, vector<32x16xf32> -> vector<32x16xf32>
    %784 = arith.truncf %783 : vector<32x16xf32> to vector<32x16xbf16>
    %785 = vector.extract_strided_slice %695 {offsets = [48, 0], sizes = [16, 128], strides = [1, 1]} : vector<64x128xbf16> to vector<16x128xbf16>
    %cst_345 = arith.constant dense<0.000000e+00> : vector<32x128xf32>
    %786 = tpu.matmul %784, %785, %cst_345 {dimension_numbers = #tpu.dot_dimension_numbers<[1], [0], [0], [1], [0, 0, 1, 1], [], []>} : vector<32x16xbf16>, vector<16x128xbf16>, vector<32x128xf32> -> vector<32x128xf32>
    %787 = arith.addf %764, %786 : vector<32x128xf32>
    %788 = vector.broadcast %696 : vector<1x128xf32> to vector<32x128xf32>
    %789 = arith.addf %787, %788 : vector<32x128xf32>
    %c0_346 = arith.constant 0 : index
    %c0_347 = arith.constant 0 : index
    %c0_348 = arith.constant 0 : index
    %790 = vector.load %arg11[%c0_346, %c0_347, %c0_348] : memref<2x32x128xf32, #tpu.memory_space<vmem>>, vector<1x32x128xf32>
    %791 = vector.shape_cast %790 : vector<1x32x128xf32> to vector<32x128xf32>
    %792 = vector.shape_cast %789 : vector<32x128xf32> to vector<1x32x128xf32>
    tpu.vector_store %arg11[%c0_346, %c0_347, %c0_348], %792 {strides = array<i32>} : memref<2x32x128xf32, #tpu.memory_space<vmem>>, vector<1x32x128xf32>,
    %793 = vector.extract_strided_slice %694 {offsets = [32, 0], sizes = [32, 16], strides = [1, 1]} : vector<64x192xf32> to vector<32x16xf32>
    %794 = vector.extract_strided_slice %694 {offsets = [32, 64], sizes = [32, 16], strides = [1, 1]} : vector<64x192xf32> to vector<32x16xf32>
    %795 = vector.extract_strided_slice %694 {offsets = [32, 128], sizes = [32, 16], strides = [1, 1]} : vector<64x192xf32> to vector<32x16xf32>
    %796 = arith.truncf %793 : vector<32x16xf32> to vector<32x16xbf16>
    %797 = arith.truncf %794 : vector<32x16xf32> to vector<32x16xbf16>
    %cst_349 = arith.constant dense<0.000000e+00> : vector<32x32xf32>
    %798 = tpu.matmul %796, %797, %cst_349 {dimension_numbers = #tpu.dot_dimension_numbers<[1], [1], [0], [0], [0, 0, 1, 0], [], []>} : vector<32x16xbf16>, vector<32x16xbf16>, vector<32x32xf32> -> vector<32x32xf32>
    %cst_350 = arith.constant dense<0xFF800000> : vector<32xf32>
    %799 = vector.multi_reduction <maximumf>, %798, %cst_350 [1] : vector<32x32xf32> to vector<32xf32>
    %800 = vector.shape_cast %799 : vector<32xf32> to vector<32x1xf32>
    %801 = vector.broadcast %800 : vector<32x1xf32> to vector<32x32xf32>
    %802 = arith.subf %798, %801 : vector<32x32xf32>
    %803 = math.exp %802 : vector<32x32xf32>
    %cst_351 = arith.constant dense<0.000000e+00> : vector<32xf32>
    %804 = vector.multi_reduction <add>, %803, %cst_351 [1] : vector<32x32xf32> to vector<32xf32>
    %805 = vector.shape_cast %804 : vector<32xf32> to vector<32x1xf32>
    %806 = tpu.reciprocal %805 {approx = true} : vector<32x1xf32> -> vector<32x1xf32>
    %807 = vector.broadcast %806 : vector<32x1xf32> to vector<32x32xf32>
    %808 = arith.mulf %803, %807 : vector<32x32xf32>
    %809 = arith.truncf %808 : vector<32x32xf32> to vector<32x32xbf16>
    %810 = arith.truncf %795 : vector<32x16xf32> to vector<32x16xbf16>
    %cst_352 = arith.constant dense<0.000000e+00> : vector<32x16xf32>
    %811 = tpu.matmul %809, %810, %cst_352 {dimension_numbers = #tpu.dot_dimension_numbers<[1], [0], [0], [1], [0, 0, 1, 1], [], []>} : vector<32x32xbf16>, vector<32x16xbf16>, vector<32x16xf32> -> vector<32x16xf32>
    %812 = arith.truncf %811 : vector<32x16xf32> to vector<32x16xbf16>
    %813 = vector.extract_strided_slice %695 {offsets = [0, 0], sizes = [16, 128], strides = [1, 1]} : vector<64x128xbf16> to vector<16x128xbf16>
    %cst_353 = arith.constant dense<0.000000e+00> : vector<32x128xf32>
    %814 = tpu.matmul %812, %813, %cst_353 {dimension_numbers = #tpu.dot_dimension_numbers<[1], [0], [0], [1], [0, 0, 1, 1], [], []>} : vector<32x16xbf16>, vector<16x128xbf16>, vector<32x128xf32> -> vector<32x128xf32>
    %815 = vector.extract_strided_slice %694 {offsets = [32, 16], sizes = [32, 16], strides = [1, 1]} : vector<64x192xf32> to vector<32x16xf32>
    %816 = vector.extract_strided_slice %694 {offsets = [32, 80], sizes = [32, 16], strides = [1, 1]} : vector<64x192xf32> to vector<32x16xf32>
    %817 = vector.extract_strided_slice %694 {offsets = [32, 144], sizes = [32, 16], strides = [1, 1]} : vector<64x192xf32> to vector<32x16xf32>
    %818 = arith.truncf %815 : vector<32x16xf32> to vector<32x16xbf16>
    %819 = arith.truncf %816 : vector<32x16xf32> to vector<32x16xbf16>
    %cst_354 = arith.constant dense<0.000000e+00> : vector<32x32xf32>
    %820 = tpu.matmul %818, %819, %cst_354 {dimension_numbers = #tpu.dot_dimension_numbers<[1], [1], [0], [0], [0, 0, 1, 0], [], []>} : vector<32x16xbf16>, vector<32x16xbf16>, vector<32x32xf32> -> vector<32x32xf32>
    %cst_355 = arith.constant dense<0xFF800000> : vector<32xf32>
    %821 = vector.multi_reduction <maximumf>, %820, %cst_355 [1] : vector<32x32xf32> to vector<32xf32>
    %822 = vector.shape_cast %821 : vector<32xf32> to vector<32x1xf32>
    %823 = vector.broadcast %822 : vector<32x1xf32> to vector<32x32xf32>
    %824 = arith.subf %820, %823 : vector<32x32xf32>
    %825 = math.exp %824 : vector<32x32xf32>
    %cst_356 = arith.constant dense<0.000000e+00> : vector<32xf32>
    %826 = vector.multi_reduction <add>, %825, %cst_356 [1] : vector<32x32xf32> to vector<32xf32>
    %827 = vector.shape_cast %826 : vector<32xf32> to vector<32x1xf32>
    %828 = tpu.reciprocal %827 {approx = true} : vector<32x1xf32> -> vector<32x1xf32>
    %829 = vector.broadcast %828 : vector<32x1xf32> to vector<32x32xf32>
    %830 = arith.mulf %825, %829 : vector<32x32xf32>
    %831 = arith.truncf %830 : vector<32x32xf32> to vector<32x32xbf16>
    %832 = arith.truncf %817 : vector<32x16xf32> to vector<32x16xbf16>
    %cst_357 = arith.constant dense<0.000000e+00> : vector<32x16xf32>
    %833 = tpu.matmul %831, %832, %cst_357 {dimension_numbers = #tpu.dot_dimension_numbers<[1], [0], [0], [1], [0, 0, 1, 1], [], []>} : vector<32x32xbf16>, vector<32x16xbf16>, vector<32x16xf32> -> vector<32x16xf32>
    %834 = arith.truncf %833 : vector<32x16xf32> to vector<32x16xbf16>
    %835 = vector.extract_strided_slice %695 {offsets = [16, 0], sizes = [16, 128], strides = [1, 1]} : vector<64x128xbf16> to vector<16x128xbf16>
    %cst_358 = arith.constant dense<0.000000e+00> : vector<32x128xf32>
    %836 = tpu.matmul %834, %835, %cst_358 {dimension_numbers = #tpu.dot_dimension_numbers<[1], [0], [0], [1], [0, 0, 1, 1], [], []>} : vector<32x16xbf16>, vector<16x128xbf16>, vector<32x128xf32> -> vector<32x128xf32>
    %837 = arith.addf %814, %836 : vector<32x128xf32>
    %838 = vector.extract_strided_slice %694 {offsets = [32, 32], sizes = [32, 16], strides = [1, 1]} : vector<64x192xf32> to vector<32x16xf32>
    %839 = vector.extract_strided_slice %694 {offsets = [32, 96], sizes = [32, 16], strides = [1, 1]} : vector<64x192xf32> to vector<32x16xf32>
    %840 = vector.extract_strided_slice %694 {offsets = [32, 160], sizes = [32, 16], strides = [1, 1]} : vector<64x192xf32> to vector<32x16xf32>
    %841 = arith.truncf %838 : vector<32x16xf32> to vector<32x16xbf16>
    %842 = arith.truncf %839 : vector<32x16xf32> to vector<32x16xbf16>
    %cst_359 = arith.constant dense<0.000000e+00> : vector<32x32xf32>
    %843 = tpu.matmul %841, %842, %cst_359 {dimension_numbers = #tpu.dot_dimension_numbers<[1], [1], [0], [0], [0, 0, 1, 0], [], []>} : vector<32x16xbf16>, vector<32x16xbf16>, vector<32x32xf32> -> vector<32x32xf32>
    %cst_360 = arith.constant dense<0xFF800000> : vector<32xf32>
    %844 = vector.multi_reduction <maximumf>, %843, %cst_360 [1] : vector<32x32xf32> to vector<32xf32>
    %845 = vector.shape_cast %844 : vector<32xf32> to vector<32x1xf32>
    %846 = vector.broadcast %845 : vector<32x1xf32> to vector<32x32xf32>
    %847 = arith.subf %843, %846 : vector<32x32xf32>
    %848 = math.exp %847 : vector<32x32xf32>
    %cst_361 = arith.constant dense<0.000000e+00> : vector<32xf32>
    %849 = vector.multi_reduction <add>, %848, %cst_361 [1] : vector<32x32xf32> to vector<32xf32>
    %850 = vector.shape_cast %849 : vector<32xf32> to vector<32x1xf32>
    %851 = tpu.reciprocal %850 {approx = true} : vector<32x1xf32> -> vector<32x1xf32>
    %852 = vector.broadcast %851 : vector<32x1xf32> to vector<32x32xf32>
    %853 = arith.mulf %848, %852 : vector<32x32xf32>
    %854 = arith.truncf %853 : vector<32x32xf32> to vector<32x32xbf16>
    %855 = arith.truncf %840 : vector<32x16xf32> to vector<32x16xbf16>
    %cst_362 = arith.constant dense<0.000000e+00> : vector<32x16xf32>
    %856 = tpu.matmul %854, %855, %cst_362 {dimension_numbers = #tpu.dot_dimension_numbers<[1], [0], [0], [1], [0, 0, 1, 1], [], []>} : vector<32x32xbf16>, vector<32x16xbf16>, vector<32x16xf32> -> vector<32x16xf32>
    %857 = arith.truncf %856 : vector<32x16xf32> to vector<32x16xbf16>
    %858 = vector.extract_strided_slice %695 {offsets = [32, 0], sizes = [16, 128], strides = [1, 1]} : vector<64x128xbf16> to vector<16x128xbf16>
    %cst_363 = arith.constant dense<0.000000e+00> : vector<32x128xf32>
    %859 = tpu.matmul %857, %858, %cst_363 {dimension_numbers = #tpu.dot_dimension_numbers<[1], [0], [0], [1], [0, 0, 1, 1], [], []>} : vector<32x16xbf16>, vector<16x128xbf16>, vector<32x128xf32> -> vector<32x128xf32>
    %860 = arith.addf %837, %859 : vector<32x128xf32>
    %861 = vector.extract_strided_slice %694 {offsets = [32, 48], sizes = [32, 16], strides = [1, 1]} : vector<64x192xf32> to vector<32x16xf32>
    %862 = vector.extract_strided_slice %694 {offsets = [32, 112], sizes = [32, 16], strides = [1, 1]} : vector<64x192xf32> to vector<32x16xf32>
    %863 = vector.extract_strided_slice %694 {offsets = [32, 176], sizes = [32, 16], strides = [1, 1]} : vector<64x192xf32> to vector<32x16xf32>
    %864 = arith.truncf %861 : vector<32x16xf32> to vector<32x16xbf16>
    %865 = arith.truncf %862 : vector<32x16xf32> to vector<32x16xbf16>
    %cst_364 = arith.constant dense<0.000000e+00> : vector<32x32xf32>
    %866 = tpu.matmul %864, %865, %cst_364 {dimension_numbers = #tpu.dot_dimension_numbers<[1], [1], [0], [0], [0, 0, 1, 0], [], []>} : vector<32x16xbf16>, vector<32x16xbf16>, vector<32x32xf32> -> vector<32x32xf32>
    %cst_365 = arith.constant dense<0xFF800000> : vector<32xf32>
    %867 = vector.multi_reduction <maximumf>, %866, %cst_365 [1] : vector<32x32xf32> to vector<32xf32>
    %868 = vector.shape_cast %867 : vector<32xf32> to vector<32x1xf32>
    %869 = vector.broadcast %868 : vector<32x1xf32> to vector<32x32xf32>
    %870 = arith.subf %866, %869 : vector<32x32xf32>
    %871 = math.exp %870 : vector<32x32xf32>
    %cst_366 = arith.constant dense<0.000000e+00> : vector<32xf32>
    %872 = vector.multi_reduction <add>, %871, %cst_366 [1] : vector<32x32xf32> to vector<32xf32>
    %873 = vector.shape_cast %872 : vector<32xf32> to vector<32x1xf32>
    %874 = tpu.reciprocal %873 {approx = true} : vector<32x1xf32> -> vector<32x1xf32>
    %875 = vector.broadcast %874 : vector<32x1xf32> to vector<32x32xf32>
    %876 = arith.mulf %871, %875 : vector<32x32xf32>
    %877 = arith.truncf %876 : vector<32x32xf32> to vector<32x32xbf16>
    %878 = arith.truncf %863 : vector<32x16xf32> to vector<32x16xbf16>
    %cst_367 = arith.constant dense<0.000000e+00> : vector<32x16xf32>
    %879 = tpu.matmul %877, %878, %cst_367 {dimension_numbers = #tpu.dot_dimension_numbers<[1], [0], [0], [1], [0, 0, 1, 1], [], []>} : vector<32x32xbf16>, vector<32x16xbf16>, vector<32x16xf32> -> vector<32x16xf32>
    %880 = arith.truncf %879 : vector<32x16xf32> to vector<32x16xbf16>
    %881 = vector.extract_strided_slice %695 {offsets = [48, 0], sizes = [16, 128], strides = [1, 1]} : vector<64x128xbf16> to vector<16x128xbf16>
    %cst_368 = arith.constant dense<0.000000e+00> : vector<32x128xf32>
    %882 = tpu.matmul %880, %881, %cst_368 {dimension_numbers = #tpu.dot_dimension_numbers<[1], [0], [0], [1], [0, 0, 1, 1], [], []>} : vector<32x16xbf16>, vector<16x128xbf16>, vector<32x128xf32> -> vector<32x128xf32>
    %883 = arith.addf %860, %882 : vector<32x128xf32>
    %884 = vector.broadcast %696 : vector<1x128xf32> to vector<32x128xf32>
    %885 = arith.addf %883, %884 : vector<32x128xf32>
    %c1_369 = arith.constant 1 : index
    %c0_370 = arith.constant 0 : index
    %c0_371 = arith.constant 0 : index
    %886 = vector.load %arg11[%c1_369, %c0_370, %c0_371] : memref<2x32x128xf32, #tpu.memory_space<vmem>>, vector<1x32x128xf32>
    %887 = vector.shape_cast %886 : vector<1x32x128xf32> to vector<32x128xf32>
    %888 = vector.shape_cast %885 : vector<32x128xf32> to vector<1x32x128xf32>
    tpu.vector_store %arg11[%c1_369, %c0_370, %c0_371], %888 {strides = array<i32>} : memref<2x32x128xf32, #tpu.memory_space<vmem>>, vector<1x32x128xf32>,
    return
  }
  func.func @transform_0(%arg0: i32) -> (i32, i32, i32) {
    %c0_i32 = arith.constant 0 : i32
    %c0_i32_0 = arith.constant 0 : i32
    %c0_i32_1 = arith.constant 0 : i32
    return %arg0, %c0_i32, %c0_i32_0 : i32, i32, i32
  }
  func.func @transform_1(%arg0: i32) -> (i32, i32, i32) {
    %c0_i32 = arith.constant 0 : i32
    %c0_i32_0 = arith.constant 0 : i32
    %c0_i32_1 = arith.constant 0 : i32
    %c0_i32_2 = arith.constant 0 : i32
    return %c0_i32, %c0_i32_0, %c0_i32_1 : i32, i32, i32
  }
  func.func @transform_2(%arg0: i32) -> (i32, i32, i32) {
    %c0_i32 = arith.constant 0 : i32
    %c0_i32_0 = arith.constant 0 : i32
    %c0_i32_1 = arith.constant 0 : i32
    %c0_i32_2 = arith.constant 0 : i32
    return %c0_i32, %c0_i32_0, %c0_i32_1 : i32, i32, i32
  }
  func.func @transform_3(%arg0: i32) -> (i32, i32, i32) {
    %c0_i32 = arith.constant 0 : i32
    %c0_i32_0 = arith.constant 0 : i32
    %c0_i32_1 = arith.constant 0 : i32
    %c0_i32_2 = arith.constant 0 : i32
    return %c0_i32, %c0_i32_0, %c0_i32_1 : i32, i32, i32
  }
  func.func @transform_4(%arg0: i32) -> (i32, i32, i32) {
    %c0_i32 = arith.constant 0 : i32
    %c0_i32_0 = arith.constant 0 : i32
    %c0_i32_1 = arith.constant 0 : i32
    %c0_i32_2 = arith.constant 0 : i32
    return %c0_i32, %c0_i32_0, %c0_i32_1 : i32, i32, i32
  }
  func.func @transform_5(%arg0: i32) -> (i32, i32, i32) {
    %c0_i32 = arith.constant 0 : i32
    %c0_i32_0 = arith.constant 0 : i32
    %c0_i32_1 = arith.constant 0 : i32
    %c0_i32_2 = arith.constant 0 : i32
    return %c0_i32, %c0_i32_0, %c0_i32_1 : i32, i32, i32
  }
  func.func @transform_6(%arg0: i32) -> (i32, i32) {
    %c0_i32 = arith.constant 0 : i32
    %c0_i32_0 = arith.constant 0 : i32
    %c0_i32_1 = arith.constant 0 : i32
    return %c0_i32, %c0_i32_0 : i32, i32
  }
  func.func @transform_7(%arg0: i32) -> (i32, i32) {
    %c0_i32 = arith.constant 0 : i32
    %c0_i32_0 = arith.constant 0 : i32
    %c0_i32_1 = arith.constant 0 : i32
    return %c0_i32, %c0_i32_0 : i32, i32
  }
  func.func @transform_8(%arg0: i32) -> (i32, i32) {
    %c0_i32 = arith.constant 0 : i32
    %c0_i32_0 = arith.constant 0 : i32
    %c0_i32_1 = arith.constant 0 : i32
    return %c0_i32, %c0_i32_0 : i32, i32
  }
  func.func @transform_9(%arg0: i32) -> (i32, i32) {
    %c0_i32 = arith.constant 0 : i32
    %c0_i32_0 = arith.constant 0 : i32
    %c0_i32_1 = arith.constant 0 : i32
    return %c0_i32, %c0_i32_0 : i32, i32
  }
  func.func @transform_10(%arg0: i32) -> (i32, i32, i32) {
    %c0_i32 = arith.constant 0 : i32
    %c0_i32_0 = arith.constant 0 : i32
    %c0_i32_1 = arith.constant 0 : i32
    return %arg0, %c0_i32, %c0_i32_0 : i32, i32, i32
  }
}

</mosaic_0001>

<bundles_post_ra>
// kernel: tpu_custom_call.1
= control target key start
LH: loop header
LB: loop body
LE: loop exit
PB: predicated region body
PF: predicated region fallthrough
CT: control target
= control target key end

     0   :  { %15 = vsyncpa [#allocation3], 0  ;;  %s9300_s0 = inlined_call_operand.vmem [shape: f32[2,32,16], index: 0, kind: input, shape index: {}]   ;;  %s9301_s1 = inlined_call_operand.vmem [shape: bf16[5,16,32], index: 1, kind: input, shape index: {}]   ;;  %s9302_s2 = inlined_call_operand.hbm [shape: bf16[20,32,32], index: 2, kind: input, shape index: {}]   ;;  %s9303_s3 = inlined_call_operand.hbm [shape: f32[5,1,32], index: 3, kind: input, shape index: {}]   ;;  %s9304_s4 = inlined_call_operand.hbm [shape: f32[5,32,32], index: 4, kind: input, shape index: {}]   ;;  %s9305_s5 = inlined_call_operand.hbm [shape: f32[5,32,32], index: 5, kind: input, shape index: {}]   ;;  %s9306_s6 = inlined_call_operand.vmem [shape: bf16[32,192], index: 6, kind: input, shape index: {}]   ;;  %s9307_s7 = inlined_call_operand.vmem [shape: f32[1,192], index: 7, kind: input, shape index: {}]   ;;  %s9308_s8 = inlined_call_operand.vmem [shape: bf16[64,128], index: 8, kind: input, shape index: {}]   ;;  %s9309_s9 = inlined_call_operand.vmem [shape: f32[1,128], index: 9, kind: input, shape index: {}]   ;;  %s9310_s10 = inlined_call_operand.hbm [shape: f32[2,32,128], index: 10, kind: output, shape index: {}]  }
   0x1   :  { %16 = vsyncpa [#allocation6], 0 }
   0x2   :  { %17 = vsyncpa [#allocation9], 0 }
   0x3   :  { %18 = vsyncpa [#allocation4], 0  ;;  %s7629_s13 = smov [#allocation5]   ;;  %s7511_s17 = scalar_lea.hbm %s9303_s3, 80 }
   0x4   :  { %s40_s14 = sshll.u32 %s7629_s13, 4  ;;  %p7512_p0 = scmp.ne.s32.totalorder %s9303_s3, %s7511_s17  ;;  %s41_s14 = int_to_ptr.vmem [resolvable:$true] %s40_s14 }
   0x5   :  { %p7515_p1 = scmp.lt.u32.totalorder %s7511_s17, %s9303_s3 }
   0x7   :  { %p7517_p2 = pnand %p7515_p1, %p7512_p0 }
   0x9   :  { %7520 = shalt.err (!%p7517_p2)
}
   0xa   :  { %s7521_s22 = scalar_lea.vmem %s41_s14, 80  ;;  %s7525_s23 = scalar_lea.vmem %s41_s14, 96 }
   0xb   :  { %p7522_p3 = scmp.ne.s32.totalorder %s41_s14, %s7521_s22  ;;  %p7526_p4 = scmp.lt.s32.totalorder %s41_s14, %s41_s14 }
   0xc   :  { %p7527_p5 = scmp.lt.s32.totalorder %s7525_s23, %s7521_s22 }
   0xe   :  { %p7528_p6 = por %p7527_p5, %p7526_p4 }
  0x10   :  { %p7529_p7 = pnand %p7528_p6, %p7522_p3 }
  0x12   :  { %7532 = shalt.err (!%p7529_p7)
}
  0x13   :  { %s7630_s24 = smov 16   ;;  %s7631_s25 = smov 1  }
  0x14   :  { %46 = dma.hbm_to_vmem [thread:$0]  %s9303_s3, 80, %s41_s14, [#allocation6], %s7630_s24, %s7630_s24, %s7631_s25  }
  0x15   :  { %s7632_s28 = smov [#allocation2]   ;;  %s7533_s12 = scalar_lea.hbm %s9302_s2, 5120 }
  0x16   :  { %s28_s29 = sshll.u32 %s7632_s28, 4  ;;  %p7534_p8 = scmp.ne.s32.totalorder %s9302_s2, %s7533_s12  ;;  %s29_s29 = int_to_ptr.vmem [resolvable:$true] %s28_s29 }
  0x17   :  { %p7537_p9 = scmp.lt.u32.totalorder %s7533_s12, %s9302_s2 }
  0x19   :  { %p7539_p10 = pnand %p7537_p9, %p7534_p8 }
  0x1b   :  { %7542 = shalt.err (!%p7539_p10)
}
  0x1c   :  { %s7543_s18 = scalar_lea.vmem %s29_s29, 5120  ;;  %p7548_p12 = scmp.lt.s32.totalorder %s29_s29, %s29_s29 }
  0x1d   :  { %p7544_p11 = scmp.ne.s32.totalorder %s29_s29, %s7543_s18  ;;  %p7549_p13 = scmp.lt.s32.totalorder %s7543_s18, %s7543_s18 }
  0x1f   :  { %p7550_p0 = por %p7549_p13, %p7548_p12 }
  0x21   :  { %p7551_p1 = pnand %p7550_p0, %p7544_p11 }
  0x23   :  { %7554 = shalt.err (!%p7551_p1)
}
  0x24   :  { %s7633_s3 = smov 64   ;;  %s7634_s14 = smov 4  }
  0x25   :  { %34 = dma.hbm_to_vmem [thread:$0]  %s9302_s2, 5120, %s29_s29, [#allocation3], %s7633_s3, %s7633_s3, %s7634_s14  }
  0x26   :  { %s7635_s21 = smov [#allocation7]   ;;  %s7555_s26 = scalar_lea.hbm %s9304_s4, 2560 }
  0x27   :  { %s52_s22 = sshll.u32 %s7635_s21, 4  ;;  %p7556_p2 = scmp.ne.s32.totalorder %s9304_s4, %s7555_s26  ;;  %s53_s22 = int_to_ptr.vmem [resolvable:$true] %s52_s22 }
  0x28   :  { %p7559_p3 = scmp.lt.u32.totalorder %s7555_s26, %s9304_s4 }
  0x2a   :  { %p7561_p4 = pnand %p7559_p3, %p7556_p2 }
  0x2c   :  { %7564 = shalt.err (!%p7561_p4)
}
  0x2d   :  { %s7565_s12 = scalar_lea.vmem %s53_s22, 2560  ;;  %p7570_p6 = scmp.lt.s32.totalorder %s53_s22, %s53_s22 }
  0x2e   :  { %p7566_p5 = scmp.ne.s32.totalorder %s53_s22, %s7565_s12  ;;  %p7571_p7 = scmp.lt.s32.totalorder %s7565_s12, %s7565_s12 }
  0x30   :  { %p7572_p8 = por %p7571_p7, %p7570_p6 }
  0x32   :  { %p7573_p9 = pnand %p7572_p8, %p7566_p5 }
  0x34   :  { %7576 = shalt.err (!%p7573_p9)
}
  0x35   :  { %s7636_s2 = smov 128   ;;  %s7637_s29 = smov 8  }
  0x36   :  { %58 = dma.hbm_to_vmem [thread:$0]  %s9304_s4, 2560, %s53_s22, [#allocation6], %s7636_s2, %s7636_s2, %s7637_s29  }
  0x37   :  { %s7638_s16 = smov [#allocation8]   ;;  %s7577_s19 = scalar_lea.hbm %s9305_s5, 2560 }
  0x38   :  { %s64_s17 = sshll.u32 %s7638_s16, 4  ;;  %p7578_p10 = scmp.ne.s32.totalorder %s9305_s5, %s7577_s19  ;;  %s65_s17 = int_to_ptr.vmem [resolvable:$true] %s64_s17 }
  0x39   :  { %p7581_p11 = scmp.lt.u32.totalorder %s7577_s19, %s9305_s5 }
  0x3b   :  { %p7583_p12 = pnand %p7581_p11, %p7578_p10 }
  0x3d   :  { %7586 = shalt.err (!%p7583_p12)
}
  0x3e   :  { %s7587_s26 = scalar_lea.vmem %s65_s17, 2560  ;;  %p7592_p0 = scmp.lt.s32.totalorder %s65_s17, %s65_s17 }
  0x3f   :  { %p7588_p13 = scmp.ne.s32.totalorder %s65_s17, %s7587_s26  ;;  %p7593_p1 = scmp.lt.s32.totalorder %s7587_s26, %s7587_s26 }
  0x41   :  { %p7594_p2 = por %p7593_p1, %p7592_p0 }
  0x43   :  { %p7595_p3 = pnand %p7594_p2, %p7588_p13 }
  0x45   :  { %7598 = shalt.err (!%p7595_p3)
}
  0x46   :  { %70 = dma.hbm_to_vmem [thread:$0]  %s9305_s5, 2560, %s65_s17, [#allocation9], %s7636_s2, %s7636_s2, %s7637_s29  }
  0x47   :  { %7621 = dma.done.wait [#allocation3], 5120  }
  0x48   :  { %7622 = vsyncadd [#allocation3], 4294962176 }
  0x49   :  { %7623 = dma.done.wait [#allocation6], 2640  }
  0x4a   :  { %7624 = vsyncadd [#allocation6], 4294964656 }
  0x4b   :  { %7625 = dma.done.wait [#allocation9], 2560  }
  0x4c   :  { %7626 = vsyncadd [#allocation9], 4294964736  ;;  %v92_v0 = vlaneseq  ;;  %vm371_vm1 = vcmask 130048   ;;  %v7308_v6 = vld [vmem:[%s9301_s1 + $0x8] sm:$0xff]   ;;  %v7777_v7 = vld [vmem:[%s9300_s0] sm:$0xff]  ;;  %vm1002_vm13 = vcmask 261120  }
  0x4d   :  { %v7782_v8 = vld [vmem:[%s9300_s0 + $0x8] sm:$0xff]  ;;  %v7787_v9 = vld [vmem:[%s9300_s0 + $0x38] sm:$0xff]  ;;  %6623 = vmatprep.subr.bf16.mxu0 %v7308_v6  ;;  %v285_v11 = vrot.slane %v7777_v7, 7  ;;  %v7798_v14 = vld [vmem:[%s9300_s0 + $0x10] sm:$0xff]  ;;  %7089 = vmatprep.subr.bf16.mxu1 %v7308_v6  ;;  %v206_v21 = vrot.slane %v7777_v7, 6  ;;  %v630_v58 = vrot.slane %v7777_v7, 1 }
  0x4e   :  { %v7759_v1 = vshrl.u32 %v92_v0, 7  ;;  %v286_v12 = vrot.slane %v7782_v8, 7  ;;  %v292_v13 = vrot.slane %v7787_v9, 7  ;;  %v7803_v15 = vld [vmem:[%s9300_s0 + $0x18] sm:$0xff]  ;;  %v7309_v16 = vld [vmem:[%s9301_s1] sm:$0xff]   ;;  %6624 = vmatpush3.bf16.msra.mxu0 %v7308_v6  ;;  %v287_v17 = vrot.slane %v7798_v14, 7  ;;  %7090 = vmatpush3.bf16.msra.mxu1 %v7308_v6 }
  0x4f   :  { %v288_v18 = vrot.slane %v7803_v15, 7  ;;  %6633 = vmatprep.subr.bf16.mxu0 %v7309_v16  ;;  %v207_v22 = vrot.slane %v7782_v8, 6  ;;  %v7821_v23 = vld [vmem:[%s9300_s0 + $0x20] sm:$0xff]  ;;  %v213_v27 = vrot.slane %v7787_v9, 6  ;;  %v7310_v32 = vld [vmem:[%s9301_s1 + $0x10] sm:$0xff]   ;;  %v7843_v34 = vld [vmem:[%s9300_s0 + $0x28] sm:$0xff] }
  0x50   :  { %v105_v2 = vand.u32 31, %v7759_v1  ;;  %v7763_v3 = vadd.s32 32, %v7759_v1  ;;  %vm214_vm0 = vcmp.lt.s32.totalorder %v7759_v1, 2  ;;  %vm293_vm2 = vcmp.lt.s32.totalorder %v7759_v1, 1  ;;  %v7863_v44 = vld [vmem:[%s9300_s0 + $0x30] sm:$0xff]  ;;  %v7311_v50 = vld [vmem:[%s9301_s1 + $0x18] sm:$0xff]  }
  0x51   :  { %v300_v19 = vsel %vm293_vm2, %v285_v11, %v286_v12  ;;  %v301_v20 = vsel %vm293_vm2, %v292_v13, %v285_v11  ;;  %v298_v25 = vsel %vm293_vm2, %v287_v17, %v288_v18  ;;  %v299_v26 = vsel %vm293_vm2, %v286_v12, %v287_v17  ;;  %s7640_s20 = smov 32   ;;  %s7642_s21 = smov 48  }
  0x52   :  { %v7766_v4 = vadd.s32 4294967294, %v105_v2  ;;  %v7768_v5 = vadd.s32 4294967295, %v105_v2  ;;  %v133_v10 = vand.u32 31, %v7763_v3  ;;  %v359_v29 = vpack.c.bf16 %v298_v25, %v299_v26  ;;  %s7643_s23 = smov 112   ;;  %s7644_s25 = smov 80  }
  0x53   :  { %v221_v30 = vsel %vm214_vm0, %v206_v21, %v207_v22  ;;  %v222_v31 = vsel %vm214_vm0, %v213_v27, %v206_v21  ;;  %v210_v35 = vrot.slane %v7821_v23, 6  ;;  %v208_v38 = vrot.slane %v7798_v14, 6 }
  0x54   :  { %vm231_vm3 = vcmp.ge.s32.totalorder %v7766_v4, 0  ;;  %vm310_vm4 = vcmp.ge.s32.totalorder %v7768_v5, 0  ;;  %v7846_v36 = vadd.s32 4294967294, %v133_v10  ;;  %v209_v39 = vrot.slane %v7803_v15, 6 }
  0x55   :  { %v350_v24 = vsel %vm310_vm4, %v301_v20, 0.0  ;;  %v271_v33 = vsel %vm231_vm3, %v222_v31, 0.0  ;;  %v211_v40 = vrot.slane %v7843_v34, 6  ;;  %v220_v43 = vsel %vm214_vm0, %v207_v22, %v208_v38 }
  0x56   :  { %v358_v28 = vpack.c.bf16 %v300_v19, %v350_v24  ;;  %v279_v37 = vpack.c.bf16 %v221_v30, %v271_v33  ;;  %v218_v41 = vsel %vm214_vm0, %v209_v39, %v210_v35  ;;  %vm235_vm5 = vcmp.ge.s32.totalorder %v7846_v36, 0  ;;  %v7312_v24 = vld [vmem:[%s9301_s1 + $0x20] sm:$0xff]  }
  0x57   :  { %v219_v42 = vsel %vm214_vm0, %v208_v38, %v209_v39  ;;  %v217_v45 = vsel %vm214_vm0, %v210_v35, %v211_v40  ;;  %v275_v46 = vsel %vm235_vm5, %v218_v41, 0.0  ;;  %v212_v48 = vrot.slane %v7863_v44, 6 }
  0x58   :  { %6625 = vmatprep.mubr.msk.bf16.mxu0 %vm371_vm1, %v358_v28  ;;  %v280_v47 = vpack.c.bf16 %v219_v42, %v220_v43  ;;  %v281_v49 = vpack.c.bf16 %v217_v45, %v275_v46  ;;  %v7874_v51 = vadd.s32 24, %v7759_v1  ;;  %v289_v52 = vrot.slane %v7821_v23, 7 }
  0x59   :  { %6626 = vmatmul.mubr.msk.bf16.vlgmr.msra.gmra.mrb[0].mxu0 %vm371_vm1, %v359_v29  ;;  %v215_v53 = vsel %vm214_vm0, %v212_v48, %v213_v27  ;;  %v216_v54 = vsel %vm214_vm0, %v211_v40, %v212_v48  ;;  %v290_v55 = vrot.slane %v7843_v34, 7  ;;  %v7886_v57 = vadd.s32 4294967295, %v133_v10 }
  0x5a   :  { %6634 = vmatpush3.bf16.msra.mxu0 %v7309_v16  ;;  %6635 = vmatprep.mubr.msk.bf16.mxu0 %vm371_vm1, %v279_v37  ;;  %v297_v56 = vsel %vm293_vm2, %v288_v18, %v289_v52  ;;  %v126_v59 = vand.u32 31, %v7874_v51  ;;  %v7891_v60 = vadd.s32 56, %v7759_v1  ;;  %v291_v61 = vrot.slane %v7863_v44, 7 }
  0x5b   :  { %6643 = vmatprep.subr.bf16.mxu0 %v7310_v32  ;;  %v282_v62 = vpack.c.bf16 %v215_v53, %v216_v54  ;;  %v631_v63 = vrot.slane %v7782_v8, 1  ;;  %v296_v0 = vsel %vm293_vm2, %v289_v52, %v290_v55  ;;  %vm314_vm6 = vcmp.ge.s32.totalorder %v7886_v57, 0 }
  0x5c   :  { %v632_v2 = vrot.slane %v7798_v14, 1  ;;  %v354_v3 = vsel %vm314_vm6, %v297_v56, 0.0  ;;  %v294_v6 = vsel %vm293_vm2, %v291_v61, %v292_v13  ;;  %v295_v10 = vsel %vm293_vm2, %v290_v55, %v291_v61 }
  0x5d   :  { %v532_v11 = vpack.c.bf16 %v7782_v8, %v7777_v7  ;;  %v360_v12 = vpack.c.bf16 %v296_v0, %v354_v3  ;;  %v361_v16 = vpack.c.bf16 %v294_v6, %v295_v10  ;;  %v633_v17 = vrot.slane %v7803_v15, 1  ;;  %v7314_v0 = vld [vmem:[#allocation2 + $0x18] sm:$0xff]  }
  0x5e   :  { %v634_v18 = vrot.slane %v7821_v23, 1  ;;  %vm638_vm7 = vcmp.lt.s32.totalorder %v7759_v1, 7  ;;  %v7916_v13 = vadd.s32 1, %v126_v59  ;;  %v635_v19 = vrot.slane %v7843_v34, 1 }
  0x5f   :  { %6629 = vmatprep.mubr.msk.bf16.mxu1 %vm371_vm1, %v360_v12  ;;  %v636_v20 = vrot.slane %v7863_v44, 1  ;;  %v154_v21 = vand.u32 31, %v7891_v60  ;;  %v533_v22 = vpack.c.bf16 %v7803_v15, %v7798_v14  ;;  %v534_v25 = vpack.c.bf16 %v7843_v34, %v7821_v23  ;;  %v6204_v12 = vld [vmem:[#allocation5] ss:$0 sm:$0xff] }
  0x60   :  { %6630 = vmatmul.mubr.msk.bf16.vlgmr.msra.gmra.mrb[0].mxu1 %vm371_vm1, %v361_v16  ;;  %vm666_vm8 = vcmp.lt.s32.totalorder %v7916_v13, 32  ;;  %v644_v26 = vsel %vm638_vm7, %v631_v63, %v632_v2  ;;  %v645_v27 = vsel %vm638_vm7, %v630_v58, %v631_v63  ;;  %v535_v28 = vpack.c.bf16 %v7787_v9, %v7863_v44  ;;  %v7313_v63 = vld [vmem:[#allocation2 + $0x10] sm:$0xff]  }
  0x61   :  { %v703_v29 = vpack.c.bf16 %v644_v26, %v645_v27  ;;  %v642_v30 = vsel %vm638_vm7, %v633_v17, %v634_v18  ;;  %v643_v31 = vsel %vm638_vm7, %v632_v2, %v633_v17  ;;  %v640_v33 = vsel %vm638_vm7, %v635_v19, %v636_v20  ;;  %6673 = vmatprep.subr.bf16.mxu1 %v7313_v63 }
  0x62   :  { %v641_v35 = vsel %vm638_vm7, %v634_v18, %v635_v19  ;;  %v637_v37 = vrot.slane %v7787_v9, 1  ;;  %v7952_v38 = vadd.s32 1, %v154_v21  ;;  %v801_v41 = vrot.slane %v7777_v7, 2  ;;  %6674 = vmatpush3.bf16.msra.mxu1 %v7313_v63 }
  0x63   :  { %v705_v40 = vpack.c.bf16 %v640_v33, %v641_v35  ;;  %v802_v43 = vrot.slane %v7782_v8, 2  ;;  %v803_v45 = vrot.slane %v7798_v14, 2  ;;  %vm809_vm10 = vcmp.lt.s32.totalorder %v7759_v1, 6  ;;  %6675 = vmatprep.subr.bf16.mxu1 %v7314_v0 }
  0x64   :  { %v646_v42 = vsel %vm638_vm7, %v637_v37, %v630_v58  ;;  %vm670_vm9 = vcmp.lt.s32.totalorder %v7952_v38, 32  ;;  %v639_v46 = vsel %vm638_vm7, %v636_v20, %v637_v37  ;;  %v805_v48 = vrot.slane %v7821_v23, 2 }
  0x65   :  { %6636 = vmatmul.mubr.msk.bf16.vlgmr.msra.gmra.mrb[0].mxu0 %vm371_vm1, %v280_v47  ;;  %v702_v7 = vsel %vm670_vm9, %v646_v42, 0.0  ;;  %v804_v47 = vrot.slane %v7803_v15, 2  ;;  %v815_v8 = vsel %vm809_vm10, %v802_v43, %v803_v45  ;;  %v816_v14 = vsel %vm809_vm10, %v801_v41, %v802_v43 }
  0x66   :  { %6639 = vmatprep.mubr.msk.bf16.mxu0 %vm371_vm1, %v281_v49  ;;  %6644 = vmatpush3.bf16.msra.mxu0 %v7310_v32  ;;  %v698_v32 = vsel %vm666_vm8, %v642_v30, 0.0  ;;  %v7975_v49 = vadd.s32 2, %v126_v59  ;;  %v874_v52 = vpack.c.bf16 %v815_v8, %v816_v14  ;;  %v806_v15 = vrot.slane %v7843_v34, 2 }
  0x67   :  { %6653 = vmatprep.subr.bf16.mxu0 %v7311_v50  ;;  %v704_v39 = vpack.c.bf16 %v698_v32, %v643_v31  ;;  %v813_v53 = vsel %vm809_vm10, %v804_v47, %v805_v48  ;;  %v807_v54 = vrot.slane %v7863_v44, 2  ;;  %v814_v23 = vsel %vm809_vm10, %v803_v45, %v804_v47  ;;  %6676 = vmatpush3.bf16.msra.mxu1 %v7314_v0 }
  0x68   :  { %vm837_vm11 = vcmp.lt.s32.totalorder %v7975_v49, 32  ;;  %v812_v56 = vsel %vm809_vm10, %v805_v48, %v806_v15  ;;  %v808_v34 = vrot.slane %v7787_v9, 2  ;;  %v7993_v58 = vadd.s32 2, %v154_v21 }
  0x69   :  { %v869_v51 = vsel %vm837_vm11, %v813_v53, 0.0  ;;  %v811_v55 = vsel %vm809_vm10, %v806_v15, %v807_v54 }
  0x6a   :  { %v875_v44 = vpack.c.bf16 %v869_v51, %v814_v23  ;;  %v876_v59 = vpack.c.bf16 %v811_v55, %v812_v56  ;;  %v817_v60 = vsel %vm809_vm10, %v808_v34, %v801_v41  ;;  %vm841_vm12 = vcmp.lt.s32.totalorder %v7993_v58, 32  ;;  %v7350_v58 = vld [vmem:[#allocation2 + $0x128] sm:$0xff]  }
  0x6b   :  { %v810_v61 = vsel %vm809_vm10, %v807_v54, %v808_v34 }
  0x6d   :  { %6640 = vmatmul.mubr.msk.bf16.gmra.mrb[4].mxu0 %vm371_vm1, %v282_v62  ;;  %v873_v62 = vsel %vm841_vm12, %v817_v60, 0.0 }
  0x6e   :  { %6645 = vmatprep.mubr.msk.bf16.mxu0 %vm371_vm1, %v532_v11  ;;  %v877_v9 = vpack.c.bf16 %v873_v62, %v810_v61  ;;  %v8005_v11 = vld [vmem:[#allocation2] sm:$0xff]  }
  0x6f   :  { %6685 = vmatprep.subr.bf16.mxu1 %v8005_v11 }
  0x75   :  { %6646 = vmatmul.mubr.msk.bf16.vlgmr.msra.gmra.mrb[0].mxu0 %vm371_vm1, %v533_v22 }
  0x76   :  { %6649 = vmatprep.mubr.msk.bf16.mxu0 %vm371_vm1, %v534_v25  ;;  %6654 = vmatpush3.bf16.msra.mxu0 %v7311_v50  ;;  %v706_v50 = vpack.c.bf16 %v702_v7, %v639_v46 }
  0x77   :  { %6663 = vmatprep.subr.bf16.mxu0 %v7312_v24 }
  0x7d   :  { %6650 = vmatmul.mubr.msk.bf16.gmra.mrb[4].mxu0 %vm371_vm1, %v535_v28 }
  0x7e   :  { %6655 = vmatprep.mubr.msk.bf16.mxu0 %vm371_vm1, %v703_v29 }
  0x85   :  { %6656 = vmatmul.mubr.msk.bf16.vlgmr.msra.gmra.mrb[0].mxu0 %vm371_vm1, %v704_v39 }
  0x86   :  { %6659 = vmatprep.mubr.msk.bf16.mxu0 %vm371_vm1, %v705_v40  ;;  %6664 = vmatpush3.bf16.msra.mxu0 %v7312_v24 }
  0x8d   :  { %6660 = vmatmul.mubr.msk.bf16.gmra.mrb[4].mxu0 %vm371_vm1, %v706_v50 }
  0x8e   :  { %6665 = vmatprep.mubr.msk.bf16.mxu0 %vm371_vm1, %v874_v52 }
  0x95   :  { %6666 = vmatmul.mubr.msk.bf16.vlgmr.msra.gmra.mrb[0].mxu0 %vm371_vm1, %v875_v44 }
  0x96   :  { %6669 = vmatprep.mubr.msk.bf16.mxu0 %vm371_vm1, %v876_v59 }
  0x9d   :  { %6670 = vmatmul.mubr.msk.bf16.gmra.mrb[4].mxu0 %vm371_vm1, %v877_v9 }
 0x133   :  { %v6631_v2 = vpop.f32.mrb[0].mxu1 }
 0x134   :  { %v434_v3 = vpop.f32.mrb[1].mxu1 }
 0x135   :  { %v6632_v6 = vpop.f32.mrb[2].mxu1 }
 0x136   :  { %v437_v10 = vpop.f32.mrb[3].mxu1 }
 0x168   :  { %v6667_v16 = vpop.f32.mrb[0].mxu0 }
 0x169   :  { %v933_v17 = vpop.f32.mrb[1].mxu0  ;;  %v980_v18 = vadd.f32 %v6667_v16, %v6204_v12 }
 0x16a   :  { %v978_v19 = vadd.f32 %v6204_v12, %v933_v17  ;;  %v6668_v20 = vpop.f32.mrb[2].mxu0 }
 0x16b   :  { %v936_v21 = vpop.f32.mrb[3].mxu0  ;;  %v981_v24 = vadd.f32 %v6668_v20, %v6204_v12  ;;  %v996_v26 = vmax.f32 %v980_v18, 0.0 }
 0x16c   :  { %v994_v22 = vmax.f32 %v978_v19, 0.0  ;;  %v979_v25 = vadd.f32 %v6204_v12, %v936_v21 }
 0x16d   :  { %v997_v29 = vmax.f32 %v981_v24, 0.0  ;;  %v1006_v37 = vsel %vm1002_vm13, %v996_v26, 0.0 }
 0x16e   :  { %v995_v27 = vmax.f32 %v979_v25, 0.0  ;;  %v1003_v28 = vsel %vm1002_vm13, %v994_v22, 0.0 }
 0x16f   :  { %v1008_v45 = vsel %vm1002_vm13, %v997_v29, 0.0 }
 0x170   :  { %v1004_v30 = vsel %vm1002_vm13, %v995_v27, 0.0  ;;  %v6671_v31 = vpop.f32.mrb[4].mxu0 }
 0x171   :  { %v1005_v32 = vadd.f32 %v1004_v30, %v1003_v28  ;;  %v7091_v33 = vadd.f32 %v6671_v31, %v6631_v2  ;;  %v949_v35 = vpop.f32.mrb[5].mxu0 }
 0x172   :  { %v7092_v39 = vadd.f32 %v949_v35, %v434_v3  ;;  %v6672_v40 = vpop.f32.mrb[6].mxu0 }
 0x173   :  { %v1007_v41 = vadd.f32 %v1006_v37, %v1005_v32  ;;  %v7093_v42 = vadd.f32 %v6672_v40, %v6632_v6  ;;  %v952_v43 = vpop.f32.mrb[7].mxu0  ;;  %v984_v46 = vadd.f32 %v7091_v33, %v6204_v12 }
 0x174   :  { %v982_v7 = vadd.f32 %v7092_v39, %v6204_v12  ;;  %v7094_v47 = vadd.f32 %v952_v43, %v437_v10 }
 0x175   :  { %v1009_v8 = vadd.f32 %v1008_v45, %v1007_v41  ;;  %v985_v48 = vadd.f32 %v7093_v42, %v6204_v12  ;;  %v1000_v53 = vmax.f32 %v984_v46, 0.0 }
 0x176   :  { %v998_v14 = vmax.f32 %v982_v7, 0.0  ;;  %v983_v50 = vadd.f32 %v7094_v47, %v6204_v12 }
 0x177   :  { %v1010_v52 = vrot.slane %v1009_v8, 4  ;;  %v1001_v51 = vmax.f32 %v985_v48, 0.0  ;;  %v1019_v44 = vsel %vm1002_vm13, %v1000_v53, 0.0 }
 0x178   :  { %v999_v15 = vmax.f32 %v983_v50, 0.0  ;;  %v1016_v23 = vsel %vm1002_vm13, %v998_v14, 0.0 }
 0x179   :  { %v1011_v54 = vadd.f32 %v1010_v52, %v1009_v8  ;;  %v1021_v61 = vsel %vm1002_vm13, %v1001_v51, 0.0 }
 0x17a   :  { %v1017_v55 = vsel %vm1002_vm13, %v999_v15, 0.0 }
 0x17b   :  { %v1012_v56 = vrot.slane %v1011_v54, 2  ;;  %v1018_v34 = vadd.f32 %v1017_v55, %v1016_v23 }
 0x17d   :  { %v1013_v59 = vadd.f32 %v1012_v56, %v1011_v54  ;;  %v1020_v60 = vadd.f32 %v1019_v44, %v1018_v34 }
 0x17f   :  { %v1014_v62 = vrot.slane %v1013_v59, 1  ;;  %v1022_v9 = vadd.f32 %v1021_v61, %v1020_v60 }
 0x181   :  { %v1015_v63 = vadd.f32 %v1014_v62, %v1013_v59  ;;  %v1023_v0 = vrot.slane %v1022_v9, 4 }
 0x183   :  { %v1030_v2 = vmul.f32 0.03125, %v1015_v63  ;;  %v1024_v3 = vadd.f32 %v1023_v0, %v1022_v9 }
 0x185   :  { %v1032_v6 = vsub.f32 %v994_v22, %v1030_v2  ;;  %v1033_v10 = vsub.f32 %v995_v27, %v1030_v2  ;;  %v1034_v12 = vsub.f32 %v996_v26, %v1030_v2  ;;  %v1035_v16 = vsub.f32 %v997_v29, %v1030_v2 }
 0x186   :  { %v1025_v17 = vrot.slane %v1024_v3, 2 }
 0x187   :  { %v1040_v18 = vmul.f32 %v1032_v6, %v1032_v6  ;;  %v1041_v19 = vmul.f32 %v1033_v10, %v1033_v10  ;;  %v1042_v20 = vmul.f32 %v1034_v12, %v1034_v12  ;;  %v1043_v24 = vmul.f32 %v1035_v16, %v1035_v16 }
 0x188   :  { %v1026_v21 = vadd.f32 %v1025_v17, %v1024_v3 }
 0x189   :  { %v1048_v25 = vsel %vm1002_vm13, %v1040_v18, 0.0  ;;  %v1049_v28 = vsel %vm1002_vm13, %v1041_v19, 0.0  ;;  %v1051_v32 = vsel %vm1002_vm13, %v1042_v20, 0.0  ;;  %v1053_v22 = vsel %vm1002_vm13, %v1043_v24, 0.0  ;;  %v987_v19 = vld [vmem:[#allocation7 + $0x8] sm:$0xff]  ;;  %v988_v20 = vld [vmem:[#allocation7 + $0x10] sm:$0xff] }
 0x18a   :  { %v1050_v30 = vadd.f32 %v1049_v28, %v1048_v25  ;;  %v1027_v31 = vrot.slane %v1026_v21, 1  ;;  %v986_v24 = vld [vmem:[#allocation7] sm:$0xff] }
 0x18c   :  { %v1052_v33 = vadd.f32 %v1051_v32, %v1050_v30  ;;  %v1028_v35 = vadd.f32 %v1027_v31, %v1026_v21  ;;  %v989_v21 = vld [vmem:[#allocation7 + $0x18] sm:$0xff]  ;;  %v991_v31 = vld [vmem:[#allocation8 + $0x8] sm:$0xff]  ;;  %v992_v32 = vld [vmem:[#allocation8 + $0x10] sm:$0xff] }
 0x18e   :  { %v1054_v26 = vadd.f32 %v1053_v22, %v1052_v33  ;;  %v1031_v27 = vmul.f32 0.03125, %v1028_v35  ;;  %v993_v33 = vld [vmem:[#allocation8 + $0x18] sm:$0xff]  ;;  %v990_v22 = vld [vmem:[#allocation8] sm:$0xff] }
 0x190   :  { %v1055_v29 = vrot.slane %v1054_v26, 4  ;;  %v1036_v37 = vsub.f32 %v998_v14, %v1031_v27  ;;  %v1037_v39 = vsub.f32 %v999_v15, %v1031_v27  ;;  %v1038_v40 = vsub.f32 %v1000_v53, %v1031_v27 }
 0x191   :  { %v1039_v41 = vsub.f32 %v1001_v51, %v1031_v27 }
 0x192   :  { %v1056_v42 = vadd.f32 %v1055_v29, %v1054_v26  ;;  %v1044_v43 = vmul.f32 %v1036_v37, %v1036_v37  ;;  %v1045_v45 = vmul.f32 %v1037_v39, %v1037_v39  ;;  %v1046_v46 = vmul.f32 %v1038_v40, %v1038_v40 }
 0x193   :  { %v1047_v47 = vmul.f32 %v1039_v41, %v1039_v41 }
 0x194   :  { %v1057_v7 = vrot.slane %v1056_v42, 2  ;;  %v1061_v8 = vsel %vm1002_vm13, %v1044_v43, 0.0  ;;  %v1062_v48 = vsel %vm1002_vm13, %v1045_v45, 0.0  ;;  %v1064_v54 = vsel %vm1002_vm13, %v1046_v46, 0.0 }
 0x195   :  { %v1063_v50 = vadd.f32 %v1062_v48, %v1061_v8  ;;  %v1066_v14 = vsel %vm1002_vm13, %v1047_v47, 0.0 }
 0x196   :  { %v1058_v52 = vadd.f32 %v1057_v7, %v1056_v42 }
 0x197   :  { %v1065_v23 = vadd.f32 %v1064_v54, %v1063_v50 }
 0x198   :  { %v1059_v55 = vrot.slane %v1058_v52, 1 }
 0x199   :  { %v1067_v53 = vadd.f32 %v1066_v14, %v1065_v23 }
 0x19a   :  { %v1060_v15 = vadd.f32 %v1059_v55, %v1058_v52 }
 0x19b   :  { %v1068_v51 = vrot.slane %v1067_v53, 4 }
 0x19c   :  { %v1074_v56 = vmul.f32 0.03125, %v1060_v15 }
 0x19d   :  { %v1069_v34 = vadd.f32 %v1068_v51, %v1067_v53 }
 0x19e   :  { %v1076_v44 = vadd.f32 1e-05, %v1074_v56 }
 0x19f   :  { %v1070_v59 = vrot.slane %v1069_v34, 2 }
 0x1a0   :  { %7363 = vrsqrt.f32 %v1076_v44 }
 0x1a1   :  { %v1071_v60 = vadd.f32 %v1070_v59, %v1069_v34 }
 0x1a3   :  { %v1072_v61 = vrot.slane %v1071_v60, 1 }
 0x1a5   :  { %v1073_v62 = vadd.f32 %v1072_v61, %v1071_v60 }
 0x1a7   :  { %v1075_v9 = vmul.f32 0.03125, %v1073_v62 }
 0x1a9   :  { %v1077_v63 = vadd.f32 1e-05, %v1075_v9  ;;  %v7316_v9 = vld [vmem:[#allocation2 + $0x8] sm:$0xff]  }
 0x1aa   :  { %v7364_v0 = vpop.eup %7363 }
 0x1ab   :  { %v1080_v2 = vmul.f32 %v7364_v0, %v1032_v6  ;;  %v1081_v3 = vmul.f32 %v7364_v0, %v1033_v10  ;;  %v1082_v17 = vmul.f32 %v7364_v0, %v1034_v12  ;;  %v1083_v18 = vmul.f32 %v7364_v0, %v1035_v16 }
 0x1ac   :  { %7365 = vrsqrt.f32 %v1077_v63 }
 0x1ad   :  { %v1089_v25 = vmul.f32 %v1081_v3, %v987_v19  ;;  %v1090_v28 = vmul.f32 %v1082_v17, %v988_v20  ;;  %v1091_v30 = vmul.f32 %v1083_v18, %v989_v21  ;;  %v1088_v35 = vmul.f32 %v1080_v2, %v986_v24  ;;  %v7317_v18 = vld [vmem:[#allocation2 + $0x20] sm:$0xff]  }
 0x1af   :  { %v8024_v27 = vadd.f32 %v1089_v25, %v991_v31  ;;  %v8026_v6 = vadd.f32 %v1090_v28, %v992_v32  ;;  %v8028_v10 = vadd.f32 %v1091_v30, %v993_v33  ;;  %v8030_v43 = vadd.f32 %v1088_v35, %v990_v22 }
 0x1b1   :  { %v1139_v47 = vrot.slane %v8024_v27, 7  ;;  %v1140_v8 = vrot.slane %v8026_v6, 7  ;;  %v1141_v48 = vrot.slane %v8028_v10, 7  ;;  %v1106_v2 = vrot.slane %v8030_v43, 6 }
 0x1b2   :  { %v1107_v17 = vrot.slane %v8024_v27, 6  ;;  %v1108_v28 = vrot.slane %v8026_v6, 6 }
 0x1b3   :  { %v1150_v55 = vsel %vm293_vm2, %v1140_v8, %v1141_v48  ;;  %v1151_v15 = vsel %vm293_vm2, %v1139_v47, %v1140_v8 }
 0x1b4   :  { %v1163_v62 = vpack.c.bf16 %v1150_v55, %v1151_v15  ;;  %v1120_v25 = vsel %vm214_vm0, %v1106_v2, %v1107_v17  ;;  %v1119_v35 = vsel %vm214_vm0, %v1107_v17, %v1108_v28  ;;  %v1457_v55 = vrot.slane %v8026_v6, 1 }
 0x1b6   :  { %v7366_v26 = vpop.eup %7365 }
 0x1b7   :  { %v1084_v12 = vmul.f32 %v7366_v26, %v1036_v37  ;;  %v1085_v16 = vmul.f32 %v7366_v26, %v1037_v39  ;;  %v1086_v29 = vmul.f32 %v7366_v26, %v1038_v40  ;;  %v1087_v42 = vmul.f32 %v7366_v26, %v1039_v41 }
 0x1b8   :  { %v1138_v39 = vrot.slane %v8030_v43, 7 }
 0x1b9   :  { %v1092_v45 = vmul.f32 %v1084_v12, %v986_v24  ;;  %v1093_v46 = vmul.f32 %v1085_v16, %v987_v19  ;;  %v1095_v7 = vmul.f32 %v1087_v42, %v989_v21  ;;  %v1094_v50 = vmul.f32 %v1086_v29, %v988_v20  ;;  %v7318_v29 = vld [vmem:[#allocation2 + $0x28] sm:$0xff]  }
 0x1ba   :  { %v1152_v56 = vsel %vm293_vm2, %v1138_v39, %v1139_v47 }
 0x1bb   :  { %v8035_v52 = vadd.f32 %v1092_v45, %v990_v22  ;;  %v8037_v54 = vadd.f32 %v1093_v46, %v991_v31  ;;  %v8039_v37 = vadd.f32 %v1095_v7, %v993_v33  ;;  %v8047_v14 = vadd.f32 %v1094_v50, %v992_v32  ;;  %v7319_v46 = vld [vmem:[#allocation2 + $0x30] sm:$0xff]  }
 0x1bc   :  { %v1109_v31 = vrot.slane %v8028_v10, 6  ;;  %v1350_v50 = vpack.c.bf16 %v8028_v10, %v8026_v6 }
 0x1bd   :  { %v1145_v40 = vrot.slane %v8039_v37, 7  ;;  %v1142_v41 = vrot.slane %v8035_v52, 7  ;;  %v1143_v23 = vrot.slane %v8037_v54, 7  ;;  %v1113_v61 = vrot.slane %v8039_v37, 6 }
 0x1be   :  { %v1144_v0 = vrot.slane %v8047_v14, 7  ;;  %v1110_v24 = vrot.slane %v8035_v52, 6  ;;  %v1111_v32 = vrot.slane %v8037_v54, 6  ;;  %v1118_v22 = vsel %vm214_vm0, %v1108_v28, %v1109_v31 }
 0x1bf   :  { %v1153_v53 = vsel %vm293_vm2, %v1145_v40, %v1138_v39  ;;  %v1149_v51 = vsel %vm293_vm2, %v1141_v48, %v1142_v41  ;;  %v1148_v44 = vsel %vm293_vm2, %v1142_v41, %v1143_v23  ;;  %v1121_v3 = vsel %vm214_vm0, %v1113_v61, %v1106_v2  ;;  %v7320_v39 = vld [vmem:[#allocation2 + $0x38] sm:$0xff]  }
 0x1c0   :  { %v1154_v34 = vsel %vm310_vm4, %v1153_v53, 0.0  ;;  %v1158_v59 = vsel %vm314_vm6, %v1149_v51, 0.0  ;;  %v1146_v19 = vsel %vm293_vm2, %v1144_v0, %v1145_v40  ;;  %v1147_v20 = vsel %vm293_vm2, %v1143_v23, %v1144_v0  ;;  %v7321_v53 = vld [vmem:[#allocation2 + $0x40] sm:$0xff]  }
 0x1c1   :  { %v1162_v60 = vpack.c.bf16 %v1152_v56, %v1154_v34  ;;  %v1164_v63 = vpack.c.bf16 %v1148_v44, %v1158_v59  ;;  %v1122_v21 = vsel %vm231_vm3, %v1121_v3, 0.0  ;;  %v1117_v33 = vsel %vm214_vm0, %v1109_v31, %v1110_v24 }
 0x1c2   :  { %v1130_v30 = vpack.c.bf16 %v1120_v25, %v1122_v21  ;;  %v1116_v26 = vsel %vm214_vm0, %v1110_v24, %v1111_v32  ;;  %v1126_v12 = vsel %vm235_vm5, %v1117_v33, 0.0  ;;  %v1131_v16 = vpack.c.bf16 %v1118_v22, %v1119_v35 }
 0x1c3   :  { %6677 = vmatprep.mubr.msk.bf16.mxu1 %vm1002_vm13, %v1162_v60  ;;  %v1132_v42 = vpack.c.bf16 %v1116_v26, %v1126_v12  ;;  %v1112_v45 = vrot.slane %v8047_v14, 6  ;;  %v1349_v48 = vpack.c.bf16 %v8024_v27, %v8030_v43  ;;  %v1351_v40 = vpack.c.bf16 %v8037_v54, %v8035_v52 }
 0x1c4   :  { %6678 = vmatmul.mubr.msk.bf16.vlgmr.msra.gmra.mrb[4].mxu1 %vm1002_vm13, %v1163_v62  ;;  %v1455_v41 = vrot.slane %v8030_v43, 1  ;;  %v1456_v23 = vrot.slane %v8024_v27, 1  ;;  %v1459_v56 = vrot.slane %v8035_v52, 1  ;;  %v1352_v34 = vpack.c.bf16 %v8039_v37, %v8047_v14 }
 0x1c5   :  { %6681 = vmatprep.mubr.msk.bf16.mxu1 %vm1002_vm13, %v1164_v63  ;;  %6686 = vmatpush3.bf16.msra.mxu1 %v8005_v11  ;;  %v1165_v11 = vpack.c.bf16 %v1146_v19, %v1147_v20  ;;  %v1114_v7 = vsel %vm214_vm0, %v1112_v45, %v1113_v61  ;;  %v1115_v47 = vsel %vm214_vm0, %v1111_v32, %v1112_v45  ;;  %v1458_v44 = vrot.slane %v8028_v10, 1 }
 0x1c6   :  { %6687 = vmatprep.subr.bf16.mxu1 %v7316_v9  ;;  %v1133_v8 = vpack.c.bf16 %v1114_v7, %v1115_v47  ;;  %v1468_v15 = vsel %vm638_vm7, %v1456_v23, %v1457_v55  ;;  %v1469_v51 = vsel %vm638_vm7, %v1455_v41, %v1456_v23  ;;  %v1460_v61 = vrot.slane %v8037_v54, 1  ;;  %v7324_v23 = vld [vmem:[#allocation2 + $0x68] sm:$0xff]  }
 0x1c7   :  { %v1479_v59 = vpack.c.bf16 %v1468_v15, %v1469_v51  ;;  %v1466_v60 = vsel %vm638_vm7, %v1458_v44, %v1459_v56  ;;  %v1461_v62 = vrot.slane %v8047_v14, 1  ;;  %v1462_v2 = vrot.slane %v8039_v37, 1 }
 0x1c8   :  { %v1465_v0 = vsel %vm638_vm7, %v1459_v56, %v1460_v61  ;;  %v1467_v3 = vsel %vm638_vm7, %v1457_v55, %v1458_v44  ;;  %v1585_v21 = vrot.slane %v8030_v43, 2  ;;  %v1586_v24 = vrot.slane %v8024_v27, 2  ;;  %v8181_v55 = vld [vmem:[#allocation2 + $0x50] sm:$0xff]  }
 0x1c9   :  { %6688 = vmatpush3.bf16.msra.mxu1 %v7316_v9  ;;  %v1474_v9 = vsel %vm666_vm8, %v1466_v60, 0.0  ;;  %v1464_v63 = vsel %vm638_vm7, %v1460_v61, %v1461_v62  ;;  %v1470_v20 = vsel %vm638_vm7, %v1462_v2, %v1455_v41  ;;  %v1463_v25 = vsel %vm638_vm7, %v1461_v62, %v1462_v2  ;;  %v7323_v41 = vld [vmem:[#allocation2 + $0x60] sm:$0xff]  }
 0x1ca   :  { %6697 = vmatprep.subr.bf16.mxu1 %v7317_v18  ;;  %v1480_v17 = vpack.c.bf16 %v1474_v9, %v1467_v3  ;;  %v1481_v19 = vpack.c.bf16 %v1464_v63, %v1465_v0  ;;  %v1478_v28 = vsel %vm670_vm9, %v1470_v20, 0.0  ;;  %v1599_v31 = vsel %vm809_vm10, %v1585_v21, %v1586_v24  ;;  %6733 = vmatprep.subr.bf16.mxu0 %v7323_v41 }
 0x1cb   :  { %v1589_v32 = vrot.slane %v8035_v52, 2  ;;  %v1482_v33 = vpack.c.bf16 %v1478_v28, %v1463_v25  ;;  %v1588_v35 = vrot.slane %v8028_v10, 2  ;;  %v1590_v12 = vrot.slane %v8037_v54, 2  ;;  %6734 = vmatpush3.bf16.msra.mxu0 %v7323_v41 }
 0x1cc   :  { %6682 = vmatmul.mubr.msk.bf16.gmra.mrb[8].mxu1 %vm1002_vm13, %v1165_v11  ;;  %v1587_v11 = vrot.slane %v8026_v6, 2  ;;  %6735 = vmatprep.subr.bf16.mxu0 %v7324_v23 }
 0x1cd   :  { %6689 = vmatprep.mubr.msk.bf16.mxu1 %vm1002_vm13, %v1130_v30  ;;  %v1596_v26 = vsel %vm809_vm10, %v1588_v35, %v1589_v32  ;;  %v1595_v45 = vsel %vm809_vm10, %v1589_v32, %v1590_v12 }
 0x1ce   :  { %v1598_v30 = vsel %vm809_vm10, %v1586_v24, %v1587_v11  ;;  %v1597_v7 = vsel %vm809_vm10, %v1587_v11, %v1588_v35 }
 0x1cf   :  { %v1609_v22 = vpack.c.bf16 %v1598_v30, %v1599_v31  ;;  %6736 = vmatpush3.bf16.msra.mxu0 %v7324_v23 }
 0x1d0   :  { %6745 = vmatprep.subr.bf16.mxu0 %v8181_v55 }
 0x1d4   :  { %6690 = vmatmul.mubr.msk.bf16.vlgmr.msra.gmra.mrb[4].mxu1 %vm1002_vm13, %v1131_v16  ;;  %v1591_v16 = vrot.slane %v8047_v14, 2 }
 0x1d5   :  { %6693 = vmatprep.mubr.msk.bf16.mxu1 %vm1002_vm13, %v1132_v42  ;;  %6698 = vmatpush3.bf16.msra.mxu1 %v7317_v18  ;;  %v7322_v18 = vld [vmem:[#allocation2 + $0x48] sm:$0xff]  }
 0x1d6   :  { %6699 = vmatprep.subr.bf16.mxu1 %v7318_v29  ;;  %v1594_v42 = vsel %vm809_vm10, %v1590_v12, %v1591_v16 }
 0x1d9   :  { %6700 = vmatpush3.bf16.msra.mxu1 %v7318_v29  ;;  %v1604_v29 = vsel %vm837_vm11, %v1596_v26, 0.0 }
 0x1da   :  { %6709 = vmatprep.subr.bf16.mxu1 %v7319_v46  ;;  %v1610_v47 = vpack.c.bf16 %v1604_v29, %v1597_v7 }
 0x1dc   :  { %6694 = vmatmul.mubr.msk.bf16.gmra.mrb[8].mxu1 %vm1002_vm13, %v1133_v8  ;;  %v1611_v8 = vpack.c.bf16 %v1594_v42, %v1595_v45 }
 0x1dd   :  { %6701 = vmatprep.mubr.msk.bf16.mxu1 %vm1002_vm13, %v1349_v48 }
 0x1e4   :  { %6702 = vmatmul.mubr.msk.bf16.vlgmr.msra.gmra.mrb[4].mxu1 %vm1002_vm13, %v1350_v50 }
 0x1e5   :  { %6705 = vmatprep.mubr.msk.bf16.mxu1 %vm1002_vm13, %v1351_v40  ;;  %6710 = vmatpush3.bf16.msra.mxu1 %v7319_v46  ;;  %v1592_v46 = vrot.slane %v8039_v37, 2 }
 0x1e6   :  { %6711 = vmatprep.subr.bf16.mxu1 %v7320_v39 }
 0x1e7   :  { %v1600_v48 = vsel %vm809_vm10, %v1592_v46, %v1585_v21  ;;  %v1593_v50 = vsel %vm809_vm10, %v1591_v16, %v1592_v46 }
 0x1e9   :  { %6712 = vmatpush3.bf16.msra.mxu1 %v7320_v39  ;;  %v1608_v39 = vsel %vm841_vm12, %v1600_v48, 0.0 }
 0x1ea   :  { %6721 = vmatprep.subr.bf16.mxu1 %v7321_v53  ;;  %v1612_v40 = vpack.c.bf16 %v1608_v39, %v1593_v50 }
 0x1ec   :  { %6706 = vmatmul.mubr.msk.bf16.gmra.mrb[8].mxu1 %vm1002_vm13, %v1352_v34 }
 0x1ed   :  { %6713 = vmatprep.mubr.msk.bf16.mxu1 %vm1002_vm13, %v1479_v59 }
 0x1f4   :  { %6714 = vmatmul.mubr.msk.bf16.vlgmr.msra.gmra.mrb[4].mxu1 %vm1002_vm13, %v1480_v17 }
 0x1f5   :  { %6717 = vmatprep.mubr.msk.bf16.mxu1 %vm1002_vm13, %v1481_v19  ;;  %6722 = vmatpush3.bf16.msra.mxu1 %v7321_v53  ;;  %v6235_v53 = vld [vmem:[#allocation5 + $0x1] ss:$0 sm:$0xff] }
 0x1f6   :  { %6723 = vmatprep.subr.bf16.mxu1 %v7322_v18 }
 0x1f9   :  { %6724 = vmatpush3.bf16.msra.mxu1 %v7322_v18 }
 0x1fc   :  { %6718 = vmatmul.mubr.msk.bf16.gmra.mrb[8].mxu1 %vm1002_vm13, %v1482_v33 }
 0x1fd   :  { %6725 = vmatprep.mubr.msk.bf16.mxu1 %vm1002_vm13, %v1609_v22 }
 0x204   :  { %6726 = vmatmul.mubr.msk.bf16.vlgmr.msra.gmra.mrb[4].mxu1 %vm1002_vm13, %v1610_v47 }
 0x205   :  { %6729 = vmatprep.mubr.msk.bf16.mxu1 %vm1002_vm13, %v1611_v8 }
 0x20c   :  { %6730 = vmatmul.mubr.msk.bf16.gmra.mrb[8].mxu1 %vm1002_vm13, %v1612_v40 }
 0x2d7   :  { %v6727_v15 = vpop.f32.mrb[4].mxu1 }
 0x2d8   :  { %v1676_v51 = vpop.f32.mrb[5].mxu1  ;;  %v1723_v56 = vadd.f32 %v6727_v15, %v6235_v53 }
 0x2d9   :  { %v1721_v34 = vadd.f32 %v6235_v53, %v1676_v51  ;;  %v6728_v44 = vpop.f32.mrb[6].mxu1 }
 0x2da   :  { %v1679_v59 = vpop.f32.mrb[7].mxu1  ;;  %v1724_v61 = vadd.f32 %v6728_v44, %v6235_v53  ;;  %v1741_v9 = vmax.f32 %v1723_v56, 0.0 }
 0x2db   :  { %v1739_v60 = vmax.f32 %v1721_v34, 0.0  ;;  %v1722_v62 = vadd.f32 %v6235_v53, %v1679_v59 }
 0x2dc   :  { %v1742_v2 = vmax.f32 %v1724_v61, 0.0  ;;  %v1750_v20 = vsel %vm1002_vm13, %v1741_v9, 0.0 }
 0x2dd   :  { %v1740_v63 = vmax.f32 %v1722_v62, 0.0  ;;  %v1747_v0 = vsel %vm1002_vm13, %v1739_v60, 0.0 }
 0x2de   :  { %v1752_v30 = vsel %vm1002_vm13, %v1742_v2, 0.0 }
 0x2df   :  { %v1748_v3 = vsel %vm1002_vm13, %v1740_v63, 0.0  ;;  %v6731_v17 = vpop.f32.mrb[8].mxu1 }
 0x2e0   :  { %v1749_v18 = vadd.f32 %v1748_v3, %v1747_v0  ;;  %v1692_v19 = vpop.f32.mrb[9].mxu1  ;;  %v1727_v21 = vadd.f32 %v6731_v17, %v6235_v53 }
 0x2e1   :  { %v1725_v24 = vadd.f32 %v6235_v53, %v1692_v19  ;;  %v6732_v11 = vpop.f32.mrb[10].mxu1 }
 0x2e2   :  { %v1751_v25 = vadd.f32 %v1750_v20, %v1749_v18  ;;  %v1695_v28 = vpop.f32.mrb[11].mxu1  ;;  %v1728_v32 = vadd.f32 %v6732_v11, %v6235_v53  ;;  %v1745_v22 = vmax.f32 %v1727_v21, 0.0 }
 0x2e3   :  { %v1743_v31 = vmax.f32 %v1725_v24, 0.0  ;;  %v1726_v33 = vadd.f32 %v6235_v53, %v1695_v28 }
 0x2e4   :  { %v1753_v35 = vadd.f32 %v1752_v30, %v1751_v25  ;;  %v1746_v29 = vmax.f32 %v1728_v32, 0.0  ;;  %v1763_v7 = vsel %vm1002_vm13, %v1745_v22, 0.0 }
 0x2e5   :  { %v1744_v26 = vmax.f32 %v1726_v33, 0.0  ;;  %v1760_v16 = vsel %vm1002_vm13, %v1743_v31, 0.0 }
 0x2e6   :  { %v1754_v12 = vrot.slane %v1753_v35, 4  ;;  %v1765_v48 = vsel %vm1002_vm13, %v1746_v29, 0.0 }
 0x2e7   :  { %v1761_v42 = vsel %vm1002_vm13, %v1744_v26, 0.0 }
 0x2e8   :  { %v1755_v45 = vadd.f32 %v1754_v12, %v1753_v35  ;;  %v1762_v46 = vadd.f32 %v1761_v42, %v1760_v16 }
 0x2ea   :  { %v1756_v47 = vrot.slane %v1755_v45, 2  ;;  %v1764_v8 = vadd.f32 %v1763_v7, %v1762_v46 }
 0x2ec   :  { %v1757_v50 = vadd.f32 %v1756_v47, %v1755_v45  ;;  %v1766_v39 = vadd.f32 %v1765_v48, %v1764_v8 }
 0x2ee   :  { %v1758_v40 = vrot.slane %v1757_v50, 1  ;;  %v1767_v41 = vrot.slane %v1766_v39, 4 }
 0x2f0   :  { %v1759_v23 = vadd.f32 %v1758_v40, %v1757_v50  ;;  %v1768_v53 = vadd.f32 %v1767_v41, %v1766_v39 }
 0x2f2   :  { %v1773_v15 = vmul.f32 0.03125, %v1759_v23  ;;  %v1769_v51 = vrot.slane %v1768_v53, 2 }
 0x2f4   :  { %v1775_v56 = vsub.f32 %v1739_v60, %v1773_v15  ;;  %v1776_v34 = vsub.f32 %v1740_v63, %v1773_v15  ;;  %v1777_v44 = vsub.f32 %v1741_v9, %v1773_v15  ;;  %v1778_v59 = vsub.f32 %v1742_v2, %v1773_v15 }
 0x2f5   :  { %v1770_v61 = vadd.f32 %v1769_v51, %v1768_v53 }
 0x2f6   :  { %v1783_v62 = vmul.f32 %v1775_v56, %v1775_v56  ;;  %v1784_v0 = vmul.f32 %v1776_v34, %v1776_v34  ;;  %v1785_v3 = vmul.f32 %v1777_v44, %v1777_v44  ;;  %v1786_v18 = vmul.f32 %v1778_v59, %v1778_v59 }
 0x2f7   :  { %v1771_v17 = vrot.slane %v1770_v61, 1 }
 0x2f8   :  { %v1791_v19 = vsel %vm1002_vm13, %v1783_v62, 0.0  ;;  %v1792_v20 = vsel %vm1002_vm13, %v1784_v0, 0.0  ;;  %v1794_v11 = vsel %vm1002_vm13, %v1785_v3, 0.0  ;;  %v1796_v60 = vsel %vm1002_vm13, %v1786_v18, 0.0 }
 0x2f9   :  { %v1793_v21 = vadd.f32 %v1792_v20, %v1791_v19  ;;  %v1772_v24 = vadd.f32 %v1771_v17, %v1770_v61  ;;  %v1730_v17 = vld [vmem:[#allocation7 + $0x20] sm:$0xff]  ;;  %v1731_v19 = vld [vmem:[#allocation7 + $0x28] sm:$0xff]  ;;  %v1732_v20 = vld [vmem:[#allocation7 + $0x30] sm:$0xff] }
 0x2fb   :  { %v1795_v25 = vadd.f32 %v1794_v11, %v1793_v21  ;;  %v1774_v28 = vmul.f32 0.03125, %v1772_v24  ;;  %v1733_v21 = vld [vmem:[#allocation7 + $0x38] sm:$0xff]  ;;  %v1735_v24 = vld [vmem:[#allocation8 + $0x20] sm:$0xff] }
 0x2fd   :  { %v1797_v9 = vadd.f32 %v1796_v60, %v1795_v25  ;;  %v8196_v63 = vsub.f32 %v1743_v31, %v1774_v28  ;;  %v8198_v2 = vsub.f32 %v1744_v26, %v1774_v28  ;;  %v8200_v30 = vsub.f32 %v1745_v22, %v1774_v28 }
 0x2fe   :  { %v8202_v32 = vsub.f32 %v1746_v29, %v1774_v28 }
 0x2ff   :  { %v1798_v33 = vrot.slane %v1797_v9, 4  ;;  %v1787_v35 = vmul.f32 %v8196_v63, %v8196_v63  ;;  %v1788_v12 = vmul.f32 %v8198_v2, %v8198_v2  ;;  %v1789_v16 = vmul.f32 %v8200_v30, %v8200_v30 }
 0x300   :  { %v1790_v31 = vmul.f32 %v8202_v32, %v8202_v32 }
 0x301   :  { %v1799_v42 = vadd.f32 %v1798_v33, %v1797_v9  ;;  %v1804_v26 = vsel %vm1002_vm13, %v1787_v35, 0.0  ;;  %v1805_v22 = vsel %vm1002_vm13, %v1788_v12, 0.0  ;;  %v1807_v46 = vsel %vm1002_vm13, %v1789_v16, 0.0  ;;  %v1736_v9 = vld [vmem:[#allocation8 + $0x28] sm:$0xff]  ;;  %v1737_v33 = vld [vmem:[#allocation8 + $0x30] sm:$0xff]  ;;  %v1738_v35 = vld [vmem:[#allocation8 + $0x38] sm:$0xff] }
 0x302   :  { %v1806_v29 = vadd.f32 %v1805_v22, %v1804_v26  ;;  %v1809_v8 = vsel %vm1002_vm13, %v1790_v31, 0.0 }
 0x303   :  { %v1800_v45 = vrot.slane %v1799_v42, 2 }
 0x304   :  { %v1808_v7 = vadd.f32 %v1807_v46, %v1806_v29 }
 0x305   :  { %v1801_v47 = vadd.f32 %v1800_v45, %v1799_v42 }
 0x306   :  { %v1810_v48 = vadd.f32 %v1809_v8, %v1808_v7 }
 0x307   :  { %v1802_v50 = vrot.slane %v1801_v47, 1 }
 0x308   :  { %v1811_v39 = vrot.slane %v1810_v48, 4 }
 0x309   :  { %v1803_v40 = vadd.f32 %v1802_v50, %v1801_v47 }
 0x30a   :  { %v1812_v41 = vadd.f32 %v1811_v39, %v1810_v48 }
 0x30b   :  { %v1817_v23 = vmul.f32 0.03125, %v1803_v40 }
 0x30c   :  { %v1813_v53 = vrot.slane %v1812_v41, 2 }
 0x30d   :  { %v1819_v15 = vadd.f32 1e-05, %v1817_v23 }
 0x30e   :  { %v1814_v51 = vadd.f32 %v1813_v53, %v1812_v41 }
 0x30f   :  { %7367 = vrsqrt.f32 %v1819_v15 }
 0x310   :  { %v1815_v61 = vrot.slane %v1814_v51, 1 }
 0x312   :  { %v1816_v62 = vadd.f32 %v1815_v61, %v1814_v51 }
 0x314   :  { %v1818_v0 = vmul.f32 0.03125, %v1816_v62 }
 0x316   :  { %v1820_v3 = vadd.f32 1e-05, %v1818_v0 }
 0x318   :  { %7369 = vrsqrt.f32 %v1820_v3 }
 0x319   :  { %v7368_v18 = vpop.eup %7367 }
 0x31a   :  { %v1823_v11 = vmul.f32 %v7368_v18, %v1775_v56  ;;  %v1824_v25 = vmul.f32 %v7368_v18, %v1776_v34  ;;  %v1825_v28 = vmul.f32 %v7368_v18, %v1777_v44  ;;  %v1826_v60 = vmul.f32 %v7368_v18, %v1778_v59 }
 0x31c   :  { %v1831_v12 = vmul.f32 %v1823_v11, %v1730_v17  ;;  %v1832_v16 = vmul.f32 %v1824_v25, %v1731_v19  ;;  %v1833_v42 = vmul.f32 %v1825_v28, %v1732_v20  ;;  %v1834_v31 = vmul.f32 %v1826_v60, %v1733_v21 }
 0x31e   :  { %v8216_v26 = vadd.f32 %v1831_v12, %v1735_v24  ;;  %v8218_v22 = vadd.f32 %v1832_v16, %v1736_v9  ;;  %v8220_v29 = vadd.f32 %v1833_v42, %v1737_v33  ;;  %v8222_v45 = vadd.f32 %v1834_v31, %v1738_v35 }
 0x320   :  { %v1882_v56 = vrot.slane %v8216_v26, 7  ;;  %v1883_v34 = vrot.slane %v8218_v22, 7  ;;  %v1884_v44 = vrot.slane %v8220_v29, 7  ;;  %v1885_v59 = vrot.slane %v8222_v45, 7 }
 0x321   :  { %v1849_v46 = vrot.slane %v8216_v26, 6  ;;  %v1850_v7 = vrot.slane %v8218_v22, 6  ;;  %v1851_v47 = vrot.slane %v8220_v29, 6  ;;  %v1852_v8 = vrot.slane %v8222_v45, 6 }
 0x322   :  { %v7370_v48 = vpop.eup %7369  ;;  %v1895_v50 = vsel %vm293_vm2, %v1883_v34, %v1884_v44  ;;  %v1896_v39 = vsel %vm293_vm2, %v1882_v56, %v1883_v34  ;;  %v1894_v40 = vsel %vm293_vm2, %v1884_v44, %v1885_v59  ;;  %v2093_v41 = vpack.c.bf16 %v8218_v22, %v8216_v26 }
 0x323   :  { %v1827_v23 = vmul.f32 %v7370_v48, %v8196_v63  ;;  %v1828_v53 = vmul.f32 %v7370_v48, %v8198_v2  ;;  %v1829_v15 = vmul.f32 %v7370_v48, %v8200_v30  ;;  %v1830_v51 = vmul.f32 %v7370_v48, %v8202_v32 }
 0x324   :  { %v1907_v61 = vpack.c.bf16 %v1894_v40, %v1895_v50  ;;  %v8246_v62 = vsel %vm214_vm0, %v1850_v7, %v1851_v47  ;;  %v8250_v0 = vsel %vm214_vm0, %v1849_v46, %v1850_v7  ;;  %v8254_v3 = vsel %vm214_vm0, %v1851_v47, %v1852_v8 }
 0x325   :  { %v1835_v63 = vmul.f32 %v1827_v23, %v1730_v17  ;;  %v1836_v18 = vmul.f32 %v1828_v53, %v1731_v19  ;;  %v1837_v2 = vmul.f32 %v1829_v15, %v1732_v20  ;;  %v1838_v11 = vmul.f32 %v1830_v51, %v1733_v21 }
 0x326   :  { %v1874_v30 = vpack.c.bf16 %v8254_v3, %v8246_v62  ;;  %v2094_v32 = vpack.c.bf16 %v8222_v45, %v8220_v29  ;;  %v2199_v25 = vrot.slane %v8216_v26, 1  ;;  %v2200_v28 = vrot.slane %v8218_v22, 1  ;;  %v7331_v62 = vld [vmem:[#allocation2 + $0x90] sm:$0xff]  }
 0x327   :  { %v8262_v60 = vadd.f32 %v1835_v63, %v1735_v24  ;;  %v8264_v12 = vadd.f32 %v1836_v18, %v1736_v9  ;;  %v8266_v16 = vadd.f32 %v1837_v2, %v1737_v33  ;;  %v8268_v17 = vadd.f32 %v1838_v11, %v1738_v35  ;;  %v7326_v11 = vld [vmem:[#allocation2 + $0x58] sm:$0xff]  }
 0x328   :  { %v2201_v19 = vrot.slane %v8220_v29, 1  ;;  %v2202_v20 = vrot.slane %v8222_v45, 1  ;;  %v8276_v21 = vsel %vm638_vm7, %v2199_v25, %v2200_v28  ;;  %v2329_v42 = vrot.slane %v8216_v26, 2  ;;  %v7332_v26 = vld [vmem:[#allocation2 + $0x98] sm:$0xff]  }
 0x329   :  { %v1889_v24 = vrot.slane %v8268_v17, 7  ;;  %v1886_v9 = vrot.slane %v8262_v60, 7  ;;  %v1887_v33 = vrot.slane %v8264_v12, 7  ;;  %v1888_v35 = vrot.slane %v8266_v16, 7 }
 0x32a   :  { %v1856_v31 = vrot.slane %v8268_v17, 6  ;;  %v1853_v34 = vrot.slane %v8262_v60, 6  ;;  %v1854_v44 = vrot.slane %v8264_v12, 6  ;;  %v1855_v7 = vrot.slane %v8266_v16, 6 }
 0x32b   :  { %v1897_v47 = vsel %vm293_vm2, %v1889_v24, %v1882_v56  ;;  %v1892_v48 = vsel %vm293_vm2, %v1886_v9, %v1887_v33  ;;  %v1893_v50 = vsel %vm293_vm2, %v1885_v59, %v1886_v9  ;;  %v1890_v40 = vsel %vm293_vm2, %v1888_v35, %v1889_v24 }
 0x32c   :  { %v1898_v23 = vsel %vm310_vm4, %v1897_v47, 0.0  ;;  %v1902_v53 = vsel %vm314_vm6, %v1893_v50, 0.0  ;;  %v1891_v15 = vsel %vm293_vm2, %v1887_v33, %v1888_v35  ;;  %v1864_v56 = vsel %vm214_vm0, %v1856_v31, %v1849_v46  ;;  %v7327_v50 = vld [vmem:[#allocation2 + $0x70] sm:$0xff]  }
 0x32d   :  { %v1906_v51 = vpack.c.bf16 %v1896_v39, %v1898_v23  ;;  %v1908_v63 = vpack.c.bf16 %v1892_v48, %v1902_v53  ;;  %v1909_v18 = vpack.c.bf16 %v1890_v40, %v1891_v15  ;;  %v1865_v59 = vsel %vm231_vm3, %v1864_v56, 0.0 }
 0x32e   :  { %v1873_v2 = vpack.c.bf16 %v8250_v0, %v1865_v59  ;;  %v1859_v24 = vsel %vm214_vm0, %v1853_v34, %v1854_v44  ;;  %v1860_v9 = vsel %vm214_vm0, %v1852_v8, %v1853_v34  ;;  %v8312_v33 = vsel %vm214_vm0, %v1855_v7, %v1856_v31 }
 0x32f   :  { %6737 = vmatprep.mubr.msk.bf16.mxu0 %vm1002_vm13, %v1906_v51  ;;  %v1869_v46 = vsel %vm235_vm5, %v1860_v9, 0.0  ;;  %v1858_v39 = vsel %vm214_vm0, %v1854_v44, %v1855_v7  ;;  %v2095_v0 = vpack.c.bf16 %v8264_v12, %v8262_v60  ;;  %v2096_v35 = vpack.c.bf16 %v8268_v17, %v8266_v16 }
 0x330   :  { %6738 = vmatmul.mubr.msk.bf16.vlgmr.msra.gmra.mrb[8].mxu0 %vm1002_vm13, %v1907_v61  ;;  %v1875_v8 = vpack.c.bf16 %v1859_v24, %v1869_v46  ;;  %v1876_v31 = vpack.c.bf16 %v8312_v33, %v1858_v39  ;;  %v8327_v34 = vsel %vm638_vm7, %v2201_v19, %v2202_v20  ;;  %v8331_v47 = vsel %vm638_vm7, %v2200_v28, %v2201_v19 }
 0x331   :  { %6741 = vmatprep.mubr.msk.bf16.mxu0 %vm1002_vm13, %v1908_v63  ;;  %6746 = vmatpush3.bf16.msra.mxu0 %v8181_v55  ;;  %v2223_v44 = vpack.c.bf16 %v8331_v47, %v8276_v21  ;;  %v2203_v61 = vrot.slane %v8262_v60, 1  ;;  %v2204_v7 = vrot.slane %v8264_v12, 1  ;;  %v2205_v48 = vrot.slane %v8266_v16, 1 }
 0x332   :  { %6747 = vmatprep.subr.bf16.mxu0 %v7326_v11  ;;  %v2206_v40 = vrot.slane %v8268_v17, 1  ;;  %v2330_v28 = vrot.slane %v8218_v22, 2  ;;  %v2331_v19 = vrot.slane %v8220_v29, 2  ;;  %v2332_v23 = vrot.slane %v8222_v45, 2  ;;  %v7333_v22 = vld [vmem:[#allocation2 + $0xb0] sm:$0xff]   ;;  %v7334_v29 = vld [vmem:[#allocation2 + $0xb8] sm:$0xff]  }
 0x333   :  { %v2210_v55 = vsel %vm638_vm7, %v2202_v20, %v2203_v61  ;;  %v2208_v21 = vsel %vm638_vm7, %v2204_v7, %v2205_v48  ;;  %v2209_v53 = vsel %vm638_vm7, %v2203_v61, %v2204_v7  ;;  %v2333_v15 = vrot.slane %v8262_v60, 2  ;;  %6793 = vmatprep.subr.bf16.mxu1 %v7333_v22  ;;  %v8421_v45 = vld [vmem:[#allocation2 + $0xa0] sm:$0xff]  }
 0x334   :  { %v2218_v56 = vsel %vm666_vm8, %v2210_v55, 0.0  ;;  %v2225_v51 = vpack.c.bf16 %v2208_v21, %v2209_v53  ;;  %v2207_v63 = vsel %vm638_vm7, %v2205_v48, %v2206_v40  ;;  %v2214_v20 = vsel %vm638_vm7, %v2206_v40, %v2199_v25  ;;  %v7328_v53 = vld [vmem:[#allocation2 + $0x78] sm:$0xff]   ;;  %6794 = vmatpush3.bf16.msra.mxu1 %v7333_v22 }
 0x335   :  { %6748 = vmatpush3.bf16.msra.mxu0 %v7326_v11  ;;  %v2224_v59 = vpack.c.bf16 %v2218_v56, %v8327_v34  ;;  %v2222_v24 = vsel %vm670_vm9, %v2214_v20, 0.0  ;;  %v2341_v9 = vsel %vm809_vm10, %v2331_v19, %v2332_v23  ;;  %v2342_v33 = vsel %vm809_vm10, %v2330_v28, %v2331_v19  ;;  %6795 = vmatprep.subr.bf16.mxu1 %v7334_v29 }
 0x336   :  { %6757 = vmatprep.subr.bf16.mxu0 %v7327_v50  ;;  %v2226_v46 = vpack.c.bf16 %v2222_v24, %v2207_v63  ;;  %v2343_v39 = vsel %vm809_vm10, %v2329_v42, %v2330_v28  ;;  %v2340_v25 = vsel %vm809_vm10, %v2332_v23, %v2333_v15  ;;  %v2334_v11 = vrot.slane %v8264_v12, 2 }
 0x337   :  { %v2353_v34 = vpack.c.bf16 %v2342_v33, %v2343_v39  ;;  %v2348_v47 = vsel %vm837_vm11, %v2340_v25, 0.0  ;;  %v2335_v61 = vrot.slane %v8266_v16, 2  ;;  %v2336_v7 = vrot.slane %v8268_v17, 2 }
 0x338   :  { %6742 = vmatmul.mubr.msk.bf16.gmra.mrb[12].mxu0 %vm1002_vm13, %v1909_v18  ;;  %v2354_v48 = vpack.c.bf16 %v2348_v47, %v2341_v9  ;;  %v2339_v40 = vsel %vm809_vm10, %v2333_v15, %v2334_v11  ;;  %6796 = vmatpush3.bf16.msra.mxu1 %v7334_v29 }
 0x339   :  { %6749 = vmatprep.mubr.msk.bf16.mxu0 %vm1002_vm13, %v1873_v2  ;;  %v2338_v28 = vsel %vm809_vm10, %v2334_v11, %v2335_v61  ;;  %v2337_v19 = vsel %vm809_vm10, %v2335_v61, %v2336_v7  ;;  %v2344_v23 = vsel %vm809_vm10, %v2336_v7, %v2329_v42  ;;  %v7329_v2 = vld [vmem:[#allocation2 + $0x80] sm:$0xff]   ;;  %v7330_v42 = vld [vmem:[#allocation2 + $0x88] sm:$0xff]   ;;  %6805 = vmatprep.subr.bf16.mxu1 %v8421_v45 }
 0x33a   :  { %v2355_v55 = vpack.c.bf16 %v2338_v28, %v2339_v40  ;;  %v2352_v18 = vsel %vm841_vm12, %v2344_v23, 0.0 }
 0x33b   :  { %v2356_v21 = vpack.c.bf16 %v2352_v18, %v2337_v19 }
 0x340   :  { %6750 = vmatmul.mubr.msk.bf16.vlgmr.msra.gmra.mrb[8].mxu0 %vm1002_vm13, %v1874_v30 }
 0x341   :  { %6753 = vmatprep.mubr.msk.bf16.mxu0 %vm1002_vm13, %v1875_v8  ;;  %6758 = vmatpush3.bf16.msra.mxu0 %v7327_v50 }
 0x342   :  { %6759 = vmatprep.subr.bf16.mxu0 %v7328_v53 }
 0x345   :  { %6760 = vmatpush3.bf16.msra.mxu0 %v7328_v53 }
 0x346   :  { %6769 = vmatprep.subr.bf16.mxu0 %v7329_v2 }
 0x348   :  { %6754 = vmatmul.mubr.msk.bf16.gmra.mrb[12].mxu0 %vm1002_vm13, %v1876_v31 }
 0x349   :  { %6761 = vmatprep.mubr.msk.bf16.mxu0 %vm1002_vm13, %v2093_v41  ;;  %v6266_v41 = vld [vmem:[#allocation5 + $0x2] ss:$0 sm:$0xff] }
 0x350   :  { %6762 = vmatmul.mubr.msk.bf16.vlgmr.msra.gmra.mrb[8].mxu0 %vm1002_vm13, %v2094_v32 }
 0x351   :  { %6765 = vmatprep.mubr.msk.bf16.mxu0 %vm1002_vm13, %v2095_v0  ;;  %6770 = vmatpush3.bf16.msra.mxu0 %v7329_v2 }
 0x352   :  { %6771 = vmatprep.subr.bf16.mxu0 %v7330_v42 }
 0x355   :  { %6772 = vmatpush3.bf16.msra.mxu0 %v7330_v42 }
 0x356   :  { %6781 = vmatprep.subr.bf16.mxu0 %v7331_v62 }
 0x358   :  { %6766 = vmatmul.mubr.msk.bf16.gmra.mrb[12].mxu0 %vm1002_vm13, %v2096_v35 }
 0x359   :  { %6773 = vmatprep.mubr.msk.bf16.mxu0 %vm1002_vm13, %v2223_v44 }
 0x360   :  { %6774 = vmatmul.mubr.msk.bf16.vlgmr.msra.gmra.mrb[8].mxu0 %vm1002_vm13, %v2224_v59 }
 0x361   :  { %6777 = vmatprep.mubr.msk.bf16.mxu0 %vm1002_vm13, %v2225_v51  ;;  %6782 = vmatpush3.bf16.msra.mxu0 %v7331_v62 }
 0x362   :  { %6783 = vmatprep.subr.bf16.mxu0 %v7332_v26 }
 0x365   :  { %6784 = vmatpush3.bf16.msra.mxu0 %v7332_v26 }
 0x368   :  { %6778 = vmatmul.mubr.msk.bf16.gmra.mrb[12].mxu0 %vm1002_vm13, %v2226_v46 }
 0x369   :  { %6785 = vmatprep.mubr.msk.bf16.mxu0 %vm1002_vm13, %v2353_v34 }
 0x370   :  { %6786 = vmatmul.mubr.msk.bf16.vlgmr.msra.gmra.mrb[8].mxu0 %vm1002_vm13, %v2354_v48 }
 0x371   :  { %6789 = vmatprep.mubr.msk.bf16.mxu0 %vm1002_vm13, %v2355_v55 }
 0x378   :  { %6790 = vmatmul.mubr.msk.bf16.gmra.mrb[12].mxu0 %vm1002_vm13, %v2356_v21 }
 0x443   :  { %v6787_v3 = vpop.f32.mrb[8].mxu0 }
 0x444   :  { %v2420_v30 = vpop.f32.mrb[9].mxu0  ;;  %v2467_v32 = vadd.f32 %v6787_v3, %v6266_v41 }
 0x445   :  { %v2465_v60 = vadd.f32 %v6266_v41, %v2420_v30  ;;  %v6788_v12 = vpop.f32.mrb[10].mxu0 }
 0x446   :  { %v2423_v16 = vpop.f32.mrb[11].mxu0  ;;  %v2468_v0 = vadd.f32 %v6788_v12, %v6266_v41  ;;  %v2485_v8 = vmax.f32 %v2467_v32, 0.0 }
 0x447   :  { %v2483_v17 = vmax.f32 %v2465_v60, 0.0  ;;  %v2466_v35 = vadd.f32 %v6266_v41, %v2423_v16 }
 0x448   :  { %v2486_v50 = vmax.f32 %v2468_v0, 0.0  ;;  %v2494_v20 = vsel %vm1002_vm13, %v2485_v8, 0.0 }
 0x449   :  { %v2484_v31 = vmax.f32 %v2466_v35, 0.0  ;;  %v2491_v44 = vsel %vm1002_vm13, %v2483_v17, 0.0 }
 0x44a   :  { %v2496_v39 = vsel %vm1002_vm13, %v2486_v50, 0.0 }
 0x44b   :  { %v2492_v15 = vsel %vm1002_vm13, %v2484_v31, 0.0  ;;  %v6791_v56 = vpop.f32.mrb[12].mxu0 }
 0x44c   :  { %v2493_v51 = vadd.f32 %v2492_v15, %v2491_v44  ;;  %v2436_v63 = vpop.f32.mrb[13].mxu0  ;;  %v2471_v59 = vadd.f32 %v6791_v56, %v6266_v41 }
 0x44d   :  { %v2469_v24 = vadd.f32 %v6266_v41, %v2436_v63  ;;  %v6792_v9 = vpop.f32.mrb[14].mxu0 }
 0x44e   :  { %v2495_v33 = vadd.f32 %v2494_v20, %v2493_v51  ;;  %v2439_v46 = vpop.f32.mrb[15].mxu0  ;;  %v2472_v11 = vadd.f32 %v6792_v9, %v6266_v41  ;;  %v2489_v61 = vmax.f32 %v2471_v59, 0.0 }
 0x44f   :  { %v2487_v25 = vmax.f32 %v2469_v24, 0.0  ;;  %v2470_v34 = vadd.f32 %v6266_v41, %v2439_v46 }
 0x450   :  { %v2497_v47 = vadd.f32 %v2496_v39, %v2495_v33  ;;  %v2490_v28 = vmax.f32 %v2472_v11, 0.0  ;;  %v2507_v18 = vsel %vm1002_vm13, %v2489_v61, 0.0 }
 0x451   :  { %v2488_v7 = vmax.f32 %v2470_v34, 0.0  ;;  %v2504_v40 = vsel %vm1002_vm13, %v2487_v25, 0.0 }
 0x452   :  { %v2498_v48 = vrot.slane %v2497_v47, 4  ;;  %v2509_v2 = vsel %vm1002_vm13, %v2490_v28, 0.0 }
 0x453   :  { %v2505_v19 = vsel %vm1002_vm13, %v2488_v7, 0.0 }
 0x454   :  { %v2499_v23 = vadd.f32 %v2498_v48, %v2497_v47  ;;  %v2506_v55 = vadd.f32 %v2505_v19, %v2504_v40 }
 0x456   :  { %v2500_v21 = vrot.slane %v2499_v23, 2  ;;  %v2508_v53 = vadd.f32 %v2507_v18, %v2506_v55 }
 0x458   :  { %v2501_v42 = vadd.f32 %v2500_v21, %v2499_v23  ;;  %v2510_v62 = vadd.f32 %v2509_v2, %v2508_v53 }
 0x45a   :  { %v2502_v26 = vrot.slane %v2501_v42, 1  ;;  %v2511_v22 = vrot.slane %v2510_v62, 4 }
 0x45c   :  { %v2503_v29 = vadd.f32 %v2502_v26, %v2501_v42  ;;  %v2512_v41 = vadd.f32 %v2511_v22, %v2510_v62 }
 0x45e   :  { %v2517_v3 = vmul.f32 0.03125, %v2503_v29  ;;  %v2513_v30 = vrot.slane %v2512_v41, 2 }
 0x460   :  { %v2519_v32 = vsub.f32 %v2483_v17, %v2517_v3  ;;  %v2520_v60 = vsub.f32 %v2484_v31, %v2517_v3  ;;  %v2521_v12 = vsub.f32 %v2485_v8, %v2517_v3  ;;  %v2522_v16 = vsub.f32 %v2486_v50, %v2517_v3 }
 0x461   :  { %v2514_v0 = vadd.f32 %v2513_v30, %v2512_v41 }
 0x462   :  { %v2527_v35 = vmul.f32 %v2519_v32, %v2519_v32  ;;  %v2528_v44 = vmul.f32 %v2520_v60, %v2520_v60  ;;  %v2529_v15 = vmul.f32 %v2521_v12, %v2521_v12  ;;  %v2530_v51 = vmul.f32 %v2522_v16, %v2522_v16 }
 0x463   :  { %v2515_v56 = vrot.slane %v2514_v0, 1 }
 0x464   :  { %v2535_v63 = vsel %vm1002_vm13, %v2527_v35, 0.0  ;;  %v2536_v20 = vsel %vm1002_vm13, %v2528_v44, 0.0  ;;  %v2538_v9 = vsel %vm1002_vm13, %v2529_v15, 0.0  ;;  %v2540_v17 = vsel %vm1002_vm13, %v2530_v51, 0.0  ;;  %v2475_v51 = vld [vmem:[#allocation7 + $0x48] sm:$0xff] }
 0x465   :  { %v2537_v59 = vadd.f32 %v2536_v20, %v2535_v63  ;;  %v2516_v24 = vadd.f32 %v2515_v56, %v2514_v0  ;;  %v2476_v63 = vld [vmem:[#allocation7 + $0x50] sm:$0xff]  ;;  %v2477_v20 = vld [vmem:[#allocation7 + $0x58] sm:$0xff] }
 0x467   :  { %v2539_v33 = vadd.f32 %v2538_v9, %v2537_v59  ;;  %v2518_v46 = vmul.f32 0.03125, %v2516_v24 }
 0x469   :  { %v2541_v8 = vadd.f32 %v2540_v17, %v2539_v33  ;;  %v2523_v31 = vsub.f32 %v2487_v25, %v2518_v46  ;;  %v2524_v50 = vsub.f32 %v2488_v7, %v2518_v46  ;;  %v2525_v39 = vsub.f32 %v2489_v61, %v2518_v46 }
 0x46a   :  { %v2526_v11 = vsub.f32 %v2490_v28, %v2518_v46  ;;  %v2474_v46 = vld [vmem:[#allocation7 + $0x40] sm:$0xff] }
 0x46b   :  { %v2542_v34 = vrot.slane %v2541_v8, 4  ;;  %v2531_v47 = vmul.f32 %v2523_v31, %v2523_v31  ;;  %v2532_v48 = vmul.f32 %v2524_v50, %v2524_v50  ;;  %v2533_v40 = vmul.f32 %v2525_v39, %v2525_v39 }
 0x46c   :  { %v2534_v23 = vmul.f32 %v2526_v11, %v2526_v11 }
 0x46d   :  { %v2543_v19 = vadd.f32 %v2542_v34, %v2541_v8  ;;  %v2548_v55 = vsel %vm1002_vm13, %v2531_v47, 0.0  ;;  %v2549_v18 = vsel %vm1002_vm13, %v2532_v48, 0.0  ;;  %v2551_v2 = vsel %vm1002_vm13, %v2533_v40, 0.0  ;;  %v2480_v47 = vld [vmem:[#allocation8 + $0x48] sm:$0xff]  ;;  %v2481_v48 = vld [vmem:[#allocation8 + $0x50] sm:$0xff]  ;;  %v2482_v40 = vld [vmem:[#allocation8 + $0x58] sm:$0xff] }
 0x46e   :  { %v2550_v21 = vadd.f32 %v2549_v18, %v2548_v55  ;;  %v2553_v25 = vsel %vm1002_vm13, %v2534_v23, 0.0  ;;  %v2479_v23 = vld [vmem:[#allocation8 + $0x40] sm:$0xff] }
 0x46f   :  { %v2544_v53 = vrot.slane %v2543_v19, 2 }
 0x470   :  { %v2552_v42 = vadd.f32 %v2551_v2, %v2550_v21 }
 0x471   :  { %v2545_v62 = vadd.f32 %v2544_v53, %v2543_v19 }
 0x472   :  { %v2554_v61 = vadd.f32 %v2553_v25, %v2552_v42 }
 0x473   :  { %v2546_v7 = vrot.slane %v2545_v62, 1 }
 0x474   :  { %v2555_v28 = vrot.slane %v2554_v61, 4 }
 0x475   :  { %v2547_v26 = vadd.f32 %v2546_v7, %v2545_v62 }
 0x476   :  { %v2556_v22 = vadd.f32 %v2555_v28, %v2554_v61 }
 0x477   :  { %v2561_v29 = vmul.f32 0.03125, %v2547_v26 }
 0x478   :  { %v2557_v41 = vrot.slane %v2556_v22, 2 }
 0x479   :  { %v2563_v3 = vadd.f32 1e-05, %v2561_v29 }
 0x47a   :  { %v2558_v30 = vadd.f32 %v2557_v41, %v2556_v22 }
 0x47b   :  { %7371 = vrsqrt.f32 %v2563_v3 }
 0x47c   :  { %v2559_v0 = vrot.slane %v2558_v30, 1 }
 0x47e   :  { %v2560_v35 = vadd.f32 %v2559_v0, %v2558_v30 }
 0x480   :  { %v2562_v44 = vmul.f32 0.03125, %v2560_v35 }
 0x482   :  { %v2564_v15 = vadd.f32 1e-05, %v2562_v44 }
 0x484   :  { %7373 = vrsqrt.f32 %v2564_v15 }
 0x485   :  { %v7372_v56 = vpop.eup %7371 }
 0x486   :  { %v2567_v59 = vmul.f32 %v7372_v56, %v2519_v32  ;;  %v2568_v24 = vmul.f32 %v7372_v56, %v2520_v60  ;;  %v2569_v9 = vmul.f32 %v7372_v56, %v2521_v12  ;;  %v2570_v33 = vmul.f32 %v7372_v56, %v2522_v16 }
 0x488   :  { %v2576_v17 = vmul.f32 %v2568_v24, %v2475_v51  ;;  %v2577_v8 = vmul.f32 %v2569_v9, %v2476_v63  ;;  %v2578_v34 = vmul.f32 %v2570_v33, %v2477_v20  ;;  %v2575_v19 = vmul.f32 %v2567_v59, %v2474_v46  ;;  %v7336_v9 = vld [vmem:[#allocation2 + $0xa8] sm:$0xff]  }
 0x48a   :  { %v2584_v55 = vadd.f32 %v2576_v17, %v2480_v47  ;;  %v2585_v18 = vadd.f32 %v2577_v8, %v2481_v48  ;;  %v2586_v21 = vadd.f32 %v2578_v34, %v2482_v40  ;;  %v2583_v2 = vadd.f32 %v2575_v19, %v2479_v23 }
 0x48c   :  { %v8441_v12 = vadd.f32 %v2584_v55, %v8024_v27  ;;  %v8444_v16 = vadd.f32 %v2585_v18, %v8026_v6  ;;  %v8447_v25 = vadd.f32 %v2586_v21, %v8028_v10  ;;  %v8450_v22 = vadd.f32 %v2583_v2, %v8030_v43 }
 0x48e   :  { %v7374_v53 = vpop.eup %7373  ;;  %v2636_v27 = vrot.slane %v8444_v16, 7  ;;  %v2637_v6 = vrot.slane %v8447_v25, 7  ;;  %v2634_v43 = vrot.slane %v8450_v22, 7  ;;  %v2601_v17 = vrot.slane %v8450_v22, 6 }
 0x48f   :  { %v2571_v42 = vmul.f32 %v7374_v53, %v2523_v31  ;;  %v2572_v62 = vmul.f32 %v7374_v53, %v2524_v50  ;;  %v2573_v32 = vmul.f32 %v7374_v53, %v2525_v39  ;;  %v2574_v60 = vmul.f32 %v7374_v53, %v2526_v11 }
 0x490   :  { %v2635_v11 = vrot.slane %v8441_v12, 7  ;;  %v2602_v34 = vrot.slane %v8441_v12, 6  ;;  %v2603_v18 = vrot.slane %v8444_v16, 6  ;;  %v2604_v53 = vrot.slane %v8447_v25, 6 }
 0x491   :  { %v2579_v61 = vmul.f32 %v2571_v42, %v2474_v46  ;;  %v2580_v7 = vmul.f32 %v2572_v62, %v2475_v51  ;;  %v2581_v28 = vmul.f32 %v2573_v32, %v2476_v63  ;;  %v2582_v26 = vmul.f32 %v2574_v60, %v2477_v20 }
 0x492   :  { %v2647_v44 = vsel %vm293_vm2, %v2635_v11, %v2636_v27  ;;  %v2648_v56 = vsel %vm293_vm2, %v2634_v43, %v2635_v11  ;;  %v2615_v55 = vsel %vm214_vm0, %v2601_v17, %v2602_v34  ;;  %v2614_v62 = vsel %vm214_vm0, %v2602_v34, %v2603_v18 }
 0x493   :  { %v2587_v31 = vadd.f32 %v2579_v61, %v2479_v23  ;;  %v2588_v50 = vadd.f32 %v2580_v7, %v2480_v47  ;;  %v2590_v39 = vadd.f32 %v2582_v26, %v2482_v40  ;;  %v2589_v29 = vadd.f32 %v2581_v28, %v2481_v48  ;;  %v7337_v47 = vld [vmem:[#allocation2 + $0xc0] sm:$0xff]   ;;  %v7338_v28 = vld [vmem:[#allocation2 + $0xc8] sm:$0xff]  }
 0x494   :  { %v2613_v32 = vsel %vm214_vm0, %v2603_v18, %v2604_v53 }
 0x495   :  { %v8456_v10 = vadd.f32 %v2587_v31, %v8035_v52  ;;  %v8459_v41 = vadd.f32 %v2588_v50, %v8037_v54  ;;  %v8462_v3 = vadd.f32 %v2590_v39, %v8039_v37  ;;  %v8471_v52 = vadd.f32 %v2589_v29, %v8047_v14  ;;  %v7339_v50 = vld [vmem:[#allocation2 + $0xd0] sm:$0xff]  }
 0x496   :  { %v2646_v37 = vsel %vm293_vm2, %v2636_v27, %v2637_v6  ;;  %v2626_v7 = vpack.c.bf16 %v2613_v32, %v2614_v62  ;;  %v2846_v29 = vpack.c.bf16 %v8447_v25, %v8444_v16  ;;  %v3084_v62 = vrot.slane %v8447_v25, 2 }
 0x497   :  { %v2641_v30 = vrot.slane %v8462_v3, 7  ;;  %v2638_v0 = vrot.slane %v8456_v10, 7  ;;  %v2639_v35 = vrot.slane %v8459_v41, 7  ;;  %v2608_v59 = vrot.slane %v8462_v3, 6 }
 0x498   :  { %v2659_v24 = vpack.c.bf16 %v2646_v37, %v2647_v44  ;;  %v2640_v46 = vrot.slane %v8471_v52, 7  ;;  %v2605_v23 = vrot.slane %v8456_v10, 6  ;;  %v2606_v2 = vrot.slane %v8459_v41, 6 }
 0x499   :  { %v2649_v54 = vsel %vm293_vm2, %v2641_v30, %v2634_v43  ;;  %v2645_v15 = vsel %vm293_vm2, %v2637_v6, %v2638_v0  ;;  %v2644_v63 = vsel %vm293_vm2, %v2638_v0, %v2639_v35  ;;  %v2616_v8 = vsel %vm214_vm0, %v2608_v59, %v2601_v17  ;;  %v7340_v43 = vld [vmem:[#allocation2 + $0xd8] sm:$0xff]  }
 0x49a   :  { %v2650_v51 = vsel %vm310_vm4, %v2649_v54, 0.0  ;;  %v2654_v14 = vsel %vm314_vm6, %v2645_v15, 0.0  ;;  %v2642_v48 = vsel %vm293_vm2, %v2640_v46, %v2641_v30  ;;  %v2643_v40 = vsel %vm293_vm2, %v2639_v35, %v2640_v46  ;;  %v7341_v54 = vld [vmem:[#allocation2 + $0xe0] sm:$0xff]  }
 0x49b   :  { %v2658_v20 = vpack.c.bf16 %v2648_v56, %v2650_v51  ;;  %v2660_v33 = vpack.c.bf16 %v2644_v63, %v2654_v14  ;;  %v2617_v19 = vsel %vm231_vm3, %v2616_v8, 0.0  ;;  %v2612_v42 = vsel %vm214_vm0, %v2604_v53, %v2605_v23 }
 0x49c   :  { %v2625_v21 = vpack.c.bf16 %v2615_v55, %v2617_v19  ;;  %v2611_v60 = vsel %vm214_vm0, %v2605_v23, %v2606_v2  ;;  %v2621_v61 = vsel %vm235_vm5, %v2612_v42, 0.0  ;;  %v2607_v31 = vrot.slane %v8471_v52, 6 }
 0x49d   :  { %6797 = vmatprep.mubr.msk.bf16.mxu1 %vm1002_vm13, %v2658_v20  ;;  %v2627_v26 = vpack.c.bf16 %v2611_v60, %v2621_v61  ;;  %v2845_v6 = vpack.c.bf16 %v8441_v12, %v8450_v22  ;;  %v2847_v30 = vpack.c.bf16 %v8459_v41, %v8456_v10  ;;  %v2951_v0 = vrot.slane %v8450_v22, 1 }
 0x49e   :  { %6798 = vmatmul.mubr.msk.bf16.vlgmr.msra.gmra.mrb[12].mxu1 %vm1002_vm13, %v2659_v24  ;;  %v2609_v39 = vsel %vm214_vm0, %v2607_v31, %v2608_v59  ;;  %v2610_v11 = vsel %vm214_vm0, %v2606_v2, %v2607_v31  ;;  %v2952_v35 = vrot.slane %v8441_v12, 1  ;;  %v2953_v44 = vrot.slane %v8444_v16, 1 }
 0x49f   :  { %6801 = vmatprep.mubr.msk.bf16.mxu1 %vm1002_vm13, %v2660_v33  ;;  %6806 = vmatpush3.bf16.msra.mxu1 %v8421_v45  ;;  %v2661_v45 = vpack.c.bf16 %v2642_v48, %v2643_v40  ;;  %v2628_v27 = vpack.c.bf16 %v2609_v39, %v2610_v11  ;;  %v2955_v56 = vrot.slane %v8456_v10, 1  ;;  %v2848_v51 = vpack.c.bf16 %v8462_v3, %v8471_v52 }
 0x4a0   :  { %6807 = vmatprep.subr.bf16.mxu1 %v7336_v9  ;;  %v2964_v37 = vsel %vm638_vm7, %v2952_v35, %v2953_v44  ;;  %v2965_v15 = vsel %vm638_vm7, %v2951_v0, %v2952_v35  ;;  %v2954_v63 = vrot.slane %v8447_v25, 1  ;;  %v2956_v59 = vrot.slane %v8459_v41, 1  ;;  %v7344_v35 = vld [vmem:[#allocation2 + $0x108] sm:$0xff]  }
 0x4a1   :  { %v2975_v14 = vpack.c.bf16 %v2964_v37, %v2965_v15  ;;  %v2957_v24 = vrot.slane %v8471_v52, 1  ;;  %v2958_v17 = vrot.slane %v8462_v3, 1  ;;  %v3081_v19 = vrot.slane %v8450_v22, 2 }
 0x4a2   :  { %v2962_v20 = vsel %vm638_vm7, %v2954_v63, %v2955_v56  ;;  %v2961_v46 = vsel %vm638_vm7, %v2955_v56, %v2956_v59  ;;  %v2963_v8 = vsel %vm638_vm7, %v2953_v44, %v2954_v63  ;;  %v3082_v23 = vrot.slane %v8441_v12, 2  ;;  %v8605_v44 = vld [vmem:[#allocation2 + $0xf0] sm:$0xff]  }
 0x4a3   :  { %6808 = vmatpush3.bf16.msra.mxu1 %v7336_v9  ;;  %v2970_v9 = vsel %vm666_vm8, %v2962_v20, 0.0  ;;  %v2960_v33 = vsel %vm638_vm7, %v2956_v59, %v2957_v24  ;;  %v2966_v40 = vsel %vm638_vm7, %v2958_v17, %v2951_v0  ;;  %v2959_v55 = vsel %vm638_vm7, %v2957_v24, %v2958_v17  ;;  %v7343_v0 = vld [vmem:[#allocation2 + $0x100] sm:$0xff]  }
 0x4a4   :  { %6817 = vmatprep.subr.bf16.mxu1 %v7337_v47  ;;  %v2976_v34 = vpack.c.bf16 %v2970_v9, %v2963_v8  ;;  %v2977_v48 = vpack.c.bf16 %v2960_v33, %v2961_v46  ;;  %v2974_v18 = vsel %vm670_vm9, %v2966_v40, 0.0  ;;  %v3095_v53 = vsel %vm809_vm10, %v3081_v19, %v3082_v23  ;;  %6853 = vmatprep.subr.bf16.mxu0 %v7343_v0 }
 0x4a5   :  { %v3085_v2 = vrot.slane %v8456_v10, 2  ;;  %v2978_v42 = vpack.c.bf16 %v2974_v18, %v2959_v55  ;;  %v3086_v61 = vrot.slane %v8459_v41, 2  ;;  %6854 = vmatpush3.bf16.msra.mxu0 %v7343_v0 }
 0x4a6   :  { %6802 = vmatmul.mubr.msk.bf16.gmra.mrb[16].mxu1 %vm1002_vm13, %v2661_v45  ;;  %v3083_v45 = vrot.slane %v8444_v16, 2  ;;  %6855 = vmatprep.subr.bf16.mxu0 %v7344_v35 }
 0x4a7   :  { %6809 = vmatprep.mubr.msk.bf16.mxu1 %vm1002_vm13, %v2625_v21  ;;  %v3092_v60 = vsel %vm809_vm10, %v3084_v62, %v3085_v2  ;;  %v3091_v31 = vsel %vm809_vm10, %v3085_v2, %v3086_v61 }
 0x4a8   :  { %v3094_v21 = vsel %vm809_vm10, %v3082_v23, %v3083_v45  ;;  %v3093_v39 = vsel %vm809_vm10, %v3083_v45, %v3084_v62 }
 0x4a9   :  { %v3105_v32 = vpack.c.bf16 %v3094_v21, %v3095_v53  ;;  %6856 = vmatpush3.bf16.msra.mxu0 %v7344_v35 }
 0x4aa   :  { %6865 = vmatprep.subr.bf16.mxu0 %v8605_v44 }
 0x4ae   :  { %6810 = vmatmul.mubr.msk.bf16.vlgmr.msra.gmra.mrb[12].mxu1 %vm1002_vm13, %v2626_v7  ;;  %v3087_v7 = vrot.slane %v8471_v52, 2 }
 0x4af   :  { %6813 = vmatprep.mubr.msk.bf16.mxu1 %vm1002_vm13, %v2627_v26  ;;  %6818 = vmatpush3.bf16.msra.mxu1 %v7337_v47  ;;  %v7342_v47 = vld [vmem:[#allocation2 + $0xe8] sm:$0xff]  }
 0x4b0   :  { %6819 = vmatprep.subr.bf16.mxu1 %v7338_v28  ;;  %v3090_v26 = vsel %vm809_vm10, %v3086_v61, %v3087_v7 }
 0x4b3   :  { %6820 = vmatpush3.bf16.msra.mxu1 %v7338_v28  ;;  %v3100_v28 = vsel %vm837_vm11, %v3092_v60, 0.0 }
 0x4b4   :  { %6829 = vmatprep.subr.bf16.mxu1 %v7339_v50  ;;  %v3106_v11 = vpack.c.bf16 %v3100_v28, %v3093_v39 }
 0x4b6   :  { %6814 = vmatmul.mubr.msk.bf16.gmra.mrb[16].mxu1 %vm1002_vm13, %v2628_v27  ;;  %v3107_v27 = vpack.c.bf16 %v3090_v26, %v3091_v31 }
 0x4b7   :  { %6821 = vmatprep.mubr.msk.bf16.mxu1 %vm1002_vm13, %v2845_v6 }
 0x4be   :  { %6822 = vmatmul.mubr.msk.bf16.vlgmr.msra.gmra.mrb[12].mxu1 %vm1002_vm13, %v2846_v29 }
 0x4bf   :  { %6825 = vmatprep.mubr.msk.bf16.mxu1 %vm1002_vm13, %v2847_v30  ;;  %6830 = vmatpush3.bf16.msra.mxu1 %v7339_v50  ;;  %v3088_v50 = vrot.slane %v8462_v3, 2 }
 0x4c0   :  { %6831 = vmatprep.subr.bf16.mxu1 %v7340_v43 }
 0x4c1   :  { %v3096_v6 = vsel %vm809_vm10, %v3088_v50, %v3081_v19  ;;  %v3089_v29 = vsel %vm809_vm10, %v3087_v7, %v3088_v50 }
 0x4c3   :  { %6832 = vmatpush3.bf16.msra.mxu1 %v7340_v43  ;;  %v3104_v43 = vsel %vm841_vm12, %v3096_v6, 0.0 }
 0x4c4   :  { %6841 = vmatprep.subr.bf16.mxu1 %v7341_v54  ;;  %v3108_v30 = vpack.c.bf16 %v3104_v43, %v3089_v29 }
 0x4c6   :  { %6826 = vmatmul.mubr.msk.bf16.gmra.mrb[16].mxu1 %vm1002_vm13, %v2848_v51 }
 0x4c7   :  { %6833 = vmatprep.mubr.msk.bf16.mxu1 %vm1002_vm13, %v2975_v14 }
 0x4ce   :  { %6834 = vmatmul.mubr.msk.bf16.vlgmr.msra.gmra.mrb[12].mxu1 %vm1002_vm13, %v2976_v34 }
 0x4cf   :  { %6837 = vmatprep.mubr.msk.bf16.mxu1 %vm1002_vm13, %v2977_v48  ;;  %6842 = vmatpush3.bf16.msra.mxu1 %v7341_v54  ;;  %v6297_v54 = vld [vmem:[#allocation5 + $0x3] ss:$0 sm:$0xff] }
 0x4d0   :  { %6843 = vmatprep.subr.bf16.mxu1 %v7342_v47 }
 0x4d3   :  { %6844 = vmatpush3.bf16.msra.mxu1 %v7342_v47 }
 0x4d6   :  { %6838 = vmatmul.mubr.msk.bf16.gmra.mrb[16].mxu1 %vm1002_vm13, %v2978_v42 }
 0x4d7   :  { %6845 = vmatprep.mubr.msk.bf16.mxu1 %vm1002_vm13, %v3105_v32 }
 0x4de   :  { %6846 = vmatmul.mubr.msk.bf16.vlgmr.msra.gmra.mrb[12].mxu1 %vm1002_vm13, %v3106_v11 }
 0x4df   :  { %6849 = vmatprep.mubr.msk.bf16.mxu1 %vm1002_vm13, %v3107_v27 }
 0x4e6   :  { %6850 = vmatmul.mubr.msk.bf16.gmra.mrb[16].mxu1 %vm1002_vm13, %v3108_v30 }
 0x5b1   :  { %v6847_v37 = vpop.f32.mrb[12].mxu1 }
 0x5b2   :  { %v3172_v15 = vpop.f32.mrb[13].mxu1  ;;  %v3219_v56 = vadd.f32 %v6847_v37, %v6297_v54 }
 0x5b3   :  { %v3217_v51 = vadd.f32 %v6297_v54, %v3172_v15  ;;  %v6848_v63 = vpop.f32.mrb[14].mxu1 }
 0x5b4   :  { %v3175_v14 = vpop.f32.mrb[15].mxu1  ;;  %v3220_v59 = vadd.f32 %v6848_v63, %v6297_v54  ;;  %v3237_v9 = vmax.f32 %v3219_v56, 0.0 }
 0x5b5   :  { %v3235_v20 = vmax.f32 %v3217_v51, 0.0  ;;  %v3218_v24 = vadd.f32 %v6297_v54, %v3175_v14 }
 0x5b6   :  { %v3238_v17 = vmax.f32 %v3220_v59, 0.0  ;;  %v3246_v40 = vsel %vm1002_vm13, %v3237_v9, 0.0 }
 0x5b7   :  { %v3236_v33 = vmax.f32 %v3218_v24, 0.0  ;;  %v3243_v46 = vsel %vm1002_vm13, %v3235_v20, 0.0 }
 0x5b8   :  { %v3248_v21 = vsel %vm1002_vm13, %v3238_v17, 0.0 }
 0x5b9   :  { %v3244_v8 = vsel %vm1002_vm13, %v3236_v33, 0.0  ;;  %v6851_v34 = vpop.f32.mrb[16].mxu1 }
 0x5ba   :  { %v3245_v47 = vadd.f32 %v3244_v8, %v3243_v46  ;;  %v3188_v48 = vpop.f32.mrb[17].mxu1  ;;  %v3223_v19 = vadd.f32 %v6851_v34, %v6297_v54 }
 0x5bb   :  { %v3221_v23 = vadd.f32 %v6297_v54, %v3188_v48  ;;  %v6852_v45 = vpop.f32.mrb[18].mxu1 }
 0x5bc   :  { %v3247_v55 = vadd.f32 %v3246_v40, %v3245_v47  ;;  %v3191_v18 = vpop.f32.mrb[19].mxu1  ;;  %v3224_v2 = vadd.f32 %v6852_v45, %v6297_v54  ;;  %v3241_v32 = vmax.f32 %v3223_v19, 0.0 }
 0x5bd   :  { %v3239_v53 = vmax.f32 %v3221_v23, 0.0  ;;  %v3222_v42 = vadd.f32 %v6297_v54, %v3191_v18 }
 0x5be   :  { %v3249_v62 = vadd.f32 %v3248_v21, %v3247_v55  ;;  %v3242_v28 = vmax.f32 %v3224_v2, 0.0  ;;  %v3259_v39 = vsel %vm1002_vm13, %v3241_v32, 0.0 }
 0x5bf   :  { %v3240_v60 = vmax.f32 %v3222_v42, 0.0  ;;  %v3256_v7 = vsel %vm1002_vm13, %v3239_v53, 0.0 }
 0x5c0   :  { %v3250_v61 = vrot.slane %v3249_v62, 4  ;;  %v3261_v6 = vsel %vm1002_vm13, %v3242_v28, 0.0 }
 0x5c1   :  { %v3257_v26 = vsel %vm1002_vm13, %v3240_v60, 0.0 }
 0x5c2   :  { %v3251_v31 = vadd.f32 %v3250_v61, %v3249_v62  ;;  %v3258_v50 = vadd.f32 %v3257_v26, %v3256_v7 }
 0x5c4   :  { %v3252_v11 = vrot.slane %v3251_v31, 2  ;;  %v3260_v27 = vadd.f32 %v3259_v39, %v3258_v50 }
 0x5c6   :  { %v3253_v29 = vadd.f32 %v3252_v11, %v3251_v31  ;;  %v3262_v43 = vadd.f32 %v3261_v6, %v3260_v27 }
 0x5c8   :  { %v3254_v30 = vrot.slane %v3253_v29, 1  ;;  %v3263_v0 = vrot.slane %v3262_v43, 4 }
 0x5ca   :  { %v3255_v35 = vadd.f32 %v3254_v30, %v3253_v29  ;;  %v3264_v54 = vadd.f32 %v3263_v0, %v3262_v43 }
 0x5cc   :  { %v3269_v37 = vmul.f32 0.03125, %v3255_v35  ;;  %v3265_v15 = vrot.slane %v3264_v54, 2 }
 0x5ce   :  { %v3271_v56 = vsub.f32 %v3235_v20, %v3269_v37  ;;  %v3272_v51 = vsub.f32 %v3236_v33, %v3269_v37  ;;  %v3273_v63 = vsub.f32 %v3237_v9, %v3269_v37  ;;  %v3274_v14 = vsub.f32 %v3238_v17, %v3269_v37 }
 0x5cf   :  { %v3266_v59 = vadd.f32 %v3265_v15, %v3264_v54 }
 0x5d0   :  { %v3279_v24 = vmul.f32 %v3271_v56, %v3271_v56  ;;  %v3280_v46 = vmul.f32 %v3272_v51, %v3272_v51  ;;  %v3281_v8 = vmul.f32 %v3273_v63, %v3273_v63  ;;  %v3282_v47 = vmul.f32 %v3274_v14, %v3274_v14 }
 0x5d1   :  { %v3267_v34 = vrot.slane %v3266_v59, 1 }
 0x5d2   :  { %v3287_v48 = vsel %vm1002_vm13, %v3279_v24, 0.0  ;;  %v3288_v40 = vsel %vm1002_vm13, %v3280_v46, 0.0  ;;  %v3290_v45 = vsel %vm1002_vm13, %v3281_v8, 0.0  ;;  %v3292_v20 = vsel %vm1002_vm13, %v3282_v47, 0.0 }
 0x5d3   :  { %v3289_v19 = vadd.f32 %v3288_v40, %v3287_v48  ;;  %v3268_v23 = vadd.f32 %v3267_v34, %v3266_v59  ;;  %v3226_v34 = vld [vmem:[#allocation7 + $0x60] sm:$0xff]  ;;  %v3227_v48 = vld [vmem:[#allocation7 + $0x68] sm:$0xff]  ;;  %v3228_v40 = vld [vmem:[#allocation7 + $0x70] sm:$0xff] }
 0x5d5   :  { %v3291_v55 = vadd.f32 %v3290_v45, %v3289_v19  ;;  %v3270_v18 = vmul.f32 0.03125, %v3268_v23  ;;  %v3229_v19 = vld [vmem:[#allocation7 + $0x78] sm:$0xff]  ;;  %v3231_v23 = vld [vmem:[#allocation8 + $0x60] sm:$0xff] }
 0x5d7   :  { %v3293_v9 = vadd.f32 %v3292_v20, %v3291_v55  ;;  %v8620_v33 = vsub.f32 %v3239_v53, %v3270_v18  ;;  %v8622_v17 = vsub.f32 %v3240_v60, %v3270_v18  ;;  %v8624_v21 = vsub.f32 %v3241_v32, %v3270_v18 }
 0x5d8   :  { %v8626_v2 = vsub.f32 %v3242_v28, %v3270_v18 }
 0x5d9   :  { %v3294_v42 = vrot.slane %v3293_v9, 4  ;;  %v3283_v62 = vmul.f32 %v8620_v33, %v8620_v33  ;;  %v3284_v61 = vmul.f32 %v8622_v17, %v8622_v17  ;;  %v3285_v7 = vmul.f32 %v8624_v21, %v8624_v21 }
 0x5da   :  { %v3286_v53 = vmul.f32 %v8626_v2, %v8626_v2 }
 0x5db   :  { %v3295_v26 = vadd.f32 %v3294_v42, %v3293_v9  ;;  %v3300_v60 = vsel %vm1002_vm13, %v3283_v62, 0.0  ;;  %v3301_v32 = vsel %vm1002_vm13, %v3284_v61, 0.0  ;;  %v3303_v50 = vsel %vm1002_vm13, %v3285_v7, 0.0  ;;  %v3232_v9 = vld [vmem:[#allocation8 + $0x68] sm:$0xff]  ;;  %v3233_v42 = vld [vmem:[#allocation8 + $0x70] sm:$0xff]  ;;  %v3234_v62 = vld [vmem:[#allocation8 + $0x78] sm:$0xff] }
 0x5dc   :  { %v3302_v28 = vadd.f32 %v3301_v32, %v3300_v60  ;;  %v3305_v27 = vsel %vm1002_vm13, %v3286_v53, 0.0 }
 0x5dd   :  { %v3296_v31 = vrot.slane %v3295_v26, 2 }
 0x5de   :  { %v3304_v39 = vadd.f32 %v3303_v50, %v3302_v28 }
 0x5df   :  { %v3297_v11 = vadd.f32 %v3296_v31, %v3295_v26 }
 0x5e0   :  { %v3306_v6 = vadd.f32 %v3305_v27, %v3304_v39 }
 0x5e1   :  { %v3298_v29 = vrot.slane %v3297_v11, 1 }
 0x5e2   :  { %v3307_v43 = vrot.slane %v3306_v6, 4 }
 0x5e3   :  { %v3299_v30 = vadd.f32 %v3298_v29, %v3297_v11 }
 0x5e4   :  { %v3308_v0 = vadd.f32 %v3307_v43, %v3306_v6 }
 0x5e5   :  { %v3313_v35 = vmul.f32 0.03125, %v3299_v30 }
 0x5e6   :  { %v3309_v54 = vrot.slane %v3308_v0, 2 }
 0x5e7   :  { %v3315_v37 = vadd.f32 1e-05, %v3313_v35 }
 0x5e8   :  { %v3310_v15 = vadd.f32 %v3309_v54, %v3308_v0 }
 0x5e9   :  { %7375 = vrsqrt.f32 %v3315_v37 }
 0x5ea   :  { %v3311_v59 = vrot.slane %v3310_v15, 1 }
 0x5ec   :  { %v3312_v24 = vadd.f32 %v3311_v59, %v3310_v15 }
 0x5ee   :  { %v3314_v46 = vmul.f32 0.03125, %v3312_v24 }
 0x5f0   :  { %v3316_v8 = vadd.f32 1e-05, %v3314_v46 }
 0x5f2   :  { %7377 = vrsqrt.f32 %v3316_v8 }
 0x5f3   :  { %v7376_v47 = vpop.eup %7375 }
 0x5f4   :  { %v3319_v45 = vmul.f32 %v7376_v47, %v3271_v56  ;;  %v3320_v55 = vmul.f32 %v7376_v47, %v3272_v51  ;;  %v3321_v18 = vmul.f32 %v7376_v47, %v3273_v63  ;;  %v3322_v20 = vmul.f32 %v7376_v47, %v3274_v14 }
 0x5f6   :  { %v3327_v61 = vmul.f32 %v3319_v45, %v3226_v34  ;;  %v3328_v7 = vmul.f32 %v3320_v55, %v3227_v48  ;;  %v3329_v26 = vmul.f32 %v3321_v18, %v3228_v40  ;;  %v3330_v53 = vmul.f32 %v3322_v20, %v3229_v19 }
 0x5f8   :  { %v8640_v60 = vadd.f32 %v3327_v61, %v3231_v23  ;;  %v8642_v32 = vadd.f32 %v3328_v7, %v3232_v9  ;;  %v8644_v28 = vadd.f32 %v3329_v26, %v3233_v42  ;;  %v8646_v31 = vadd.f32 %v3330_v53, %v3234_v62 }
 0x5fa   :  { %v3378_v56 = vrot.slane %v8640_v60, 7  ;;  %v3379_v51 = vrot.slane %v8642_v32, 7  ;;  %v3380_v63 = vrot.slane %v8644_v28, 7  ;;  %v3381_v14 = vrot.slane %v8646_v31, 7 }
 0x5fb   :  { %v3345_v50 = vrot.slane %v8640_v60, 6  ;;  %v3346_v39 = vrot.slane %v8642_v32, 6  ;;  %v3347_v11 = vrot.slane %v8644_v28, 6  ;;  %v3348_v27 = vrot.slane %v8646_v31, 6 }
 0x5fc   :  { %v7378_v6 = vpop.eup %7377  ;;  %v3391_v29 = vsel %vm293_vm2, %v3379_v51, %v3380_v63  ;;  %v3392_v43 = vsel %vm293_vm2, %v3378_v56, %v3379_v51  ;;  %v3390_v30 = vsel %vm293_vm2, %v3380_v63, %v3381_v14  ;;  %v3589_v0 = vpack.c.bf16 %v8642_v32, %v8640_v60 }
 0x5fd   :  { %v3323_v35 = vmul.f32 %v7378_v6, %v8620_v33  ;;  %v3324_v54 = vmul.f32 %v7378_v6, %v8622_v17  ;;  %v3325_v37 = vmul.f32 %v7378_v6, %v8624_v21  ;;  %v3326_v15 = vmul.f32 %v7378_v6, %v8626_v2 }
 0x5fe   :  { %v3403_v59 = vpack.c.bf16 %v3390_v30, %v3391_v29  ;;  %v8670_v24 = vsel %vm214_vm0, %v3346_v39, %v3347_v11  ;;  %v8674_v46 = vsel %vm214_vm0, %v3345_v50, %v3346_v39  ;;  %v8678_v8 = vsel %vm214_vm0, %v3347_v11, %v3348_v27 }
 0x5ff   :  { %v3331_v33 = vmul.f32 %v3323_v35, %v3226_v34  ;;  %v3332_v47 = vmul.f32 %v3324_v54, %v3227_v48  ;;  %v3333_v17 = vmul.f32 %v3325_v37, %v3228_v40  ;;  %v3334_v45 = vmul.f32 %v3326_v15, %v3229_v19 }
 0x600   :  { %v3370_v21 = vpack.c.bf16 %v8678_v8, %v8670_v24  ;;  %v3590_v2 = vpack.c.bf16 %v8646_v31, %v8644_v28  ;;  %v3695_v55 = vrot.slane %v8640_v60, 1  ;;  %v3696_v18 = vrot.slane %v8642_v32, 1  ;;  %v7351_v24 = vld [vmem:[#allocation2 + $0x130] sm:$0xff]  }
 0x601   :  { %v8686_v20 = vadd.f32 %v3331_v33, %v3231_v23  ;;  %v8688_v61 = vadd.f32 %v3332_v47, %v3232_v9  ;;  %v8690_v7 = vadd.f32 %v3333_v17, %v3233_v42  ;;  %v8692_v34 = vadd.f32 %v3334_v45, %v3234_v62  ;;  %v7346_v45 = vld [vmem:[#allocation2 + $0xf8] sm:$0xff]   ;;  %v7356_v8 = vld [vmem:[%s9306_s6 + $0x10] ss:$8 sps:$4 sm:$0xff]  }
 0x602   :  { %v3697_v48 = vrot.slane %v8644_v28, 1  ;;  %v3698_v40 = vrot.slane %v8646_v31, 1  ;;  %v8700_v19 = vsel %vm638_vm7, %v3695_v55, %v3696_v18  ;;  %v3825_v26 = vrot.slane %v8640_v60, 2  ;;  %v7352_v60 = vld [vmem:[#allocation2 + $0x138] sm:$0xff]  }
 0x603   :  { %v3385_v23 = vrot.slane %v8692_v34, 7  ;;  %v3382_v9 = vrot.slane %v8686_v20, 7  ;;  %v3383_v42 = vrot.slane %v8688_v61, 7  ;;  %v3384_v62 = vrot.slane %v8690_v7, 7 }
 0x604   :  { %v3352_v53 = vrot.slane %v8692_v34, 6  ;;  %v3349_v51 = vrot.slane %v8686_v20, 6  ;;  %v3350_v63 = vrot.slane %v8688_v61, 6  ;;  %v3351_v39 = vrot.slane %v8690_v7, 6 }
 0x605   :  { %v3393_v11 = vsel %vm293_vm2, %v3385_v23, %v3378_v56  ;;  %v3388_v6 = vsel %vm293_vm2, %v3382_v9, %v3383_v42  ;;  %v3389_v29 = vsel %vm293_vm2, %v3381_v14, %v3382_v9  ;;  %v3386_v30 = vsel %vm293_vm2, %v3384_v62, %v3385_v23 }
 0x606   :  { %v3394_v35 = vsel %vm310_vm4, %v3393_v11, 0.0  ;;  %v3398_v54 = vsel %vm314_vm6, %v3389_v29, 0.0  ;;  %v3387_v37 = vsel %vm293_vm2, %v3383_v42, %v3384_v62  ;;  %v3360_v56 = vsel %vm214_vm0, %v3352_v53, %v3345_v50 }
 0x607   :  { %v3402_v15 = vpack.c.bf16 %v3392_v43, %v3394_v35  ;;  %v3404_v33 = vpack.c.bf16 %v3388_v6, %v3398_v54  ;;  %v3405_v47 = vpack.c.bf16 %v3386_v30, %v3387_v37  ;;  %v3361_v14 = vsel %vm231_vm3, %v3360_v56, 0.0 }
 0x608   :  { %v3369_v17 = vpack.c.bf16 %v8674_v46, %v3361_v14  ;;  %v3355_v5 = vsel %vm214_vm0, %v3349_v51, %v3350_v63  ;;  %v3356_v57 = vsel %vm214_vm0, %v3348_v27, %v3349_v51  ;;  %v8736_v23 = vsel %vm214_vm0, %v3351_v39, %v3352_v53 }
 0x609   :  { %6857 = vmatprep.mubr.msk.bf16.mxu0 %vm1002_vm13, %v3402_v15  ;;  %v3365_v50 = vsel %vm235_vm5, %v3356_v57, 0.0  ;;  %v3354_v4 = vsel %vm214_vm0, %v3350_v63, %v3351_v39  ;;  %v3591_v43 = vpack.c.bf16 %v8688_v61, %v8686_v20  ;;  %v3592_v46 = vpack.c.bf16 %v8692_v34, %v8690_v7  ;;  %v7347_v63 = vld [vmem:[#allocation2 + $0x110] sm:$0xff]  }
 0x60a   :  { %6858 = vmatmul.mubr.msk.bf16.vlgmr.msra.gmra.mrb[16].mxu0 %vm1002_vm13, %v3403_v59  ;;  %v3371_v27 = vpack.c.bf16 %v3355_v5, %v3365_v50  ;;  %v3372_v9 = vpack.c.bf16 %v8736_v23, %v3354_v4  ;;  %v8751_v42 = vsel %vm638_vm7, %v3697_v48, %v3698_v40  ;;  %v8755_v36 = vsel %vm638_vm7, %v3696_v18, %v3697_v48 }
 0x60b   :  { %6861 = vmatprep.mubr.msk.bf16.mxu0 %vm1002_vm13, %v3404_v33  ;;  %6866 = vmatpush3.bf16.msra.mxu0 %v8605_v44  ;;  %v3719_v62 = vpack.c.bf16 %v8755_v36, %v8700_v19  ;;  %v3699_v59 = vrot.slane %v8686_v20, 1  ;;  %v3700_v53 = vrot.slane %v8688_v61, 1  ;;  %v3701_v51 = vrot.slane %v8690_v7, 1 }
 0x60c   :  { %6867 = vmatprep.subr.bf16.mxu0 %v7346_v45  ;;  %v3702_v39 = vrot.slane %v8692_v34, 1  ;;  %v3826_v18 = vrot.slane %v8642_v32, 2  ;;  %v3827_v48 = vrot.slane %v8644_v28, 2  ;;  %v3828_v11 = vrot.slane %v8646_v31, 2  ;;  %v7353_v32 = vld [vmem:[%s9306_s6] ss:$8 sps:$4 sm:$0xff]  }
 0x60d   :  { %v3706_v44 = vsel %vm638_vm7, %v3698_v40, %v3699_v59  ;;  %v3704_v19 = vsel %vm638_vm7, %v3700_v53, %v3701_v51  ;;  %v3705_v6 = vsel %vm638_vm7, %v3699_v59, %v3700_v53  ;;  %v3829_v29 = vrot.slane %v8686_v20, 2  ;;  %v7355_v28 = vld [vmem:[%s9306_s6 + $0x4] ss:$8 sps:$4 sm:$0xff]   ;;  %v7358_v31 = vld [vmem:[%s9306_s6 + $0x14] ss:$8 sps:$4 sm:$0xff]  }
 0x60e   :  { %v3714_v30 = vsel %vm666_vm8, %v3706_v44, 0.0  ;;  %v3721_v35 = vpack.c.bf16 %v3704_v19, %v3705_v6  ;;  %v3703_v54 = vsel %vm638_vm7, %v3701_v51, %v3702_v39  ;;  %v3710_v40 = vsel %vm638_vm7, %v3702_v39, %v3695_v55  ;;  %v7348_v51 = vld [vmem:[#allocation2 + $0x118] sm:$0xff]   ;;  %4147 = vmatprep.subr.bf16.mxu1 %v7355_v28 }
 0x60f   :  { %6868 = vmatpush3.bf16.msra.mxu0 %v7346_v45  ;;  %v3720_v37 = vpack.c.bf16 %v3714_v30, %v8751_v42  ;;  %v3718_v56 = vsel %vm670_vm9, %v3710_v40, 0.0  ;;  %v3837_v15 = vsel %vm809_vm10, %v3827_v48, %v3828_v11  ;;  %v3838_v13 = vsel %vm809_vm10, %v3826_v18, %v3827_v48  ;;  %4148 = vmatpush1.bf16.msra.mxu1 %v7353_v32 }
 0x610   :  { %6877 = vmatprep.subr.bf16.mxu0 %v7347_v63  ;;  %v3722_v33 = vpack.c.bf16 %v3718_v56, %v3703_v54  ;;  %v3839_v14 = vsel %vm809_vm10, %v3825_v26, %v3826_v18  ;;  %v3836_v55 = vsel %vm809_vm10, %v3828_v11, %v3829_v29  ;;  %v3830_v45 = vrot.slane %v8688_v61, 2  ;;  %4149 = vmatprep.subr.bf16.mxu1 %v7358_v31 }
 0x611   :  { %v3849_v38 = vpack.c.bf16 %v3838_v13, %v3839_v14  ;;  %v3844_v5 = vsel %vm837_vm11, %v3836_v55, 0.0  ;;  %v3831_v57 = vrot.slane %v8690_v7, 2  ;;  %v3832_v23 = vrot.slane %v8692_v34, 2 }
 0x612   :  { %6862 = vmatmul.mubr.msk.bf16.gmra.mrb[20].mxu0 %vm1002_vm13, %v3405_v47  ;;  %v3850_v50 = vpack.c.bf16 %v3844_v5, %v3837_v15  ;;  %v3835_v4 = vsel %vm809_vm10, %v3829_v29, %v3830_v45 }
 0x613   :  { %6869 = vmatprep.mubr.msk.bf16.mxu0 %vm1002_vm13, %v3369_v17  ;;  %v3834_v42 = vsel %vm809_vm10, %v3830_v45, %v3831_v57  ;;  %v3833_v36 = vsel %vm809_vm10, %v3831_v57, %v3832_v23  ;;  %v3840_v49 = vsel %vm809_vm10, %v3832_v23, %v3825_v26  ;;  %v7349_v17 = vld [vmem:[#allocation2 + $0x120] sm:$0xff]   ;;  %4150 = vmatpush1.bf16.msra.mxu1 %v7356_v8 }
 0x614   :  { %v3851_v59 = vpack.c.bf16 %v3834_v42, %v3835_v4  ;;  %v3848_v47 = vsel %vm841_vm12, %v3840_v49, 0.0 }
 0x615   :  { %v3852_v53 = vpack.c.bf16 %v3848_v47, %v3833_v36 }
 0x61a   :  { %6870 = vmatmul.mubr.msk.bf16.vlgmr.msra.gmra.mrb[16].mxu0 %vm1002_vm13, %v3370_v21  ;;  %v6328_v21 = vld [vmem:[#allocation5 + $0x4] ss:$0 sm:$0xff] }
 0x61b   :  { %6873 = vmatprep.mubr.msk.bf16.mxu0 %vm1002_vm13, %v3371_v27  ;;  %6878 = vmatpush3.bf16.msra.mxu0 %v7347_v63 }
 0x61c   :  { %6879 = vmatprep.subr.bf16.mxu0 %v7348_v51 }
 0x61f   :  { %6880 = vmatpush3.bf16.msra.mxu0 %v7348_v51 }
 0x620   :  { %6889 = vmatprep.subr.bf16.mxu0 %v7349_v17 }
 0x622   :  { %6874 = vmatmul.mubr.msk.bf16.gmra.mrb[20].mxu0 %vm1002_vm13, %v3372_v9 }
 0x623   :  { %6881 = vmatprep.mubr.msk.bf16.mxu0 %vm1002_vm13, %v3589_v0  ;;  %v7639_v0 = vmov 0  }
 0x624   :  { %4179 = vmatprep.mubr.bf16.mxu1 %v7639_v0 }
 0x62a   :  { %6882 = vmatmul.mubr.msk.bf16.vlgmr.msra.gmra.mrb[16].mxu0 %vm1002_vm13, %v3590_v2 }
 0x62b   :  { %6885 = vmatprep.mubr.msk.bf16.mxu0 %vm1002_vm13, %v3591_v43  ;;  %6890 = vmatpush3.bf16.msra.mxu0 %v7349_v17 }
 0x62c   :  { %6891 = vmatprep.subr.bf16.mxu0 %v7350_v58 }
 0x62f   :  { %6892 = vmatpush3.bf16.msra.mxu0 %v7350_v58 }
 0x630   :  { %6901 = vmatprep.subr.bf16.mxu0 %v7351_v24 }
 0x632   :  { %6886 = vmatmul.mubr.msk.bf16.gmra.mrb[20].mxu0 %vm1002_vm13, %v3592_v46 }
 0x633   :  { %6893 = vmatprep.mubr.msk.bf16.mxu0 %vm1002_vm13, %v3719_v62 }
 0x63a   :  { %6894 = vmatmul.mubr.msk.bf16.vlgmr.msra.gmra.mrb[16].mxu0 %vm1002_vm13, %v3720_v37 }
 0x63b   :  { %6897 = vmatprep.mubr.msk.bf16.mxu0 %vm1002_vm13, %v3721_v35  ;;  %6902 = vmatpush3.bf16.msra.mxu0 %v7351_v24 }
 0x63c   :  { %6903 = vmatprep.subr.bf16.mxu0 %v7352_v60 }
 0x63f   :  { %6904 = vmatpush3.bf16.msra.mxu0 %v7352_v60 }
 0x642   :  { %6898 = vmatmul.mubr.msk.bf16.gmra.mrb[20].mxu0 %vm1002_vm13, %v3722_v33 }
 0x643   :  { %6905 = vmatprep.mubr.msk.bf16.mxu0 %vm1002_vm13, %v3849_v38 }
 0x64a   :  { %6906 = vmatmul.mubr.msk.bf16.vlgmr.msra.gmra.mrb[16].mxu0 %vm1002_vm13, %v3850_v50 }
 0x64b   :  { %6909 = vmatprep.mubr.msk.bf16.mxu0 %vm1002_vm13, %v3851_v59 }
 0x652   :  { %6910 = vmatmul.mubr.msk.bf16.gmra.mrb[20].mxu0 %vm1002_vm13, %v3852_v53 }
 0x71d   :  { %v6907_v2 = vpop.f32.mrb[16].mxu0 }
 0x71e   :  { %v3916_v20 = vpop.f32.mrb[17].mxu0  ;;  %v3963_v61 = vadd.f32 %v6907_v2, %v6328_v21 }
 0x71f   :  { %v3961_v7 = vadd.f32 %v6328_v21, %v3916_v20  ;;  %v6908_v34 = vpop.f32.mrb[18].mxu0 }
 0x720   :  { %v3919_v26 = vpop.f32.mrb[19].mxu0  ;;  %v3964_v46 = vadd.f32 %v6908_v34, %v6328_v21  ;;  %v3981_v9 = vmax.f32 %v3963_v61, 0.0 }
 0x721   :  { %v3979_v43 = vmax.f32 %v3961_v7, 0.0  ;;  %v3962_v27 = vadd.f32 %v6328_v21, %v3919_v26 }
 0x722   :  { %v3982_v39 = vmax.f32 %v3964_v46, 0.0  ;;  %v3990_v19 = vsel %vm1002_vm13, %v3981_v9, 0.0 }
 0x723   :  { %v3980_v62 = vmax.f32 %v3962_v27, 0.0  ;;  %v3987_v63 = vsel %vm1002_vm13, %v3979_v43, 0.0 }
 0x724   :  { %v3992_v40 = vsel %vm1002_vm13, %v3982_v39, 0.0 }
 0x725   :  { %v3988_v18 = vsel %vm1002_vm13, %v3980_v62, 0.0  ;;  %v6911_v48 = vpop.f32.mrb[20].mxu0 }
 0x726   :  { %v3989_v11 = vadd.f32 %v3988_v18, %v3987_v63  ;;  %v3932_v44 = vpop.f32.mrb[21].mxu0  ;;  %v3967_v6 = vadd.f32 %v6911_v48, %v6328_v21 }
 0x727   :  { %v3965_v29 = vadd.f32 %v6328_v21, %v3932_v44  ;;  %v6912_v30 = vpop.f32.mrb[22].mxu0 }
 0x728   :  { %v3991_v35 = vadd.f32 %v3990_v19, %v3989_v11  ;;  %v3935_v54 = vpop.f32.mrb[23].mxu0  ;;  %v3968_v56 = vadd.f32 %v6912_v30, %v6328_v21  ;;  %v3985_v33 = vmax.f32 %v3967_v6, 0.0 }
 0x729   :  { %v3983_v37 = vmax.f32 %v3965_v29, 0.0  ;;  %v3966_v15 = vadd.f32 %v6328_v21, %v3935_v54 }
 0x72a   :  { %v3993_v13 = vadd.f32 %v3992_v40, %v3991_v35  ;;  %v3986_v38 = vmax.f32 %v3968_v56, 0.0  ;;  %v4003_v50 = vsel %vm1002_vm13, %v3985_v33, 0.0 }
 0x72b   :  { %v3984_v14 = vmax.f32 %v3966_v15, 0.0  ;;  %v4000_v45 = vsel %vm1002_vm13, %v3983_v37, 0.0 }
 0x72c   :  { %v3994_v55 = vrot.slane %v3993_v13, 4  ;;  %v4005_v36 = vsel %vm1002_vm13, %v3986_v38, 0.0 }
 0x72d   :  { %v4001_v5 = vsel %vm1002_vm13, %v3984_v14, 0.0 }
 0x72e   :  { %v3995_v57 = vadd.f32 %v3994_v55, %v3993_v13  ;;  %v4002_v23 = vadd.f32 %v4001_v5, %v4000_v45 }
 0x730   :  { %v3996_v4 = vrot.slane %v3995_v57, 2  ;;  %v4004_v42 = vadd.f32 %v4003_v50, %v4002_v23 }
 0x732   :  { %v3997_v49 = vadd.f32 %v3996_v4, %v3995_v57  ;;  %v4006_v59 = vadd.f32 %v4005_v36, %v4004_v42 }
 0x734   :  { %v3998_v47 = vrot.slane %v3997_v49, 1  ;;  %v4007_v53 = vrot.slane %v4006_v59, 4 }
 0x736   :  { %v3999_v51 = vadd.f32 %v3998_v47, %v3997_v49  ;;  %v4008_v17 = vadd.f32 %v4007_v53, %v4006_v59 }
 0x738   :  { %v4013_v58 = vmul.f32 0.03125, %v3999_v51  ;;  %v4009_v24 = vrot.slane %v4008_v17, 2  ;;  %v3970_v51 = vld [vmem:[#allocation7 + $0x80] sm:$0xff] }
 0x73a   :  { %v4015_v60 = vsub.f32 %v3979_v43, %v4013_v58  ;;  %v4016_v32 = vsub.f32 %v3980_v62, %v4013_v58  ;;  %v4017_v28 = vsub.f32 %v3981_v9, %v4013_v58  ;;  %v4018_v31 = vsub.f32 %v3982_v39, %v4013_v58  ;;  %v3971_v58 = vld [vmem:[#allocation7 + $0x88] sm:$0xff] }
 0x73b   :  { %v4010_v8 = vadd.f32 %v4009_v24, %v4008_v17  ;;  %v3972_v24 = vld [vmem:[#allocation7 + $0x90] sm:$0xff] }
 0x73c   :  { %v4023_v21 = vmul.f32 %v4015_v60, %v4015_v60  ;;  %v4024_v2 = vmul.f32 %v4016_v32, %v4016_v32  ;;  %v4025_v20 = vmul.f32 %v4017_v28, %v4017_v28  ;;  %v4026_v7 = vmul.f32 %v4018_v31, %v4018_v31 }
 0x73d   :  { %v4011_v61 = vrot.slane %v4010_v8, 1 }
 0x73e   :  { %v4031_v34 = vsel %vm1002_vm13, %v4023_v21, 0.0  ;;  %v4032_v26 = vsel %vm1002_vm13, %v4024_v2, 0.0  ;;  %v4034_v63 = vsel %vm1002_vm13, %v4025_v20, 0.0  ;;  %v4036_v43 = vsel %vm1002_vm13, %v4026_v7, 0.0  ;;  %v3975_v21 = vld [vmem:[#allocation8 + $0x80] sm:$0xff] }
 0x73f   :  { %v4033_v46 = vadd.f32 %v4032_v26, %v4031_v34  ;;  %v4012_v27 = vadd.f32 %v4011_v61, %v4010_v8  ;;  %v3973_v8 = vld [vmem:[#allocation7 + $0x98] sm:$0xff]  ;;  %v3976_v34 = vld [vmem:[#allocation8 + $0x88] sm:$0xff]  ;;  %v3977_v26 = vld [vmem:[#allocation8 + $0x90] sm:$0xff] }
 0x741   :  { %v4035_v18 = vadd.f32 %v4034_v63, %v4033_v46  ;;  %v4014_v48 = vmul.f32 0.03125, %v4012_v27  ;;  %v3978_v46 = vld [vmem:[#allocation8 + $0x98] sm:$0xff] }
 0x743   :  { %v4037_v9 = vadd.f32 %v4036_v43, %v4035_v18  ;;  %v4019_v62 = vsub.f32 %v3983_v37, %v4014_v48  ;;  %v4020_v39 = vsub.f32 %v3984_v14, %v4014_v48  ;;  %v4021_v11 = vsub.f32 %v3985_v33, %v4014_v48 }
 0x744   :  { %v4022_v44 = vsub.f32 %v3986_v38, %v4014_v48 }
 0x745   :  { %v4038_v19 = vrot.slane %v4037_v9, 4  ;;  %v4027_v6 = vmul.f32 %v4019_v62, %v4019_v62  ;;  %v4028_v29 = vmul.f32 %v4020_v39, %v4020_v39  ;;  %v4029_v30 = vmul.f32 %v4021_v11, %v4021_v11 }
 0x746   :  { %v4030_v54 = vmul.f32 %v4022_v44, %v4022_v44 }
 0x747   :  { %v4039_v35 = vadd.f32 %v4038_v19, %v4037_v9  ;;  %v4044_v40 = vsel %vm1002_vm13, %v4027_v6, 0.0  ;;  %v4045_v56 = vsel %vm1002_vm13, %v4028_v29, 0.0  ;;  %v4047_v55 = vsel %vm1002_vm13, %v4029_v30, 0.0 }
 0x748   :  { %v4046_v15 = vadd.f32 %v4045_v56, %v4044_v40  ;;  %v4049_v37 = vsel %vm1002_vm13, %v4030_v54, 0.0 }
 0x749   :  { %v4040_v13 = vrot.slane %v4039_v35, 2 }
 0x74a   :  { %v4048_v45 = vadd.f32 %v4047_v55, %v4046_v15 }
 0x74b   :  { %v4041_v5 = vadd.f32 %v4040_v13, %v4039_v35 }
 0x74c   :  { %v4050_v33 = vadd.f32 %v4049_v37, %v4048_v45 }
 0x74d   :  { %v4042_v14 = vrot.slane %v4041_v5, 1 }
 0x74e   :  { %v4051_v38 = vrot.slane %v4050_v33, 4 }
 0x74f   :  { %v4043_v57 = vadd.f32 %v4042_v14, %v4041_v5 }
 0x750   :  { %v4052_v23 = vadd.f32 %v4051_v38, %v4050_v33 }
 0x751   :  { %v4057_v50 = vmul.f32 0.03125, %v4043_v57 }
 0x752   :  { %v4053_v4 = vrot.slane %v4052_v23, 2 }
 0x753   :  { %v4059_v42 = vadd.f32 1e-05, %v4057_v50 }
 0x754   :  { %v4054_v36 = vadd.f32 %v4053_v4, %v4052_v23 }
 0x755   :  { %7379 = vrsqrt.f32 %v4059_v42 }
 0x756   :  { %v4055_v49 = vrot.slane %v4054_v36, 1 }
 0x758   :  { %v4056_v59 = vadd.f32 %v4055_v49, %v4054_v36 }
 0x75a   :  { %v4058_v47 = vmul.f32 0.03125, %v4056_v59 }
 0x75c   :  { %v4060_v53 = vadd.f32 1e-05, %v4058_v47 }
 0x75e   :  { %7381 = vrsqrt.f32 %v4060_v53 }
 0x75f   :  { %v7380_v17 = vpop.eup %7379 }
 0x760   :  { %v4063_v2 = vmul.f32 %v7380_v17, %v4015_v60  ;;  %v4064_v20 = vmul.f32 %v7380_v17, %v4016_v32  ;;  %v4065_v61 = vmul.f32 %v7380_v17, %v4017_v28  ;;  %v4066_v7 = vmul.f32 %v7380_v17, %v4018_v31 }
 0x762   :  { %v4071_v27 = vmul.f32 %v4063_v2, %v3970_v51  ;;  %v4072_v63 = vmul.f32 %v4064_v20, %v3971_v58  ;;  %v4073_v18 = vmul.f32 %v4065_v61, %v3972_v24  ;;  %v4074_v48 = vmul.f32 %v4066_v7, %v3973_v8 }
 0x764   :  { %v4079_v43 = vadd.f32 %v4071_v27, %v3975_v21  ;;  %v4080_v9 = vadd.f32 %v4072_v63, %v3976_v34  ;;  %v4081_v19 = vadd.f32 %v4073_v18, %v3977_v26  ;;  %v4082_v6 = vadd.f32 %v4074_v48, %v3978_v46 }
 0x766   :  { %v4087_v29 = vadd.f32 %v4079_v43, %v8450_v22  ;;  %v4088_v30 = vadd.f32 %v4080_v9, %v8441_v12  ;;  %v4089_v60 = vadd.f32 %v4081_v19, %v8444_v16  ;;  %v4090_v32 = vadd.f32 %v4082_v6, %v8447_v25 }
 0x768   :  { %v7382_v28 = vpop.eup %7381  ;;  %v4095_v31 = vpack.c.bf16 %v4088_v30, %v4087_v29  ;;  %v4096_v35 = vpack.c.bf16 %v4090_v32, %v4089_v60 }
 0x769   :  { %v4067_v54 = vmul.f32 %v7382_v28, %v4019_v62  ;;  %v4068_v40 = vmul.f32 %v7382_v28, %v4020_v39  ;;  %v4069_v56 = vmul.f32 %v7382_v28, %v4021_v11  ;;  %v4070_v15 = vmul.f32 %v7382_v28, %v4022_v44 }
 0x76a   :  { %6333 = vmatmul.mubr.msk.bf16.vlgmr.msra.gmra.mrb[20].mxu1 %vm1002_vm13, %v4095_v31 }
 0x76b   :  { %v4076_v13 = vmul.f32 %v4068_v40, %v3971_v58  ;;  %4189 = vmatprep.mubr.bf16.mxu1 %v7639_v0  ;;  %v4075_v55 = vmul.f32 %v4067_v54, %v3970_v51  ;;  %v4077_v22 = vmul.f32 %v4069_v56, %v3972_v24  ;;  %v4078_v45 = vmul.f32 %v4070_v15, %v3973_v8 }
 0x76d   :  { %v4084_v12 = vadd.f32 %v4076_v13, %v3976_v34  ;;  %v4083_v5 = vadd.f32 %v4075_v55, %v3975_v21  ;;  %v4085_v16 = vadd.f32 %v4077_v22, %v3977_v26  ;;  %v4086_v37 = vadd.f32 %v4078_v45, %v3978_v46 }
 0x76f   :  { %v4091_v25 = vadd.f32 %v4083_v5, %v8456_v10  ;;  %v4092_v33 = vadd.f32 %v4084_v12, %v8459_v41  ;;  %v4093_v62 = vadd.f32 %v4085_v16, %v8471_v52  ;;  %v4094_v39 = vadd.f32 %v4086_v37, %v8462_v3  ;;  %v4103_v41 = vld [vmem:[%s9307_s7] sm:$0x3]  ;;  %s7641_s7 = smov 96  }
 0x770   :  { %v4107_v10 = vsub.s32 0, %v7759_v1  ;;  %v4111_v3 = vsub.s32 1, %v7759_v1 }
 0x771   :  { %v4097_v11 = vpack.c.bf16 %v4092_v33, %v4091_v25  ;;  %v4098_v44 = vpack.c.bf16 %v4094_v39, %v4093_v62 }
 0x772   :  { %6334 = vmatmul.mubr.msk.bf16.gmra.mrb[24].mxu1 %vm1002_vm13, %v4096_v35  ;;  %v4108_v52 = vrot.slane %v4103_v41, %v4107_v10  ;;  %v4112_v38 = vrot.slane %v4103_v41, %v4111_v3 }
 0x773   :  { %4199 = vmatprep.mubr.bf16.mxu1 %v7639_v0 }
 0x77a   :  { %6335 = vmatmul.mubr.msk.bf16.gmra.mrb[28].mxu1 %vm1002_vm13, %v4097_v11 }
 0x77b   :  { %4209 = vmatprep.mubr.bf16.mxu1 %v7639_v0 }
 0x782   :  { %6336 = vmatmul.mubr.msk.bf16.gmra.mrb[32].mxu1 %vm1002_vm13, %v4098_v44 }
 0x83d   :  { %v4181_v14 = vpop.f32.mrb[20].mxu1 }
 0x83e   :  { %v4183_v57 = vpop.f32.mrb[21].mxu1  ;;  %v4182_v50 = vadd.f32 %v4181_v14, %v4108_v52 }
 0x83f   :  { %v4185_v23 = vpop.f32.mrb[22].mxu1  ;;  %v4184_v36 = vadd.f32 %v4183_v57, %v4112_v38 }
 0x840   :  { %v4186_v4 = vadd.f32 %v4185_v23, %v4108_v52  ;;  %v4187_v42 = vpop.f32.mrb[23].mxu1 }
 0x841   :  { %v4188_v0 = vadd.f32 %v4187_v42, %v4112_v38 }
 0x842   :  { %v8894_v49 = vpack.c.bf16 %v4186_v4, %v4182_v50 }
 0x843   :  { %v8896_v59 = vpack.c.bf16 %v4188_v0, %v4184_v36 }
 0x844   :  { %4709 = vrot.lane.b32.xlu1 %v8894_v49, %s7640_s20  ;;  %4233 = vrot.lane.b32.xlu0 %v8894_v49, %s7633_s3 }
 0x845   :  { %6917 = vmatprep.mubr.msk.bf16.mxu1 %vm371_vm1, %v8894_v49  ;;  %v4191_v1 = vpop.f32.mrb[24].mxu1 }
 0x846   :  { %v4193_v47 = vpop.f32.mrb[25].mxu1  ;;  %v4192_v51 = vadd.f32 %v4191_v1, %v4108_v52 }
 0x847   :  { %v4195_v53 = vpop.f32.mrb[26].mxu1  ;;  %v4194_v24 = vadd.f32 %v4193_v47, %v4112_v38 }
 0x848   :  { %v4196_v17 = vadd.f32 %v4195_v53, %v4108_v52  ;;  %v4197_v58 = vpop.f32.mrb[27].mxu1 }
 0x849   :  { %v4198_v8 = vadd.f32 %v4197_v58, %v4112_v38 }
 0x84a   :  { %v8904_v21 = vpack.c.bf16 %v4196_v17, %v4192_v51 }
 0x84b   :  { %v8906_v2 = vpack.c.bf16 %v4198_v8, %v4194_v24 }
 0x84c   :  { %4711 = vrot.lane.b32.xlu1 %v8904_v21, %s7640_s20  ;;  %4235 = vrot.lane.b32.xlu0 %v8904_v21, %s7633_s3 }
 0x84d   :  { %v4201_v20 = vpop.f32.mrb[28].mxu1 }
 0x84e   :  { %v4202_v61 = vadd.f32 %v4201_v20, %v4108_v52  ;;  %v4203_v7 = vpop.f32.mrb[29].mxu1 }
 0x84f   :  { %v4204_v34 = vadd.f32 %v4203_v7, %v4112_v38  ;;  %v4205_v26 = vpop.f32.mrb[30].mxu1 }
 0x850   :  { %v4206_v46 = vadd.f32 %v4205_v26, %v4108_v52  ;;  %4707 = vrot.lane.b32.xlu1 %v8904_v21, %s7641_s7  ;;  %4705 = vrot.lane.b32.xlu0 %v8894_v49, %s7641_s7  ;;  %v4207_v27 = vpop.f32.mrb[31].mxu1 }
 0x851   :  { %v4208_v63 = vadd.f32 %v4207_v27, %v4112_v38 }
 0x852   :  { %v8916_v18 = vpack.c.bf16 %v4206_v46, %v4202_v61 }
 0x853   :  { %v8918_v48 = vpack.c.bf16 %v4208_v63, %v4204_v34 }
 0x855   :  { %v4211_v43 = vpop.f32.mrb[32].mxu1 }
 0x856   :  { %v4212_v9 = vadd.f32 %v4211_v43, %v4108_v52  ;;  %v4213_v19 = vpop.f32.mrb[33].mxu1 }
 0x857   :  { %v4214_v6 = vadd.f32 %v4213_v19, %v4112_v38  ;;  %v4215_v29 = vpop.f32.mrb[34].mxu1 }
 0x858   :  { %v4216_v30 = vadd.f32 %v4215_v29, %v4108_v52  ;;  %v4217_v60 = vpop.f32.mrb[35].mxu1 }
 0x859   :  { %v4218_v32 = vadd.f32 %v4217_v60, %v4112_v38 }
 0x85a   :  { %v8920_v28 = vpack.c.bf16 %v4216_v30, %v4212_v9 }
 0x85b   :  { %v8922_v31 = vpack.c.bf16 %v4218_v32, %v4214_v6 }
 0x8b6   :  { %v4710_v35 = vpop.permute.xlu1 %4709  ;;  %v4234_v54 = vpop.permute.xlu0 %4233 }
 0x8b7   :  { %7275 = vmatprep.subr.msk.bf16.mxu1 %vm371_vm1, %v4234_v54  ;;  %7279 = vmatprep.subr.msk.bf16.mxu0 %vm371_vm1, %v4710_v35  ;;  %v4244_v40 = vsel %vm371_vm1, %v4234_v54, 0  ;;  %v4720_v56 = vsel %vm371_vm1, %v4710_v35, 0 }
 0x8b8   :  { %6914 = vmatpush3.bf16.xpose.msra.mxu1 %v4244_v40  ;;  %6958 = vmatpush3.bf16.xpose.msra.mxu0 %v4720_v56 }
 0x8be   :  { %v4712_v15 = vpop.permute.xlu1 %4711  ;;  %v4236_v13 = vpop.permute.xlu0 %4235 }
 0x8bf   :  { %7276 = vmatprep.subr.msk.bf16.mxu1 %vm371_vm1, %v4236_v13  ;;  %7280 = vmatprep.subr.msk.bf16.mxu0 %vm371_vm1, %v4712_v15  ;;  %v4247_v55 = vsel %vm371_vm1, %v4236_v13, 0  ;;  %v4723_v22 = vsel %vm371_vm1, %v4712_v15, 0 }
 0x8c0   :  { %6916 = vmatpush3.bf16.xpose.msra.mxu1 %v4247_v55  ;;  %6960 = vmatpush3.bf16.xpose.msra.mxu0 %v4723_v22 }
 0x8c1   :  { %6921 = vmatprep.subr.bf16.mxu1 %v8896_v59 }
 0x8c2   :  { %v4706_v45 = vpop.permute.xlu0 %4705  ;;  %v4708_v12 = vpop.permute.xlu1 %4707 }
 0x8c3   :  { %6961 = vmatprep.mubr.msk.bf16.mxu0 %vm371_vm1, %v4706_v45 }
 0x8c7   :  { %6918 = vmatmul.mubr.msk.bf16.vlgmr.msra.gmra.mrb[36].mxu1 %vm371_vm1, %v8904_v21  ;;  %6962 = vmatmul.mubr.msk.bf16.vlgmr.msra.gmra.mrb[24].mxu0 %vm371_vm1, %v4708_v12 }
 0x8c8   :  { %6922 = vmatpush3.bf16.msra.mxu1 %v8896_v59 }
 0x8c9   :  { %6923 = vmatprep.subr.bf16.mxu1 %v8906_v2 }
 0x8cc   :  { %6924 = vmatpush3.bf16.msra.mxu1 %v8906_v2 }
 0x99a   :  { %v6919_v5 = vpop.f32.mrb[36].mxu1  ;;  %v8940_v16 = vpop.f32.mrb[24].mxu0 }
 0x99b   :  { %v4283_v37 = vpop.f32.mrb[37].mxu1  ;;  %v8942_v25 = vpop.f32.mrb[25].mxu0  ;;  %v4304_v41 = vsel %vm1002_vm13, %v6919_v5, -inf  ;;  %v4780_v34 = vsel %vm1002_vm13, %v8940_v16, -inf }
 0x99c   :  { %v6920_v33 = vpop.f32.mrb[38].mxu1  ;;  %v8944_v62 = vpop.f32.mrb[26].mxu0  ;;  %v4298_v39 = vsel %vm1002_vm13, %v4283_v37, -inf  ;;  %v4774_v7 = vsel %vm1002_vm13, %v8942_v25, -inf }
 0x99d   :  { %v8947_v11 = vpop.f32.mrb[27].mxu0  ;;  %4299 = vmax.xlane.f32.xlu0 %v4298_v39  ;;  %v4286_v44 = vpop.f32.mrb[39].mxu1  ;;  %v4307_v3 = vsel %vm1002_vm13, %v6920_v33, -inf  ;;  %v4783_v46 = vsel %vm1002_vm13, %v8944_v62, -inf }
 0x99e   :  { %v4301_v10 = vsel %vm1002_vm13, %v4286_v44, -inf  ;;  %v4777_v26 = vsel %vm1002_vm13, %v8947_v11, -inf }
 0x99f   :  { %4302 = vmax.xlane.f32.xlu1 %v4301_v10 }
 0x9a1   :  { %4305 = vmax.xlane.f32.xlu0 %v4304_v41 }
 0x9a5   :  { %4308 = vmax.xlane.f32.xlu0 %v4307_v3 }
 0xa2a   :  { %v4300_v52 = vpop.xlane.xlu0 %4299 }
 0xa2b   :  { %v4310_v38 = vsub.f32 %v4283_v37, %v4300_v52 }
 0xa2c   :  { %v4303_v14 = vpop.xlane.xlu1 %4302 }
 0xa2d   :  { %v4311_v57 = vsub.f32 %v4286_v44, %v4303_v14  ;;  %v4314_v42 = vmul.f32 1.442695, %v4310_v38 }
 0xa2e   :  { %v4306_v23 = vpop.xlane.xlu0 %4305 }
 0xa2f   :  { %v4316_v50 = vmul.f32 1.442695, %v4311_v57  ;;  %v4312_v4 = vsub.f32 %v6919_v5, %v4306_v23 }
 0xa31   :  { %7383 = vpow2.f32 %v4316_v50  ;;  %v4318_v36 = vmul.f32 1.442695, %v4312_v4 }
 0xa32   :  { %v4309_v0 = vpop.xlane.xlu0 %4308 }
 0xa33   :  { %7385 = vpow2.f32 %v4318_v36  ;;  %v4313_v1 = vsub.f32 %v6920_v33, %v4309_v0 }
 0xa34   :  { %7387 = vpow2.f32 %v4314_v42 }
 0xa35   :  { %v4320_v47 = vmul.f32 1.442695, %v4313_v1 }
 0xa37   :  { %7389 = vpow2.f32 %v4320_v47 }
 0xa3b   :  { %v7384_v53 = vpop.eup %7383 }
 0xa3c   :  { %v4325_v51 = vsel %vm1002_vm13, %v7384_v53, 0.0 }
 0xa3d   :  { %v7386_v17 = vpop.eup %7385  ;;  %4326 = vadd.xlane.f32.xlu0 %v4325_v51 }
 0xa3e   :  { %v4328_v58 = vsel %vm1002_vm13, %v7386_v17, 0.0  ;;  %v7388_v24 = vpop.eup %7387 }
 0xa3f   :  { %4329 = vadd.xlane.f32.xlu1 %v4328_v58  ;;  %v4322_v20 = vsel %vm1002_vm13, %v7388_v24, 0.0 }
 0xa41   :  { %v7390_v8 = vpop.eup %7389 }
 0xa42   :  { %v4331_v61 = vsel %vm1002_vm13, %v7390_v8, 0.0 }
 0xa43   :  { %4323 = vadd.xlane.f32.xlu1 %v4322_v20  ;;  %4332 = vadd.xlane.f32.xlu0 %v4331_v61 }
 0xa54   :  { %4407 = vrot.lane.b32.xlu1 %v8894_v49, %s7642_s21 }
 0xa58   :  { %4403 = vrot.lane.b32.xlu1 %v8894_v49, %s7643_s23 }
 0xa59   :  { %4409 = vrot.lane.b32.xlu0 %v8904_v21, %s7642_s21 }
 0xa5c   :  { %4405 = vrot.lane.b32.xlu1 %v8904_v21, %s7643_s23 }
 0xa78   :  { %4775 = vmax.xlane.f32.xlu0 %v4774_v7 }
 0xa7c   :  { %4781 = vmax.xlane.f32.xlu0 %v4780_v34 }
 0xa80   :  { %4778 = vmax.xlane.f32.xlu1 %v4777_v26  ;;  %4784 = vmax.xlane.f32.xlu0 %v4783_v46 }
 0xaca   :  { %v4327_v27 = vpop.xlane.xlu0 %4326 }
 0xacc   :  { %v4330_v63 = vpop.xlane.xlu1 %4329 }
 0xacd   :  { %7391 = vrcp.f32 %v4330_v63 }
 0xace   :  { %7393 = vrcp.f32 %v4327_v27 }
 0xad0   :  { %v4333_v43 = vpop.xlane.xlu0 %4332  ;;  %v4324_v9 = vpop.xlane.xlu1 %4323 }
 0xad1   :  { %7395 = vrcp.f32 %v4333_v43 }
 0xad2   :  { %7397 = vrcp.f32 %v4324_v9 }
 0xad4   :  { %v4408_v19 = vpop.permute.xlu1 %4407  ;;  %v4410_v22 = vpop.permute.xlu0 %4409 }
 0xad5   :  { %7277 = vmatprep.subr.msk.bf16.mxu1 %vm371_vm1, %v4408_v19  ;;  %v4418_v13 = vsel %vm371_vm1, %v4408_v19, 0  ;;  %v4421_v45 = vsel %vm371_vm1, %v4410_v22, 0 }
 0xad7   :  { %v7392_v6 = vpop.eup %7391 }
 0xad8   :  { %v7394_v29 = vpop.eup %7393  ;;  %v4340_v32 = vmul.f32 %v7392_v6, %v7386_v17  ;;  %v4404_v55 = vpop.permute.xlu1 %4403 }
 0xad9   :  { %v4339_v40 = vmul.f32 %v7394_v29, %v7384_v53 }
 0xadb   :  { %v7396_v30 = vpop.eup %7395 }
 0xadc   :  { %v7398_v60 = vpop.eup %7397  ;;  %v4341_v35 = vmul.f32 %v7396_v30, %v7390_v8  ;;  %v4406_v12 = vpop.permute.xlu1 %4405 }
 0xadd   :  { %v4338_v54 = vmul.f32 %v7398_v60, %v7388_v24 }
 0xade   :  { %v4343_v56 = vpack.c.bf16 %v4341_v35, %v4340_v32 }
 0xadf   :  { %v4342_v15 = vpack.c.bf16 %v4339_v40, %v4338_v54 }
 0xae1   :  { %6925 = vmatprep.mubr.msk.bf16.mxu1 %vm1002_vm13, %v4342_v15 }
 0xae2   :  { %6926 = vmatmul.mubr.msk.bf16.vlgmr.msra.gmra.mrb[40].mxu1 %vm1002_vm13, %v4343_v56 }
 0xae3   :  { %6930 = vmatpush3.bf16.xpose.msra.mxu1 %v4418_v13  ;;  %6933 = vmatprep.mubr.msk.bf16.mxu1 %vm371_vm1, %v4404_v55 }
 0xae4   :  { %7278 = vmatprep.subr.msk.bf16.mxu1 %vm371_vm1, %v4410_v22 }
 0xaeb   :  { %6932 = vmatpush3.bf16.xpose.msra.mxu1 %v4421_v45 }
 0xaf2   :  { %6934 = vmatmul.mubr.msk.bf16.vlgmr.msra.gmra.mrb[44].mxu1 %vm371_vm1, %v4406_v12 }
 0xb05   :  { %v4776_v5 = vpop.xlane.xlu0 %4775 }
 0xb06   :  { %v4786_v37 = vsub.f32 %v8942_v25, %v4776_v5 }
 0xb08   :  { %v4790_v33 = vmul.f32 1.442695, %v4786_v37 }
 0xb09   :  { %v4782_v39 = vpop.xlane.xlu0 %4781 }
 0xb0a   :  { %7399 = vpow2.f32 %v4790_v33  ;;  %v4788_v44 = vsub.f32 %v8940_v16, %v4782_v39 }
 0xb0c   :  { %v4794_v10 = vmul.f32 1.442695, %v4788_v44 }
 0xb0d   :  { %v4785_v41 = vpop.xlane.xlu0 %4784  ;;  %v4779_v3 = vpop.xlane.xlu1 %4778 }
 0xb0e   :  { %7401 = vpow2.f32 %v4794_v10  ;;  %v4789_v52 = vsub.f32 %v8944_v62, %v4785_v41  ;;  %v4787_v14 = vsub.f32 %v8947_v11, %v4779_v3 }
 0xb10   :  { %v4796_v38 = vmul.f32 1.442695, %v4789_v52  ;;  %v4792_v57 = vmul.f32 1.442695, %v4787_v14 }
 0xb12   :  { %7403 = vpow2.f32 %v4796_v38 }
 0xb13   :  { %7405 = vpow2.f32 %v4792_v57 }
 0xb14   :  { %v7400_v23 = vpop.eup %7399 }
 0xb15   :  { %v4798_v25 = vsel %vm1002_vm13, %v7400_v23, 0.0 }
 0xb16   :  { %4799 = vadd.xlane.f32.xlu1 %v4798_v25 }
 0xb18   :  { %v7402_v50 = vpop.eup %7401 }
 0xb19   :  { %v4804_v4 = vsel %vm1002_vm13, %v7402_v50, 0.0 }
 0xb1a   :  { %4805 = vadd.xlane.f32.xlu1 %v4804_v4 }
 0xb1c   :  { %v7404_v16 = vpop.eup %7403 }
 0xb1d   :  { %v4807_v42 = vsel %vm1002_vm13, %v7404_v16, 0.0  ;;  %v7406_v36 = vpop.eup %7405 }
 0xb1e   :  { %4808 = vadd.xlane.f32.xlu0 %v4807_v42  ;;  %v4801_v62 = vsel %vm1002_vm13, %v7406_v36, 0.0 }
 0xb22   :  { %4802 = vadd.xlane.f32.xlu0 %v4801_v62 }
 0xb2b   :  { %4820 = vrot.lane.b32.xlu1 %v8896_v59, %s7641_s7 }
 0xb2f   :  { %4952 = vrot.lane.b32.xlu1 %v8894_v49, %s7630_s24 }
 0xb33   :  { %4954 = vrot.lane.b32.xlu1 %v8904_v21, %s7630_s24 }
 0xb37   :  { %4950 = vrot.lane.b32.xlu1 %v8904_v21, %s7644_s25 }
 0xb38   :  { %4822 = vrot.lane.b32.xlu0 %v8906_v2, %s7641_s7 }
 0xb3c   :  { %4948 = vrot.lane.b32.xlu0 %v8894_v49, %s7644_s25 }
 0xba3   :  { %v4800_v11 = vpop.xlane.xlu1 %4799 }
 0xba7   :  { %v4806_v0 = vpop.xlane.xlu1 %4805 }
 0xbab   :  { %v4809_v1 = vpop.xlane.xlu0 %4808  ;;  %v4821_v47 = vpop.permute.xlu1 %4820 }
 0xbac   :  { %6965 = vmatprep.subr.bf16.mxu0 %v4821_v47  ;;  %7407 = vrcp.f32 %v4809_v1 }
 0xbad   :  { %6966 = vmatpush3.bf16.msra.mxu0 %v4821_v47  ;;  %7409 = vrcp.f32 %v4800_v11 }
 0xbae   :  { %7411 = vrcp.f32 %v4806_v0 }
 0xbaf   :  { %v4803_v53 = vpop.xlane.xlu0 %4802  ;;  %v4953_v21 = vpop.permute.xlu1 %4952 }
 0xbb0   :  { %7413 = vrcp.f32 %v4803_v53  ;;  %v4963_v6 = vsel %vm371_vm1, %v4953_v21, 0 }
 0xbb3   :  { %v4823_v51 = vpop.permute.xlu0 %4822  ;;  %v4955_v30 = vpop.permute.xlu1 %4954 }
 0xbb4   :  { %6967 = vmatprep.subr.bf16.mxu0 %v4823_v51  ;;  %v4966_v40 = vsel %vm371_vm1, %v4955_v30, 0 }
 0xbb5   :  { %v9000_v17 = vpop.f32.mrb[40].mxu1  ;;  %6968 = vmatpush3.bf16.msra.mxu0 %v4823_v51 }
 0xbb6   :  { %v9002_v58 = vpop.f32.mrb[41].mxu1  ;;  %7281 = vmatprep.subr.msk.bf16.mxu0 %vm371_vm1, %v4953_v21  ;;  %v7408_v49 = vpop.eup %7407 }
 0xbb7   :  { %v9005_v24 = vpop.f32.mrb[42].mxu1  ;;  %v7410_v8 = vpop.eup %7409  ;;  %v4817_v46 = vmul.f32 %v7408_v49, %v7404_v16 }
 0xbb8   :  { %v4402_v20 = vpack.c.bf16 %v9005_v24, %v9000_v17  ;;  %v9009_v61 = vpop.f32.mrb[43].mxu1  ;;  %v7412_v7 = vpop.eup %7411  ;;  %v4814_v27 = vmul.f32 %v7410_v8, %v7400_v23 }
 0xbb9   :  { %v4401_v34 = vpack.c.bf16 %v9009_v61, %v9002_v58  ;;  %v4816_v43 = vmul.f32 %v7412_v7, %v7402_v50  ;;  %v4949_v29 = vpop.permute.xlu0 %4948  ;;  %v4951_v55 = vpop.permute.xlu1 %4950 }
 0xbba   :  { %v7414_v26 = vpop.eup %7413 }
 0xbbb   :  { %v4815_v63 = vmul.f32 %v7414_v26, %v7406_v36  ;;  %v4819_v19 = vpack.c.bf16 %v4817_v46, %v4816_v43 }
 0xbbd   :  { %v4818_v9 = vpack.c.bf16 %v4815_v63, %v4814_v27 }
 0xbbf   :  { %6969 = vmatprep.mubr.msk.bf16.mxu0 %vm1002_vm13, %v4818_v9 }
 0xbc0   :  { %6970 = vmatmul.mubr.msk.bf16.vlgmr.msra.gmra.mrb[28].mxu0 %vm1002_vm13, %v4819_v19 }
 0xbc1   :  { %6980 = vmatpush3.bf16.xpose.msra.mxu0 %v4963_v6  ;;  %6983 = vmatprep.mubr.msk.bf16.mxu0 %vm371_vm1, %v4949_v29 }
 0xbc2   :  { %7282 = vmatprep.subr.msk.bf16.mxu0 %vm371_vm1, %v4955_v30 }
 0xbc5   :  { %v6935_v60 = vpop.f32.mrb[44].mxu1 }
 0xbc6   :  { %v4457_v32 = vpop.f32.mrb[45].mxu1  ;;  %v4478_v13 = vsel %vm1002_vm13, %v6935_v60, -inf }
 0xbc7   :  { %v6936_v35 = vpop.f32.mrb[46].mxu1  ;;  %v4472_v54 = vsel %vm1002_vm13, %v4457_v32, -inf }
 0xbc8   :  { %v4460_v56 = vpop.f32.mrb[47].mxu1  ;;  %4473 = vmax.xlane.f32.xlu0 %v4472_v54  ;;  %v4481_v22 = vsel %vm1002_vm13, %v6936_v35, -inf }
 0xbc9   :  { %v4475_v15 = vsel %vm1002_vm13, %v4460_v56, -inf  ;;  %6982 = vmatpush3.bf16.xpose.msra.mxu0 %v4966_v40 }
 0xbca   :  { %4476 = vmax.xlane.f32.xlu1 %v4475_v15 }
 0xbcc   :  { %4479 = vmax.xlane.f32.xlu0 %v4478_v13 }
 0xbd0   :  { %4482 = vmax.xlane.f32.xlu0 %v4481_v22  ;;  %6984 = vmatmul.mubr.msk.bf16.vlgmr.msra.gmra.mrb[32].mxu0 %vm371_vm1, %v4951_v55 }
 0xbd1   :  { %7005 = vmatprep.mubr.msk.bf16.mxu0 %vm371_vm1, %v8916_v18 }
 0xc55   :  { %v4474_v45 = vpop.xlane.xlu0 %4473 }
 0xc56   :  { %v4484_v12 = vsub.f32 %v4457_v32, %v4474_v45 }
 0xc57   :  { %v4477_v5 = vpop.xlane.xlu1 %4476 }
 0xc58   :  { %v4488_v39 = vmul.f32 1.442695, %v4484_v12  ;;  %v4485_v44 = vsub.f32 %v4460_v56, %v4477_v5 }
 0xc59   :  { %v4480_v37 = vpop.xlane.xlu0 %4479 }
 0xc5a   :  { %v4486_v33 = vsub.f32 %v6935_v60, %v4480_v37  ;;  %v4490_v52 = vmul.f32 1.442695, %v4485_v44 }
 0xc5c   :  { %v4492_v10 = vmul.f32 1.442695, %v4486_v33 }
 0xc5d   :  { %v4483_v41 = vpop.xlane.xlu0 %4482 }
 0xc5e   :  { %7415 = vpow2.f32 %v4492_v10  ;;  %v4487_v3 = vsub.f32 %v6936_v35, %v4483_v41 }
 0xc5f   :  { %7417 = vpow2.f32 %v4488_v39 }
 0xc60   :  { %v4494_v14 = vmul.f32 1.442695, %v4487_v3 }
 0xc62   :  { %7419 = vpow2.f32 %v4494_v14 }
 0xc63   :  { %7421 = vpow2.f32 %v4490_v52 }
 0xc68   :  { %v7416_v38 = vpop.eup %7415 }
 0xc69   :  { %v4502_v57 = vsel %vm1002_vm13, %v7416_v38, 0.0  ;;  %v7418_v23 = vpop.eup %7417 }
 0xc6a   :  { %4503 = vadd.xlane.f32.xlu1 %v4502_v57  ;;  %v4496_v50 = vsel %vm1002_vm13, %v7418_v23, 0.0 }
 0xc6c   :  { %v7420_v25 = vpop.eup %7419 }
 0xc6d   :  { %v4505_v4 = vsel %vm1002_vm13, %v7420_v25, 0.0  ;;  %v7422_v16 = vpop.eup %7421 }
 0xc6e   :  { %4497 = vadd.xlane.f32.xlu1 %v4496_v50  ;;  %4506 = vadd.xlane.f32.xlu0 %v4505_v4  ;;  %v4499_v42 = vsel %vm1002_vm13, %v7422_v16, 0.0 }
 0xc72   :  { %4500 = vadd.xlane.f32.xlu0 %v4499_v42 }
 0xc7f   :  { %4520 = vrot.lane.b32.xlu1 %v8896_v59, %s7643_s23 }
 0xc83   :  { %5209 = vrot.lane.b32.xlu1 %v8916_v18, %s7633_s3 }
 0xc87   :  { %5211 = vrot.lane.b32.xlu1 %v8920_v28, %s7633_s3 }
 0xc88   :  { %4522 = vrot.lane.b32.xlu0 %v8906_v2, %s7643_s23 }
 0xc93   :  { %v9038_v36 = vpop.f32.mrb[28].mxu0 }
 0xc94   :  { %v9040_v62 = vpop.f32.mrb[29].mxu0 }
 0xc95   :  { %v9042_v11 = vpop.f32.mrb[30].mxu0 }
 0xc96   :  { %v4882_v0 = vpack.c.bf16 %v9042_v11, %v9038_v36  ;;  %v9046_v1 = vpop.f32.mrb[31].mxu0 }
 0xc97   :  { %v4881_v47 = vpack.c.bf16 %v9046_v1, %v9040_v62  ;;  %v9120_v62 = vld [vmem:[%s9308_s8 + $0x18] sm:$0xff]  }
 0xca3   :  { %v6985_v53 = vpop.f32.mrb[32].mxu0 }
 0xca4   :  { %v5002_v51 = vpop.f32.mrb[33].mxu0  ;;  %v5023_v7 = vsel %vm1002_vm13, %v6985_v53, -inf }
 0xca5   :  { %v6986_v21 = vpop.f32.mrb[34].mxu0  ;;  %v5017_v49 = vsel %vm1002_vm13, %v5002_v51, -inf }
 0xca6   :  { %v5005_v8 = vpop.f32.mrb[35].mxu0  ;;  %v5026_v46 = vsel %vm1002_vm13, %v6986_v21, -inf }
 0xca7   :  { %5018 = vmax.xlane.f32.xlu0 %v5017_v49  ;;  %v5020_v26 = vsel %vm1002_vm13, %v5005_v8, -inf  ;;  %v9083_v49 = vld [vmem:[%s9308_s8] sm:$0xff]  }
 0xcab   :  { %5024 = vmax.xlane.f32.xlu0 %v5023_v7  ;;  %5021 = vmax.xlane.f32.xlu1 %v5020_v26 }
 0xcaf   :  { %5027 = vmax.xlane.f32.xlu0 %v5026_v46 }
 0xcf7   :  { %v4504_v27 = vpop.xlane.xlu1 %4503 }
 0xcfb   :  { %v4507_v63 = vpop.xlane.xlu0 %4506  ;;  %v4498_v43 = vpop.xlane.xlu1 %4497 }
 0xcfc   :  { %7423 = vrcp.f32 %v4507_v63 }
 0xcfd   :  { %7425 = vrcp.f32 %v4498_v43 }
 0xcfe   :  { %7427 = vrcp.f32 %v4504_v27 }
 0xcff   :  { %v4501_v9 = vpop.xlane.xlu0 %4500  ;;  %v4521_v19 = vpop.permute.xlu1 %4520 }
 0xd00   :  { %7429 = vrcp.f32 %v4501_v9  ;;  %6937 = vmatprep.subr.bf16.mxu1 %v4521_v19  ;;  %v9089_v9 = vld [vmem:[%s9308_s8 + $0x10] sm:$0xff]  }
 0xd01   :  { %6938 = vmatpush3.bf16.msra.mxu1 %v4521_v19 }
 0xd03   :  { %v4523_v6 = vpop.permute.xlu0 %4522  ;;  %v5210_v29 = vpop.permute.xlu1 %5209 }
 0xd04   :  { %v5220_v30 = vsel %vm371_vm1, %v5210_v29, 0  ;;  %6939 = vmatprep.subr.bf16.mxu1 %v4523_v6  ;;  %7283 = vmatprep.subr.msk.bf16.mxu0 %vm371_vm1, %v5210_v29 }
 0xd05   :  { %6940 = vmatpush3.bf16.msra.mxu1 %v4523_v6  ;;  %7002 = vmatpush3.bf16.xpose.msra.mxu0 %v5220_v30 }
 0xd06   :  { %v7424_v60 = vpop.eup %7423 }
 0xd07   :  { %v5212_v32 = vpop.permute.xlu1 %5211  ;;  %v7426_v35 = vpop.eup %7425  ;;  %v4515_v56 = vmul.f32 %v7424_v60, %v7420_v25 }
 0xd08   :  { %7284 = vmatprep.subr.msk.bf16.mxu0 %vm371_vm1, %v5212_v32  ;;  %v7428_v54 = vpop.eup %7427  ;;  %v4512_v15 = vmul.f32 %v7426_v35, %v7418_v23  ;;  %v5223_v22 = vsel %vm371_vm1, %v5212_v32, 0 }
 0xd09   :  { %v4514_v55 = vmul.f32 %v7428_v54, %v7416_v38 }
 0xd0a   :  { %v7430_v40 = vpop.eup %7429 }
 0xd0b   :  { %v4513_v13 = vmul.f32 %v7430_v40, %v7422_v16  ;;  %v4517_v12 = vpack.c.bf16 %v4515_v56, %v4514_v55 }
 0xd0d   :  { %7004 = vmatpush3.bf16.xpose.msra.mxu0 %v5223_v22  ;;  %v4516_v45 = vpack.c.bf16 %v4513_v13, %v4512_v15 }
 0xd0f   :  { %6941 = vmatprep.mubr.msk.bf16.mxu1 %vm1002_vm13, %v4516_v45 }
 0xd10   :  { %6942 = vmatmul.mubr.msk.bf16.vlgmr.msra.gmra.mrb[48].mxu1 %vm1002_vm13, %v4517_v12 }
 0xd14   :  { %7006 = vmatmul.mubr.msk.bf16.vlgmr.msra.gmra.mrb[36].mxu0 %vm371_vm1, %v8920_v28 }
 0xd34   :  { %v5019_v5 = vpop.xlane.xlu0 %5018 }
 0xd35   :  { %v5029_v37 = vsub.f32 %v5002_v51, %v5019_v5 }
 0xd37   :  { %v5033_v33 = vmul.f32 1.442695, %v5029_v37 }
 0xd38   :  { %v5025_v39 = vpop.xlane.xlu0 %5024  ;;  %v5022_v44 = vpop.xlane.xlu1 %5021 }
 0xd39   :  { %7431 = vpow2.f32 %v5033_v33  ;;  %v5031_v10 = vsub.f32 %v6985_v53, %v5025_v39  ;;  %v5030_v3 = vsub.f32 %v5005_v8, %v5022_v44 }
 0xd3b   :  { %v5037_v41 = vmul.f32 1.442695, %v5031_v10  ;;  %v5035_v38 = vmul.f32 1.442695, %v5030_v3 }
 0xd3c   :  { %v5028_v52 = vpop.xlane.xlu0 %5027 }
 0xd3d   :  { %7433 = vpow2.f32 %v5037_v41  ;;  %v5032_v14 = vsub.f32 %v6986_v21, %v5028_v52  ;;  %v9076_v21 = vld [vmem:[%s9308_s8 + $0x8] sm:$0xff]  }
 0xd3e   :  { %6945 = vmatprep.subr.bf16.mxu1 %v9076_v21 }
 0xd3f   :  { %v5039_v57 = vmul.f32 1.442695, %v5032_v14  ;;  %6946 = vmatpush3.bf16.msra.mxu1 %v9076_v21 }
 0xd40   :  { %6951 = vmatprep.subr.bf16.mxu1 %v9083_v49 }
 0xd41   :  { %7435 = vpow2.f32 %v5039_v57 }
 0xd42   :  { %7437 = vpow2.f32 %v5035_v38 }
 0xd43   :  { %v7432_v23 = vpop.eup %7431 }
 0xd44   :  { %v5041_v25 = vsel %vm1002_vm13, %v7432_v23, 0.0 }
 0xd45   :  { %5042 = vadd.xlane.f32.xlu1 %v5041_v25 }
 0xd47   :  { %v9063_v50 = vpop.eup %7433 }
 0xd48   :  { %v5047_v4 = vsel %vm1002_vm13, %v9063_v50, 0.0 }
 0xd49   :  { %5048 = vadd.xlane.f32.xlu1 %v5047_v4 }
 0xd4b   :  { %v7436_v16 = vpop.eup %7435 }
 0xd4c   :  { %v5050_v42 = vsel %vm1002_vm13, %v7436_v16, 0.0  ;;  %v7438_v53 = vpop.eup %7437 }
 0xd4d   :  { %5051 = vadd.xlane.f32.xlu0 %v5050_v42  ;;  %v5044_v51 = vsel %vm1002_vm13, %v7438_v53, 0.0 }
 0xd51   :  { %5045 = vadd.xlane.f32.xlu0 %v5044_v51 }
 0xd5a   :  { %5063 = vrot.lane.b32.xlu1 %v8896_v59, %s7644_s25 }
 0xd67   :  { %5065 = vrot.lane.b32.xlu0 %v8906_v2, %s7644_s25 }
 0xdd2   :  { %v5043_v30 = vpop.xlane.xlu1 %5042 }
 0xdd6   :  { %v5049_v40 = vpop.xlane.xlu1 %5048 }
 0xdda   :  { %v5052_v46 = vpop.xlane.xlu0 %5051  ;;  %v5064_v58 = vpop.permute.xlu1 %5063 }
 0xdde   :  { %v5046_v32 = vpop.xlane.xlu0 %5045 }
 0xddf   :  { %7439 = vrcp.f32 %v5046_v32 }
 0xde0   :  { %7441 = vrcp.f32 %v5043_v30 }
 0xde1   :  { %7443 = vrcp.f32 %v5052_v46 }
 0xde2   :  { %7445 = vrcp.f32 %v5049_v40  ;;  %v5066_v24 = vpop.permute.xlu0 %5065 }
 0xde3   :  { %v6943_v59 = vpop.f32.mrb[48].mxu1 }
 0xde4   :  { %v4566_v8 = vpop.f32.mrb[49].mxu1 }
 0xde5   :  { %v6944_v7 = vpop.f32.mrb[50].mxu1 }
 0xde6   :  { %v4582_v2 = vpack.c.bf16 %v6944_v7, %v6943_v59  ;;  %v4569_v26 = vpop.f32.mrb[51].mxu1 }
 0xde7   :  { %v4581_v27 = vpack.c.bf16 %v4569_v26, %v4566_v8  ;;  %v7007_v63 = vpop.f32.mrb[36].mxu0 }
 0xde8   :  { %v5259_v43 = vpop.f32.mrb[37].mxu0  ;;  %v5280_v35 = vsel %vm1002_vm13, %v7007_v63, -inf }
 0xde9   :  { %6947 = vmatprep.mubr.msk.bf16.mxu1 %vm371_vm1, %v4581_v27  ;;  %v7008_v19 = vpop.f32.mrb[38].mxu0  ;;  %v5274_v6 = vsel %vm1002_vm13, %v5259_v43, -inf  ;;  %v7440_v61 = vpop.eup %7439 }
 0xdea   :  { %6948 = vmatmul.mubr.msk.bf16.vlgmr.msra.gmra.mrb[52].mxu1 %vm371_vm1, %v4582_v2  ;;  %5275 = vmax.xlane.f32.xlu1 %v5274_v6  ;;  %v5262_v29 = vpop.f32.mrb[39].mxu0  ;;  %v5283_v54 = vsel %vm1002_vm13, %v7008_v19, -inf  ;;  %v5058_v56 = vmul.f32 %v7440_v61, %v7438_v53 }
 0xdeb   :  { %6953 = vmatprep.mubr.msk.bf16.mxu1 %vm371_vm1, %v4401_v34  ;;  %v5277_v60 = vsel %vm1002_vm13, %v5262_v29, -inf  ;;  %6952 = vmatpush3.bf16.msra.mxu1 %v9083_v49  ;;  %v7442_v34 = vpop.eup %7441 }
 0xdec   :  { %5278 = vmax.xlane.f32.xlu0 %v5277_v60  ;;  %6973 = vmatprep.subr.bf16.mxu1 %v9089_v9  ;;  %v5057_v15 = vmul.f32 %v7442_v34, %v7432_v23  ;;  %v7444_v13 = vpop.eup %7443 }
 0xded   :  { %v7446_v17 = vpop.eup %7445 }
 0xdee   :  { %5281 = vmax.xlane.f32.xlu1 %v5280_v35  ;;  %v5061_v55 = vpack.c.bf16 %v5058_v56, %v5057_v15  ;;  %v5059_v1 = vmul.f32 %v7446_v17, %v9063_v50 }
 0xdf0   :  { %5284 = vmax.xlane.f32.xlu0 %v5283_v54 }
 0xdf6   :  { %6954 = vmatmul.mubr.msk.bf16.vlgmr.msra.gmra.mrb[52].mxu1 %vm371_vm1, %v4402_v20  ;;  %v5060_v20 = vmul.f32 %v7444_v13, %v7436_v16 }
 0xdf7   :  { %6974 = vmatpush3.bf16.msra.mxu1 %v9089_v9  ;;  %6975 = vmatprep.mubr.msk.bf16.mxu1 %vm371_vm1, %v4881_v47 }
 0xdf8   :  { %6987 = vmatprep.subr.bf16.mxu1 %v5064_v58  ;;  %v5062_v36 = vpack.c.bf16 %v5060_v20, %v5059_v1 }
 0xe02   :  { %6976 = vmatmul.mubr.msk.bf16.vlgmr.msra.gmra.mrb[52].mxu1 %vm371_vm1, %v4882_v0 }
 0xe03   :  { %6988 = vmatpush3.bf16.msra.mxu1 %v5064_v58  ;;  %6991 = vmatprep.mubr.msk.bf16.mxu1 %vm1002_vm13, %v5061_v55 }
 0xe04   :  { %6989 = vmatprep.subr.bf16.mxu1 %v5066_v24 }
 0xe07   :  { %6990 = vmatpush3.bf16.msra.mxu1 %v5066_v24  ;;  %v9169_v24 = vld [vmem:[%s9309_s9] ss:$0 sm:$0xff]  ;;  %s7645_s9 = smov [#allocation10]  }
 0xe08   :  { %6995 = vmatprep.subr.bf16.mxu1 %v9120_v62 }
 0xe0a   :  { %6992 = vmatmul.mubr.msk.bf16.vlgmr.msra.gmra.mrb[56].mxu1 %vm1002_vm13, %v5062_v36 }
 0xe0b   :  { %6996 = vmatpush3.bf16.msra.mxu1 %v9120_v62 }
 0xe0c   :  { %7009 = vmatprep.subr.bf16.mxu1 %v8918_v48 }
 0xe77   :  { %v5276_v11 = vpop.xlane.xlu1 %5275 }
 0xe78   :  { %v5286_v0 = vsub.f32 %v5259_v43, %v5276_v11 }
 0xe79   :  { %v5279_v47 = vpop.xlane.xlu0 %5278 }
 0xe7a   :  { %v5287_v22 = vsub.f32 %v5262_v29, %v5279_v47  ;;  %v5290_v37 = vmul.f32 1.442695, %v5286_v0 }
 0xe7b   :  { %v5282_v45 = vpop.xlane.xlu1 %5281 }
 0xe7c   :  { %v5292_v12 = vmul.f32 1.442695, %v5287_v22  ;;  %v5288_v5 = vsub.f32 %v7007_v63, %v5282_v45 }
 0xe7d   :  { %v5285_v33 = vpop.xlane.xlu0 %5284 }
 0xe7e   :  { %7447 = vpow2.f32 %v5292_v12  ;;  %v5294_v39 = vmul.f32 1.442695, %v5288_v5  ;;  %v5289_v44 = vsub.f32 %v7008_v19, %v5285_v33 }
 0xe80   :  { %7449 = vpow2.f32 %v5294_v39  ;;  %v5296_v10 = vmul.f32 1.442695, %v5289_v44 }
 0xe81   :  { %7451 = vpow2.f32 %v5290_v37 }
 0xe82   :  { %7453 = vpow2.f32 %v5296_v10 }
 0xe88   :  { %v7448_v41 = vpop.eup %7447 }
 0xe89   :  { %v5301_v3 = vsel %vm1002_vm13, %v7448_v41, 0.0 }
 0xe8a   :  { %v7450_v52 = vpop.eup %7449  ;;  %5302 = vadd.xlane.f32.xlu0 %v5301_v3 }
 0xe8b   :  { %v7452_v14 = vpop.eup %7451  ;;  %v5304_v38 = vsel %vm1002_vm13, %v7450_v52, 0.0 }
 0xe8c   :  { %v7454_v57 = vpop.eup %7453  ;;  %5305 = vadd.xlane.f32.xlu1 %v5304_v38  ;;  %v5298_v25 = vsel %vm1002_vm13, %v7452_v14, 0.0 }
 0xe8d   :  { %v5307_v23 = vsel %vm1002_vm13, %v7454_v57, 0.0 }
 0xe8e   :  { %5308 = vadd.xlane.f32.xlu0 %v5307_v23 }
 0xe90   :  { %5299 = vadd.xlane.f32.xlu1 %v5298_v25 }
 0xea1   :  { %5383 = vrot.lane.b32.xlu1 %v8916_v18, %s7642_s21 }
 0xea4   :  { %5385 = vrot.lane.b32.xlu0 %v8920_v28, %s7642_s21 }
 0xea5   :  { %5379 = vrot.lane.b32.xlu1 %v8916_v18, %s7643_s23 }
 0xea8   :  { %5673 = vrot.lane.b32.xlu0 %v8916_v18, %s7640_s20 }
 0xea9   :  { %5381 = vrot.lane.b32.xlu1 %v8920_v28, %s7643_s23 }
 0xeac   :  { %5669 = vrot.lane.b32.xlu0 %v8916_v18, %s7641_s7 }
 0xead   :  { %5675 = vrot.lane.b32.xlu1 %v8920_v28, %s7640_s20 }
 0xeb1   :  { %5671 = vrot.lane.b32.xlu1 %v8920_v28, %s7641_s7 }
 0xedd   :  { %v6993_v50 = vpop.f32.mrb[56].mxu1 }
 0xede   :  { %v5109_v4 = vpop.f32.mrb[57].mxu1 }
 0xedf   :  { %v6994_v16 = vpop.f32.mrb[58].mxu1 }
 0xee0   :  { %v5125_v42 = vpack.c.bf16 %v6994_v16, %v6993_v50  ;;  %v5112_v53 = vpop.f32.mrb[59].mxu1 }
 0xee1   :  { %v5124_v51 = vpack.c.bf16 %v5112_v53, %v5109_v4 }
 0xee3   :  { %6997 = vmatprep.mubr.msk.bf16.mxu1 %vm371_vm1, %v5124_v51 }
 0xee4   :  { %6998 = vmatmul.mubr.msk.bf16.vlgmr.msra.gmra.mrb[52].mxu1 %vm371_vm1, %v5125_v42 }
 0xee5   :  { %7010 = vmatpush3.bf16.msra.mxu1 %v8918_v48 }
 0xee6   :  { %7011 = vmatprep.subr.bf16.mxu1 %v8922_v31 }
 0xee9   :  { %7012 = vmatpush3.bf16.msra.mxu1 %v8922_v31 }
 0xf17   :  { %v5303_v59 = vpop.xlane.xlu0 %5302 }
 0xf18   :  { %7455 = vrcp.f32 %v5303_v59 }
 0xf19   :  { %v5306_v8 = vpop.xlane.xlu1 %5305 }
 0xf1b   :  { %v5309_v7 = vpop.xlane.xlu0 %5308 }
 0xf1c   :  { %7457 = vrcp.f32 %v5309_v7 }
 0xf1d   :  { %7459 = vrcp.f32 %v5306_v8  ;;  %v5300_v2 = vpop.xlane.xlu1 %5299 }
 0xf1e   :  { %7461 = vrcp.f32 %v5300_v2 }
 0xf1f   :  { %v5386_v40 = vpop.permute.xlu0 %5385 }
 0xf20   :  { %v5397_v58 = vsel %vm371_vm1, %v5386_v40, 0 }
 0xf21   :  { %v5384_v26 = vpop.permute.xlu1 %5383 }
 0xf22   :  { %7285 = vmatprep.subr.msk.bf16.mxu1 %vm371_vm1, %v5384_v26  ;;  %v7456_v46 = vpop.eup %7455  ;;  %v5394_v35 = vsel %vm371_vm1, %v5384_v26, 0 }
 0xf23   :  { %v5315_v29 = vmul.f32 %v7456_v46, %v7448_v41  ;;  %v5674_v61 = vpop.permute.xlu0 %5673 }
 0xf24   :  { %v5684_v56 = vsel %vm371_vm1, %v5674_v61, 0 }
 0xf25   :  { %v5380_v54 = vpop.permute.xlu1 %5379 }
 0xf26   :  { %v7458_v27 = vpop.eup %7457 }
 0xf27   :  { %v7460_v63 = vpop.eup %7459  ;;  %v5317_v19 = vmul.f32 %v7458_v27, %v7454_v57  ;;  %v5670_v15 = vpop.permute.xlu0 %5669 }
 0xf28   :  { %v7462_v43 = vpop.eup %7461  ;;  %v5316_v30 = vmul.f32 %v7460_v63, %v7450_v52 }
 0xf29   :  { %v5314_v6 = vmul.f32 %v7462_v43, %v7452_v14  ;;  %v5382_v34 = vpop.permute.xlu1 %5381 }
 0xf2a   :  { %v5319_v32 = vpack.c.bf16 %v5317_v19, %v5316_v30 }
 0xf2b   :  { %v5318_v60 = vpack.c.bf16 %v5315_v29, %v5314_v6 }
 0xf2d   :  { %7013 = vmatprep.mubr.msk.bf16.mxu1 %vm1002_vm13, %v5318_v60  ;;  %v5676_v13 = vpop.permute.xlu1 %5675 }
 0xf2e   :  { %7014 = vmatmul.mubr.msk.bf16.vlgmr.msra.gmra.mrb[60].mxu1 %vm1002_vm13, %v5319_v32  ;;  %v5687_v55 = vsel %vm371_vm1, %v5676_v13, 0 }
 0xf2f   :  { %7018 = vmatpush3.bf16.xpose.msra.mxu1 %v5394_v35  ;;  %7021 = vmatprep.mubr.msk.bf16.mxu1 %vm371_vm1, %v5380_v54 }
 0xf30   :  { %7286 = vmatprep.subr.msk.bf16.mxu1 %vm371_vm1, %v5386_v40 }
 0xf31   :  { %v5672_v17 = vpop.permute.xlu1 %5671 }
 0xf37   :  { %7020 = vmatpush3.bf16.xpose.msra.mxu1 %v5397_v58 }
 0xf38   :  { %7287 = vmatprep.subr.msk.bf16.mxu1 %vm371_vm1, %v5674_v61 }
 0xf3e   :  { %7022 = vmatmul.mubr.msk.bf16.vlgmr.msra.gmra.mrb[64].mxu1 %vm371_vm1, %v5382_v34 }
 0xf3f   :  { %7046 = vmatpush3.bf16.xpose.msra.mxu1 %v5684_v56  ;;  %7049 = vmatprep.mubr.msk.bf16.mxu1 %vm371_vm1, %v5670_v15 }
 0xf40   :  { %7288 = vmatprep.subr.msk.bf16.mxu1 %vm371_vm1, %v5676_v13 }
 0xf47   :  { %7048 = vmatpush3.bf16.xpose.msra.mxu1 %v5687_v55 }
 0xf4e   :  { %7050 = vmatmul.mubr.msk.bf16.vlgmr.msra.gmra.mrb[68].mxu1 %vm371_vm1, %v5672_v17 }
 0xfb7   :  { %v6999_v20 = vpop.f32.mrb[52].mxu1 }
 0xfb8   :  { %v5199_v1 = vadd.f32 %v6999_v20, %v9169_v24  ;;  %v5172_v36 = vpop.f32.mrb[53].mxu1 }
 0xfb9   :  { %v5197_v11 = vadd.f32 %v9169_v24, %v5172_v36  ;;  %v7000_v0 = vpop.f32.mrb[54].mxu1 }
 0xfba   :  { %5203 = vst [vmem:[#allocation10 + $0x10] sm:$0xff] %v5199_v1  ;;  %v5200_v47 = vadd.f32 %v7000_v0, %v9169_v24  ;;  %v5175_v22 = vpop.f32.mrb[55].mxu1 }
 0xfbb   :  { %5201 = vst [vmem:[#allocation10] sm:$0xff] %v5197_v11  ;;  %v5198_v45 = vadd.f32 %v9169_v24, %v5175_v22 }
 0xfbc   :  { %5204 = vst [vmem:[#allocation10 + $0x18] sm:$0xff] %v5200_v47 }
 0xfbd   :  { %5202 = vst [vmem:[#allocation10 + $0x8] sm:$0xff] %v5198_v45 }
0x1001   :  { %v9175_v12 = vpop.f32.mrb[60].mxu1 }
0x1002   :  { %v9177_v5 = vpop.f32.mrb[61].mxu1 }
0x1003   :  { %v9179_v37 = vpop.f32.mrb[62].mxu1 }
0x1004   :  { %v5378_v33 = vpack.c.bf16 %v9179_v37, %v9175_v12  ;;  %v9183_v39 = vpop.f32.mrb[63].mxu1 }
0x1005   :  { %v5377_v44 = vpack.c.bf16 %v9183_v39, %v9177_v5 }
0x1011   :  { %v7023_v10 = vpop.f32.mrb[64].mxu1 }
0x1012   :  { %v5433_v41 = vpop.f32.mrb[65].mxu1  ;;  %v5454_v57 = vsel %vm1002_vm13, %v7023_v10, -inf }
0x1013   :  { %v7024_v3 = vpop.f32.mrb[66].mxu1  ;;  %v5448_v52 = vsel %vm1002_vm13, %v5433_v41, -inf }
0x1014   :  { %5449 = vmax.xlane.f32.xlu0 %v5448_v52  ;;  %v5436_v14 = vpop.f32.mrb[67].mxu1  ;;  %v5457_v23 = vsel %vm1002_vm13, %v7024_v3, -inf }
0x1015   :  { %v5451_v38 = vsel %vm1002_vm13, %v5436_v14, -inf }
0x1016   :  { %5452 = vmax.xlane.f32.xlu1 %v5451_v38 }
0x1018   :  { %5455 = vmax.xlane.f32.xlu0 %v5454_v57 }
0x101c   :  { %5458 = vmax.xlane.f32.xlu0 %v5457_v23 }
0x1021   :  { %v9191_v25 = vpop.f32.mrb[68].mxu1 }
0x1022   :  { %v9193_v50 = vpop.f32.mrb[69].mxu1  ;;  %v5744_v61 = vsel %vm1002_vm13, %v9191_v25, -inf }
0x1023   :  { %v9195_v4 = vpop.f32.mrb[70].mxu1  ;;  %v5738_v40 = vsel %vm1002_vm13, %v9193_v50, -inf }
0x1024   :  { %v9197_v16 = vpop.f32.mrb[71].mxu1  ;;  %v5747_v34 = vsel %vm1002_vm13, %v9195_v4, -inf }
0x1025   :  { %v5741_v58 = vsel %vm1002_vm13, %v9197_v16, -inf }
0x10a1   :  { %v5450_v42 = vpop.xlane.xlu0 %5449 }
0x10a2   :  { %v5460_v53 = vsub.f32 %v5433_v41, %v5450_v42 }
0x10a3   :  { %v5453_v51 = vpop.xlane.xlu1 %5452 }
0x10a4   :  { %v5464_v7 = vmul.f32 1.442695, %v5460_v53  ;;  %v5461_v2 = vsub.f32 %v5436_v14, %v5453_v51 }
0x10a5   :  { %v5456_v59 = vpop.xlane.xlu0 %5455 }
0x10a6   :  { %v5462_v8 = vsub.f32 %v7023_v10, %v5456_v59  ;;  %v5466_v63 = vmul.f32 1.442695, %v5461_v2 }
0x10a8   :  { %v5468_v26 = vmul.f32 1.442695, %v5462_v8 }
0x10a9   :  { %v5459_v46 = vpop.xlane.xlu0 %5458 }
0x10aa   :  { %7463 = vpow2.f32 %v5468_v26  ;;  %v5463_v27 = vsub.f32 %v7024_v3, %v5459_v46 }
0x10ab   :  { %7465 = vpow2.f32 %v5464_v7 }
0x10ac   :  { %v5470_v43 = vmul.f32 1.442695, %v5463_v27 }
0x10ae   :  { %7467 = vpow2.f32 %v5470_v43 }
0x10af   :  { %7469 = vpow2.f32 %v5466_v63 }
0x10b4   :  { %v7464_v19 = vpop.eup %7463 }
0x10b5   :  { %v5478_v6 = vsel %vm1002_vm13, %v7464_v19, 0.0  ;;  %v7466_v29 = vpop.eup %7465 }
0x10b6   :  { %5479 = vadd.xlane.f32.xlu1 %v5478_v6  ;;  %v5472_v60 = vsel %vm1002_vm13, %v7466_v29, 0.0 }
0x10b8   :  { %v7468_v30 = vpop.eup %7467 }
0x10b9   :  { %v5481_v32 = vsel %vm1002_vm13, %v7468_v30, 0.0  ;;  %v7470_v35 = vpop.eup %7469 }
0x10ba   :  { %5473 = vadd.xlane.f32.xlu1 %v5472_v60  ;;  %5482 = vadd.xlane.f32.xlu0 %v5481_v32  ;;  %v5475_v54 = vsel %vm1002_vm13, %v7470_v35, 0.0 }
0x10be   :  { %5476 = vadd.xlane.f32.xlu0 %v5475_v54 }
0x10cb   :  { %5496 = vrot.lane.b32.xlu1 %v8918_v48, %s7643_s23 }
0x10cf   :  { %5910 = vrot.lane.b32.xlu1 %v8916_v18, %s7630_s24 }
0x10d3   :  { %5912 = vrot.lane.b32.xlu1 %v8920_v28, %s7630_s24  ;;  %s6157_s24 = sshll.u32 %s7645_s9, 4  ;;  %s6158_s24 = int_to_ptr.vmem [resolvable:$true] %s6157_s24 }
0x10d4   :  { %5498 = vrot.lane.b32.xlu0 %v8922_v31, %s7643_s23  ;;  %s7599_s11 = scalar_lea.vmem %s6158_s24, 1024  ;;  %p7604_p5 = scmp.lt.s32.totalorder %s6158_s24, %s6158_s24 }
0x10d5   :  { %p7600_p4 = scmp.ne.s32.totalorder %s6158_s24, %s7599_s11  ;;  %p7605_p6 = scmp.lt.s32.totalorder %s7599_s11, %s7599_s11 }
0x10d7   :  { %5908 = vrot.lane.b32.xlu1 %v8920_v28, %s7644_s25  ;;  %p7606_p7 = por %p7605_p6, %p7604_p5 }
0x10d8   :  { %5906 = vrot.lane.b32.xlu0 %v8916_v18, %s7644_s25 }
0x10d9   :  { %p7607_p8 = pnand %p7606_p7, %p7600_p4 }
0x10f7   :  { %5739 = vmax.xlane.f32.xlu0 %v5738_v40 }
0x10fb   :  { %5742 = vmax.xlane.f32.xlu1 %v5741_v58  ;;  %5745 = vmax.xlane.f32.xlu0 %v5744_v61 }
0x10ff   :  { %5748 = vmax.xlane.f32.xlu0 %v5747_v34 }
0x1143   :  { %v5480_v28 = vpop.xlane.xlu1 %5479 }
0x1147   :  { %v5474_v56 = vpop.xlane.xlu1 %5473  ;;  %v5483_v15 = vpop.xlane.xlu0 %5482 }
0x1148   :  { %7471 = vrcp.f32 %v5483_v15 }
0x1149   :  { %7473 = vrcp.f32 %v5474_v56 }
0x114a   :  { %7475 = vrcp.f32 %v5480_v28 }
0x114b   :  { %v5497_v18 = vpop.permute.xlu1 %5496  ;;  %v5477_v13 = vpop.xlane.xlu0 %5476 }
0x114c   :  { %7477 = vrcp.f32 %v5477_v13  ;;  %7025 = vmatprep.subr.bf16.mxu0 %v5497_v18 }
0x114d   :  { %7026 = vmatpush3.bf16.msra.mxu0 %v5497_v18 }
0x114f   :  { %v5911_v55 = vpop.permute.xlu1 %5910  ;;  %v5499_v17 = vpop.permute.xlu0 %5498 }
0x1150   :  { %v5921_v20 = vsel %vm371_vm1, %v5911_v55, 0  ;;  %7027 = vmatprep.subr.bf16.mxu0 %v5499_v17  ;;  %7289 = vmatprep.subr.msk.bf16.mxu1 %vm371_vm1, %v5911_v55 }
0x1151   :  { %7028 = vmatpush3.bf16.msra.mxu0 %v5499_v17  ;;  %7068 = vmatpush3.bf16.xpose.msra.mxu1 %v5921_v20 }
0x1152   :  { %7033 = vmatprep.subr.bf16.mxu0 %v9076_v21  ;;  %v7472_v1 = vpop.eup %7471 }
0x1153   :  { %v5913_v36 = vpop.permute.xlu1 %5912  ;;  %v5907_v11 = vpop.permute.xlu0 %5906  ;;  %v5491_v45 = vmul.f32 %v7472_v1, %v7468_v30 }
0x1154   :  { %v7474_v0 = vpop.eup %7473  ;;  %7290 = vmatprep.subr.msk.bf16.mxu1 %vm371_vm1, %v5913_v36  ;;  %7071 = vmatprep.mubr.msk.bf16.mxu1 %vm371_vm1, %v5907_v11  ;;  %v5924_v52 = vsel %vm371_vm1, %v5913_v36, 0 }
0x1155   :  { %v7476_v47 = vpop.eup %7475  ;;  %v5488_v10 = vmul.f32 %v7474_v0, %v7466_v29 }
0x1156   :  { %v7478_v22 = vpop.eup %7477  ;;  %v5490_v3 = vmul.f32 %v7476_v47, %v7464_v19 }
0x1157   :  { %v5489_v41 = vmul.f32 %v7478_v22, %v7470_v35  ;;  %v5909_v57 = vpop.permute.xlu1 %5908 }
0x1158   :  { %v5493_v38 = vpack.c.bf16 %v5491_v45, %v5490_v3 }
0x1159   :  { %7070 = vmatpush3.bf16.xpose.msra.mxu1 %v5924_v52  ;;  %v5492_v14 = vpack.c.bf16 %v5489_v41, %v5488_v10 }
0x115b   :  { %7029 = vmatprep.mubr.msk.bf16.mxu0 %vm1002_vm13, %v5492_v14 }
0x115c   :  { %7030 = vmatmul.mubr.msk.bf16.vlgmr.msra.gmra.mrb[40].mxu0 %vm1002_vm13, %v5493_v38 }
0x115d   :  { %7034 = vmatpush3.bf16.msra.mxu0 %v9076_v21 }
0x115e   :  { %7039 = vmatprep.subr.bf16.mxu0 %v9083_v49 }
0x1160   :  { %7072 = vmatmul.mubr.msk.bf16.vlgmr.msra.gmra.mrb[72].mxu1 %vm371_vm1, %v5909_v57 }
0x1184   :  { %v5740_v23 = vpop.xlane.xlu0 %5739 }
0x1185   :  { %v5750_v42 = vsub.f32 %v9193_v50, %v5740_v23 }
0x1187   :  { %v5754_v2 = vmul.f32 1.442695, %v5750_v42 }
0x1188   :  { %v5743_v53 = vpop.xlane.xlu1 %5742  ;;  %v5746_v51 = vpop.xlane.xlu0 %5745 }
0x1189   :  { %v5752_v59 = vsub.f32 %v9191_v25, %v5746_v51  ;;  %v5751_v8 = vsub.f32 %v9197_v16, %v5743_v53 }
0x118b   :  { %v5758_v7 = vmul.f32 1.442695, %v5752_v59  ;;  %v5756_v21 = vmul.f32 1.442695, %v5751_v8 }
0x118c   :  { %v5749_v26 = vpop.xlane.xlu0 %5748 }
0x118d   :  { %v5753_v46 = vsub.f32 %v9195_v4, %v5749_v26  ;;  %7479 = vpow2.f32 %v5758_v7 }
0x118e   :  { %7481 = vpow2.f32 %v5754_v2 }
0x118f   :  { %v5760_v27 = vmul.f32 1.442695, %v5753_v46 }
0x1191   :  { %7483 = vpow2.f32 %v5760_v27 }
0x1192   :  { %7485 = vpow2.f32 %v5756_v21 }
0x1197   :  { %v7480_v63 = vpop.eup %7479 }
0x1198   :  { %v5768_v50 = vsel %vm1002_vm13, %v7480_v63, 0.0  ;;  %v7482_v43 = vpop.eup %7481 }
0x1199   :  { %5769 = vadd.xlane.f32.xlu1 %v5768_v50  ;;  %v5762_v6 = vsel %vm1002_vm13, %v7482_v43, 0.0 }
0x119b   :  { %v7484_v19 = vpop.eup %7483 }
0x119c   :  { %v5771_v25 = vsel %vm1002_vm13, %v7484_v19, 0.0  ;;  %v7486_v16 = vpop.eup %7485 }
0x119d   :  { %5772 = vadd.xlane.f32.xlu0 %v5771_v25  ;;  %5763 = vadd.xlane.f32.xlu1 %v5762_v6  ;;  %v5765_v4 = vsel %vm1002_vm13, %v7486_v16, 0.0 }
0x11a1   :  { %5766 = vadd.xlane.f32.xlu0 %v5765_v4 }
0x11ae   :  { %5784 = vrot.lane.b32.xlu1 %v8918_v48, %s7641_s7 }
0x11b7   :  { %5786 = vrot.lane.b32.xlu0 %v8922_v31, %s7641_s7 }
0x1226   :  { %v5770_v29 = vpop.xlane.xlu1 %5769 }
0x122a   :  { %v5773_v30 = vpop.xlane.xlu0 %5772  ;;  %v5764_v32 = vpop.xlane.xlu1 %5763 }
0x122e   :  { %v5767_v60 = vpop.xlane.xlu0 %5766  ;;  %v5785_v55 = vpop.permute.xlu1 %5784 }
0x122f   :  { %v7031_v35 = vpop.f32.mrb[40].mxu0  ;;  %7487 = vrcp.f32 %v5767_v60 }
0x1230   :  { %v5542_v54 = vpop.f32.mrb[41].mxu0  ;;  %7489 = vrcp.f32 %v5764_v32 }
0x1231   :  { %v7032_v40 = vpop.f32.mrb[42].mxu0  ;;  %7491 = vrcp.f32 %v5773_v30 }
0x1232   :  { %v5558_v58 = vpack.c.bf16 %v7032_v40, %v7031_v35  ;;  %v5545_v61 = vpop.f32.mrb[43].mxu0  ;;  %7493 = vrcp.f32 %v5770_v29  ;;  %v5787_v39 = vpop.permute.xlu0 %5786 }
0x1233   :  { %v5557_v34 = vpack.c.bf16 %v5545_v61, %v5542_v54  ;;  %v7073_v28 = vpop.f32.mrb[72].mxu1 }
0x1234   :  { %v5960_v56 = vpop.f32.mrb[73].mxu1  ;;  %v5981_v20 = vsel %vm1002_vm13, %v7073_v28, -inf }
0x1235   :  { %7035 = vmatprep.mubr.msk.bf16.mxu0 %vm371_vm1, %v5557_v34  ;;  %v7074_v15 = vpop.f32.mrb[74].mxu1  ;;  %v5975_v18 = vsel %vm1002_vm13, %v5960_v56, -inf }
0x1236   :  { %7036 = vmatmul.mubr.msk.bf16.vlgmr.msra.gmra.mrb[44].mxu0 %vm371_vm1, %v5558_v58  ;;  %v5963_v13 = vpop.f32.mrb[75].mxu1  ;;  %5976 = vmax.xlane.f32.xlu1 %v5975_v18  ;;  %v5984_v36 = vsel %vm1002_vm13, %v7074_v15, -inf }
0x1237   :  { %7040 = vmatpush3.bf16.msra.mxu0 %v9083_v49  ;;  %7041 = vmatprep.mubr.msk.bf16.mxu0 %vm371_vm1, %v5377_v44  ;;  %v5978_v17 = vsel %vm1002_vm13, %v5963_v13, -inf }
0x1238   :  { %7053 = vmatprep.subr.bf16.mxu0 %v5785_v55  ;;  %5979 = vmax.xlane.f32.xlu0 %v5978_v17 }
0x1239   :  { %v7488_v1 = vpop.eup %7487 }
0x123a   :  { %5982 = vmax.xlane.f32.xlu1 %v5981_v20  ;;  %v7490_v11 = vpop.eup %7489  ;;  %v5779_v0 = vmul.f32 %v7488_v1, %v7486_v16 }
0x123b   :  { %v5778_v49 = vmul.f32 %v7490_v11, %v7482_v43  ;;  %v7492_v47 = vpop.eup %7491 }
0x123c   :  { %5985 = vmax.xlane.f32.xlu0 %v5984_v36  ;;  %v7494_v5 = vpop.eup %7493  ;;  %v5781_v44 = vmul.f32 %v7492_v47, %v7484_v19 }
0x123d   :  { %v5782_v22 = vpack.c.bf16 %v5779_v0, %v5778_v49  ;;  %v5780_v45 = vmul.f32 %v7494_v5, %v7480_v63 }
0x123f   :  { %v5783_v10 = vpack.c.bf16 %v5781_v44, %v5780_v45 }
0x1242   :  { %7042 = vmatmul.mubr.msk.bf16.vlgmr.msra.gmra.mrb[44].mxu0 %vm371_vm1, %v5378_v33 }
0x1243   :  { %7054 = vmatpush3.bf16.msra.mxu0 %v5785_v55  ;;  %7057 = vmatprep.mubr.msk.bf16.mxu0 %vm1002_vm13, %v5782_v22 }
0x1244   :  { %7055 = vmatprep.subr.bf16.mxu0 %v5787_v39 }
0x1247   :  { %7056 = vmatpush3.bf16.msra.mxu0 %v5787_v39 }
0x1248   :  { %7061 = vmatprep.subr.bf16.mxu0 %v9089_v9 }
0x124a   :  { %7058 = vmatmul.mubr.msk.bf16.vlgmr.msra.gmra.mrb[48].mxu0 %vm1002_vm13, %v5783_v10 }
0x124b   :  { %7062 = vmatpush3.bf16.msra.mxu0 %v9089_v9 }
0x12c3   :  { %v5977_v41 = vpop.xlane.xlu1 %5976 }
0x12c4   :  { %v5987_v12 = vsub.f32 %v5960_v56, %v5977_v41 }
0x12c5   :  { %v5980_v37 = vpop.xlane.xlu0 %5979 }
0x12c6   :  { %v5988_v3 = vsub.f32 %v5963_v13, %v5980_v37  ;;  %v5991_v14 = vmul.f32 1.442695, %v5987_v12 }
0x12c7   :  { %v5983_v33 = vpop.xlane.xlu1 %5982 }
0x12c8   :  { %v5989_v52 = vsub.f32 %v7073_v28, %v5983_v33  ;;  %v5993_v42 = vmul.f32 1.442695, %v5988_v3 }
0x12c9   :  { %v5986_v38 = vpop.xlane.xlu0 %5985 }
0x12ca   :  { %v5995_v57 = vmul.f32 1.442695, %v5989_v52  ;;  %v5990_v23 = vsub.f32 %v7074_v15, %v5986_v38 }
0x12cc   :  { %7495 = vpow2.f32 %v5995_v57  ;;  %v5997_v53 = vmul.f32 1.442695, %v5990_v23 }
0x12cd   :  { %7497 = vpow2.f32 %v5991_v14 }
0x12ce   :  { %7499 = vpow2.f32 %v5997_v53 }
0x12cf   :  { %7501 = vpow2.f32 %v5993_v42 }
0x12d6   :  { %v7496_v51 = vpop.eup %7495 }
0x12d7   :  { %v7498_v59 = vpop.eup %7497  ;;  %v6005_v9 = vsel %vm1002_vm13, %v7496_v51, 0.0 }
0x12d8   :  { %v7500_v8 = vpop.eup %7499  ;;  %6006 = vadd.xlane.f32.xlu1 %v6005_v9  ;;  %v5999_v26 = vsel %vm1002_vm13, %v7498_v59, 0.0 }
0x12d9   :  { %v6008_v7 = vsel %vm1002_vm13, %v7500_v8, 0.0  ;;  %v7502_v2 = vpop.eup %7501 }
0x12da   :  { %6009 = vadd.xlane.f32.xlu0 %v6008_v7  ;;  %v6002_v46 = vsel %vm1002_vm13, %v7502_v2, 0.0 }
0x12dc   :  { %6000 = vadd.xlane.f32.xlu1 %v5999_v26 }
0x12de   :  { %6003 = vadd.xlane.f32.xlu0 %v6002_v46 }
0x12ed   :  { %6021 = vrot.lane.b32.xlu1 %v8918_v48, %s7644_s25 }
0x12f4   :  { %6023 = vrot.lane.b32.xlu0 %v8922_v31, %s7644_s25 }
0x131d   :  { %v7059_v21 = vpop.f32.mrb[48].mxu0 }
0x131e   :  { %v5830_v27 = vpop.f32.mrb[49].mxu0 }
0x131f   :  { %v7060_v63 = vpop.f32.mrb[50].mxu0 }
0x1320   :  { %v5846_v50 = vpack.c.bf16 %v7060_v63, %v7059_v21  ;;  %v5833_v43 = vpop.f32.mrb[51].mxu0 }
0x1321   :  { %v5845_v19 = vpack.c.bf16 %v5833_v43, %v5830_v27 }
0x1323   :  { %7063 = vmatprep.mubr.msk.bf16.mxu0 %vm371_vm1, %v5845_v19 }
0x1324   :  { %7064 = vmatmul.mubr.msk.bf16.vlgmr.msra.gmra.mrb[44].mxu0 %vm371_vm1, %v5846_v50 }
0x1365   :  { %v6007_v25 = vpop.xlane.xlu1 %6006 }
0x1367   :  { %v6010_v16 = vpop.xlane.xlu0 %6009 }
0x1368   :  { %7503 = vrcp.f32 %v6010_v16 }
0x1369   :  { %v6001_v6 = vpop.xlane.xlu1 %6000 }
0x136a   :  { %7505 = vrcp.f32 %v6001_v6 }
0x136b   :  { %7507 = vrcp.f32 %v6007_v25  ;;  %v6004_v48 = vpop.xlane.xlu0 %6003 }
0x136c   :  { %7509 = vrcp.f32 %v6004_v48 }
0x136d   :  { %v6022_v4 = vpop.permute.xlu1 %6021 }
0x136e   :  { %7075 = vmatprep.subr.bf16.mxu0 %v6022_v4 }
0x136f   :  { %7076 = vmatpush3.bf16.msra.mxu0 %v6022_v4  ;;  %v6024_v31 = vpop.permute.xlu0 %6023 }
0x1370   :  { %7077 = vmatprep.subr.bf16.mxu0 %v6024_v31 }
0x1372   :  { %v7504_v29 = vpop.eup %7503 }
0x1373   :  { %7078 = vmatpush3.bf16.msra.mxu0 %v6024_v31  ;;  %v6018_v35 = vmul.f32 %v7504_v29, %v7500_v8 }
0x1374   :  { %v7506_v30 = vpop.eup %7505  ;;  %7083 = vmatprep.subr.bf16.mxu0 %v9120_v62 }
0x1375   :  { %v7508_v60 = vpop.eup %7507  ;;  %v6015_v54 = vmul.f32 %v7506_v30, %v7498_v59 }
0x1376   :  { %v7510_v32 = vpop.eup %7509  ;;  %v6017_v58 = vmul.f32 %v7508_v60, %v7496_v51 }
0x1377   :  { %v6016_v40 = vmul.f32 %v7510_v32, %v7502_v2 }
0x1378   :  { %v6020_v34 = vpack.c.bf16 %v6018_v35, %v6017_v58 }
0x1379   :  { %v6019_v61 = vpack.c.bf16 %v6016_v40, %v6015_v54 }
0x137b   :  { %7079 = vmatprep.mubr.msk.bf16.mxu0 %vm1002_vm13, %v6019_v61 }
0x137c   :  { %7080 = vmatmul.mubr.msk.bf16.vlgmr.msra.gmra.mrb[52].mxu0 %vm1002_vm13, %v6020_v34 }
0x137d   :  { %7084 = vmatpush3.bf16.msra.mxu0 %v9120_v62 }
0x144f   :  { %v7081_v28 = vpop.f32.mrb[52].mxu0 }
0x1450   :  { %v6067_v56 = vpop.f32.mrb[53].mxu0 }
0x1451   :  { %v7082_v15 = vpop.f32.mrb[54].mxu0 }
0x1452   :  { %v6083_v18 = vpack.c.bf16 %v7082_v15, %v7081_v28  ;;  %v6070_v13 = vpop.f32.mrb[55].mxu0 }
0x1453   :  { %v6082_v55 = vpack.c.bf16 %v6070_v13, %v6067_v56 }
0x1455   :  { %7085 = vmatprep.mubr.msk.bf16.mxu0 %vm371_vm1, %v6082_v55 }
0x1456   :  { %7086 = vmatmul.mubr.msk.bf16.vlgmr.msra.gmra.mrb[44].mxu0 %vm371_vm1, %v6083_v18 }
0x1529   :  { %v7087_v17 = vpop.f32.mrb[44].mxu0 }
0x152a   :  { %v6145_v20 = vadd.f32 %v7087_v17, %v9169_v24  ;;  %v6124_v1 = vpop.f32.mrb[45].mxu0 }
0x152b   :  { %v6143_v36 = vadd.f32 %v9169_v24, %v6124_v1  ;;  %v7088_v11 = vpop.f32.mrb[46].mxu0 }
0x152c   :  { %6150 = vst [vmem:[#allocation10 + $0x30] sm:$0xff] %v6145_v20  ;;  %v6146_v62 = vadd.f32 %v7088_v11, %v9169_v24  ;;  %v6127_v0 = vpop.f32.mrb[47].mxu0 }
0x152d   :  { %6148 = vst [vmem:[#allocation10 + $0x20] sm:$0xff] %v6143_v36  ;;  %v6144_v49 = vadd.f32 %v9169_v24, %v6127_v0 }
0x152e   :  { %6151 = vst [vmem:[#allocation10 + $0x38] sm:$0xff] %v6146_v62 }
0x152f   :  { %6149 = vst [vmem:[#allocation10 + $0x28] sm:$0xff] %v6144_v49 }
0x1530   :  { %7610 = shalt.err (!%p7607_p8)
}
0x1531   :  { %s7611_s13 = scalar_lea.hbm %s9310_s10, 1024 }
0x1532   :  { %p7612_p9 = scmp.ne.s32.totalorder %s9310_s10, %s7611_s13  ;;  %p7615_p10 = scmp.lt.u32.totalorder %s7611_s13, %s9310_s10 }
0x1534   :  { %p7617_p11 = pnand %p7615_p10, %p7612_p9 }
0x1536   :  { %7620 = shalt.err (!%p7617_p11)
}
0x1537   :  { %6163 = dma.vmem_to_hbm [thread:$0]  %s6158_s24, 1024, %s9310_s10, [#allocation4], %s7636_s2, %s7636_s2, %s7637_s29  }
0x1538   :  { %7627 = dma.done.wait [#allocation4], 1024  }
0x1539   :  { %7628 = vsyncadd [#allocation4], 4294966272 }
0x153a   :  { %6167 = vsyncpa [#allocation3], 1 }
0x153b   :  { %6168 = vsyncpa [#allocation6], 1 }
0x153c   :  { %6169 = vsyncpa [#allocation9], 1 }
0x153d   :  { %6170 = vsyncpa [#allocation4], 1 }

</bundles_post_ra>
